<compile_context>
chip_gen: v7x
topology: tpu7x:2x2x1
jax: 0.10.0
libtpu: 0.0.40
codegen_flags: <defaults>
</compile_context>

<pallas_src>
import jax
import jax.numpy as jnp
import numpy as np
from jax import lax
from jax.experimental import pallas as pl
from jax.experimental.pallas import tpu as pltpu


_VMEM_LIMIT_BYTES = 48 * 1024 * 1024   # under v7x's 64 MiB physical VMEM


# ----------------------------- in-kernel helpers ---------------------------- #

def _shifted_cols(xh, W):
    """W-halo reconstruction: [left, center, right] column-shifted views of an
    H-padded (Hp, W, C) tile with zero fill at the W boundaries."""
    Hp, _, C = xh.shape
    if W == 1:
        z = jnp.zeros_like(xh)
        return [z, xh, z]
    zcol = jnp.zeros((Hp, 1, C), xh.dtype)
    left = jnp.concatenate([zcol, xh[:, : W - 1, :]], axis=1)   # tap dx = -1
    right = jnp.concatenate([xh[:, 1:, :], zcol], axis=1)       # tap dx = +1
    return [left, xh, right]


def _conv3x3_bn_relu(x, w_ref, scale_ref, shift_ref):
    """x: (H, W, Cin) bf16 value (unpadded). Returns (H, W, Cout) f32 post
    affine + ReLU."""
    H, W, Cin = x.shape
    Cout = w_ref.shape[-1]

    # H halo: zero-row concat on the leading (non-layout) dim -> cheap.
    zrow = jnp.zeros((1, W, Cin), x.dtype)
    xh = jnp.concatenate([zrow, x, zrow], axis=0)          # (H+2, W, Cin)
    cols = _shifted_cols(xh, W)                             # 2 sublane shifts

    acc = None
    for dy in range(3):                                     # static 3x3 tap loop
        if H == 1 and dy != 1:
            continue                                        # reads only zero halo
        for dx in range(3):
            if W == 1 and dx != 1:
                continue                                    # reads only zero halo
            patch = cols[dx][dy:dy + H].reshape(H * W, Cin)
            t = jnp.dot(patch, w_ref[dy, dx],
                        preferred_element_type=jnp.float32)
            acc = t if acc is None else acc + t

    y = acc * scale_ref[0] + shift_ref[0]                   # conv bias + BN affine
    y = jnp.maximum(y, 0.0)                                 # ReLU
    return y.reshape(H, W, Cout)


def _maxpool2x2(y):
    """2x2 / stride-2 max-pool on an (H, W, C) value (H, W even)."""
    H, W, C = y.shape
    r = jnp.max(y.reshape(H // 2, 2, W, C), axis=1)
    return jnp.max(r.reshape(H // 2, W // 2, 2, C), axis=2)


def _make_stage_kernel(n_convs, emit_feature, do_pool):
    """Fused stage kernel: n_convs x (3x3 conv + BN affine + ReLU) chained in
    registers, optional fused 2x2/2 max-pool, optional f32 feature output.

    Refs: x_ref, (w, scale, shift) * n_convs, [feature_out], [pooled_out]."""

    def kernel(*refs):
        x = refs[0][0]                                      # (H, W, Cin) bf16
        y = None
        for c in range(n_convs):
            w_ref, s_ref, b_ref = refs[1 + 3 * c: 4 + 3 * c]
            y = _conv3x3_bn_relu(x, w_ref, s_ref, b_ref)    # f32
            x = y.astype(jnp.bfloat16)                      # feeds next conv
        o = 1 + 3 * n_convs
        if emit_feature:
            refs[o][0] = y                                  # f32, unpadded, aligned
            o += 1
        if do_pool:
            refs[o][0] = _maxpool2x2(y).astype(jnp.bfloat16)
    return kernel


# ------------------------------ stage wrapper ------------------------------- #

def _run_stage(x, layer_params, *, emit_feature, do_pool):
    """x: (N, H, W, Cin) bf16. Returns ( [feature f32], [pooled bf16] )."""
    N, H, W, Cin = x.shape
    n_convs = len(layer_params)
    Cout = layer_params[-1]["w"].shape[-1]

    in_specs = [pl.BlockSpec((1, H, W, Cin), lambda n: (n, 0, 0, 0))]
    args = [x]
    for p in layer_params:
        ci, co = p["w"].shape[2], p["w"].shape[3]
        in_specs.append(pl.BlockSpec((3, 3, ci, co), lambda n: (0, 0, 0, 0)))
        in_specs.append(pl.BlockSpec((1, co), lambda n: (0, 0)))
        in_specs.append(pl.BlockSpec((1, co), lambda n: (0, 0)))
        args.extend([p["w"], p["scale"], p["shift"]])

    out_shapes, out_specs = [], []
    if emit_feature:
        out_shapes.append(jax.ShapeDtypeStruct((N, H, W, Cout), jnp.float32))
        out_specs.append(pl.BlockSpec((1, H, W, Cout), lambda n: (n, 0, 0, 0)))
    if do_pool:
        out_shapes.append(jax.ShapeDtypeStruct((N, H // 2, W // 2, Cout),
                                               jnp.bfloat16))
        out_specs.append(pl.BlockSpec((1, H // 2, W // 2, Cout),
                                      lambda n: (n, 0, 0, 0)))

    outs = pl.pallas_call(
        _make_stage_kernel(n_convs, emit_feature, do_pool),
        out_shape=tuple(out_shapes),
        grid=(N,),
        in_specs=in_specs,
        out_specs=tuple(out_specs),
        compiler_params=pltpu.CompilerParams(
            dimension_semantics=("parallel",),      # v7x: one image per TC
            vmem_limit_bytes=_VMEM_LIMIT_BYTES),
    )(*args)
    if not isinstance(outs, (tuple, list)):
        outs = (outs,)
    return tuple(outs)


# ----------------------------- VGG definition ------------------------------- #

_VGG_STAGES = (
    (("conv1_1", 3, 64), ("conv1_2", 64, 64)),
    (("conv2_1", 64, 128), ("conv2_2", 128, 128)),
    (("conv3_1", 128, 256), ("conv3_2", 256, 256), ("conv3_3", 256, 256)),
    (("conv4_1", 256, 512), ("conv4_2", 512, 512), ("conv4_3", 512, 512)),
    (("conv5_1", 512, 512), ("conv5_2", 512, 512), ("conv5_3", 512, 512)),
)


def init_vgg_params(key, eps=1e-5):
    """Synthetic params matching BaseConv.__init__: conv weight ~ N(0, 0.01),
    conv bias = 0, BN gamma = 1, beta = 0 (inference-mode stats folded into a
    per-channel affine). Conv weights stored bf16 for the MXU."""
    params = {}
    for stage in _VGG_STAGES:
        for name, cin, cout in stage:
            key, wk = jax.random.split(key)
            w = 0.01 * jax.random.normal(wk, (3, 3, cin, cout), jnp.float32)
            conv_bias = jnp.zeros((cout,), jnp.float32)
            gamma = jnp.ones((cout,), jnp.float32)
            beta = jnp.zeros((cout,), jnp.float32)
            running_mean = jnp.zeros((cout,), jnp.float32)
            running_var = jnp.ones((cout,), jnp.float32)
            scale = gamma / jnp.sqrt(running_var + eps)
            shift = beta + (conv_bias - running_mean) * scale
            params[name] = dict(w=w.astype(jnp.bfloat16),
                                scale=scale.reshape(1, cout),
                                shift=shift.reshape(1, cout))
    return params


def vgg_forward(x_nchw, params):
    x = jnp.transpose(x_nchw, (0, 2, 3, 1)).astype(jnp.bfloat16)  # NCHW->NHWC once
    feats = []
    n_stages = len(_VGG_STAGES)
    for si, stage in enumerate(_VGG_STAGES):
        emit_feature = si > 0              # conv2_2 / conv3_3 / conv4_3 / conv5_3
        do_pool = si < n_stages - 1        # stages 1-4 end with a 2x2/2 pool
        sp = [params[name] for name, _, _ in stage]
        outs = _run_stage(x, sp, emit_feature=emit_feature, do_pool=do_pool)
        i = 0
        if emit_feature:
            feats.append(outs[i]); i += 1
        if do_pool:
            x = outs[i]
    to_nchw = lambda t: jnp.transpose(t, (0, 3, 1, 2))
    return tuple(to_nchw(f) for f in feats)


# --------------------------- pure-JAX reference ----------------------------- #

def _ref_conv(x, w, scale, shift):
    y = lax.conv_general_dilated(x, w.astype(jnp.float32), (1, 1), "SAME",
                                 dimension_numbers=("NHWC", "HWIO", "NHWC"),
                                 precision=lax.Precision.HIGHEST)
    y = y * scale.reshape(1, 1, 1, -1) + shift.reshape(1, 1, 1, -1)
    return jnp.maximum(y, 0.0)


def _ref_pool(x):
    return lax.reduce_window(x, -jnp.inf, lax.max,
                             (1, 2, 2, 1), (1, 2, 2, 1), "VALID")


def vgg_ref_forward(x_nchw, params):
    x = jnp.transpose(x_nchw, (0, 2, 3, 1))

    def c(name, t):
        p = params[name]
        return _ref_conv(t, p["w"], p["scale"], p["shift"])

    x = c("conv1_1", x); x = c("conv1_2", x); x = _ref_pool(x)
    x = c("conv2_1", x); conv2_2 = c("conv2_2", x); x = _ref_pool(conv2_2)
    x = c("conv3_1", x); x = c("conv3_2", x); conv3_3 = c("conv3_3", x)
    x = _ref_pool(conv3_3)
    x = c("conv4_1", x); x = c("conv4_2", x); conv4_3 = c("conv4_3", x)
    x = _ref_pool(conv4_3)
    x = c("conv5_1", x); x = c("conv5_2", x); conv5_3 = c("conv5_3", x)

    to_nchw = lambda t: jnp.transpose(t, (0, 3, 1, 2))
    return tuple(to_nchw(t) for t in (conv2_2, conv3_3, conv4_3, conv5_3))


# --------------------------------- main ------------------------------------- #

if __name__ == "__main__":
    key = jax.random.PRNGKey(0)
    pkey, xkey = jax.random.split(key)
    params = init_vgg_params(pkey)

    # Small NCHW input consistent with the module (RGB image): (N=2, C=3, 16, 16)
    x = jax.random.normal(xkey, (2, 3, 16, 16), jnp.float32)

    outs = jax.block_until_ready(vgg_forward(x, params))
    refs = jax.block_until_ready(vgg_ref_forward(x, params))

    expected_shapes = [(2, 128, 8, 8), (2, 256, 4, 4), (2, 512, 2, 2), (2, 512, 1, 1)]
    for o, r, s in zip(outs, refs, expected_shapes):
        assert o.shape == s, (o.shape, s)
        o_np = np.asarray(o, dtype=np.float32)
        r_np = np.asarray(r, dtype=np.float32)
        # bf16 MXU matmuls + bf16 inter-stage activations vs. a pure-f32
        # reference: tolerances are scaled to the feature magnitude.
        atol = 5e-2 * float(np.max(np.abs(r_np))) + 1e-8
        np.testing.assert_allclose(o_np, r_np, rtol=5e-2, atol=atol)

    print("KERNEL_OK")
</pallas_src>

<mosaic_0001>
module attributes {stable_mosaic.version = 11 : i64} {
  func.func @kernel(%arg0: i32, %arg1: memref<1x16x16x3xbf16, #tpu.memory_space<vmem>>, %arg2: memref<3x3x3x64xbf16, #tpu.memory_space<vmem>>, %arg3: memref<1x64xf32, #tpu.memory_space<vmem>>, %arg4: memref<1x64xf32, #tpu.memory_space<vmem>>, %arg5: memref<3x3x64x64xbf16, #tpu.memory_space<vmem>>, %arg6: memref<1x64xf32, #tpu.memory_space<vmem>>, %arg7: memref<1x64xf32, #tpu.memory_space<vmem>>, %arg8: memref<1x8x8x64xbf16, #tpu.memory_space<vmem>>) attributes {dimension_semantics = [#tpu.dimension_semantics<parallel>], iteration_bounds = array<i64: 2>, scalar_prefetch = 0 : i64, scratch_operands = 0 : i64, tpu.core_type = #tpu.core_type<tc>, window_params = [{transform_indices = @transform_0, window_bounds = array<i64: 1, 16, 16, 3>}, {pipeline_mode = #tpu.pipeline_mode<synchronous>, transform_indices = @transform_1, window_bounds = array<i64: 3, 3, 3, 64>}, {pipeline_mode = #tpu.pipeline_mode<synchronous>, transform_indices = @transform_2, window_bounds = array<i64: 1, 64>}, {pipeline_mode = #tpu.pipeline_mode<synchronous>, transform_indices = @transform_3, window_bounds = array<i64: 1, 64>}, {pipeline_mode = #tpu.pipeline_mode<synchronous>, transform_indices = @transform_4, window_bounds = array<i64: 3, 3, 64, 64>}, {pipeline_mode = #tpu.pipeline_mode<synchronous>, transform_indices = @transform_5, window_bounds = array<i64: 1, 64>}, {pipeline_mode = #tpu.pipeline_mode<synchronous>, transform_indices = @transform_6, window_bounds = array<i64: 1, 64>}, {transform_indices = @transform_7, window_bounds = array<i64: 1, 8, 8, 64>}]} {
    %c0 = arith.constant 0 : index
    %c0_0 = arith.constant 0 : index
    %c0_1 = arith.constant 0 : index
    %c0_2 = arith.constant 0 : index
    %0 = vector.load %arg1[%c0, %c0_0, %c0_1, %c0_2] : memref<1x16x16x3xbf16, #tpu.memory_space<vmem>>, vector<1x16x16x3xbf16>
    %1 = vector.shape_cast %0 : vector<1x16x16x3xbf16> to vector<16x16x3xbf16>
    %cst = arith.constant 0.000000e+00 : bf16
    %2 = vector.broadcast %cst : bf16 to vector<1x16x3xbf16>
    %3 = tpu.concatenate %2, %1, %2 in 0 : vector<1x16x3xbf16>, vector<16x16x3xbf16>, vector<1x16x3xbf16> -> vector<18x16x3xbf16>
    %cst_3 = arith.constant 0.000000e+00 : bf16
    %4 = vector.broadcast %cst_3 : bf16 to vector<18x1x3xbf16>
    %5 = vector.extract_strided_slice %3 {offsets = [0, 0, 0], sizes = [18, 15, 3], strides = [1, 1, 1]} : vector<18x16x3xbf16> to vector<18x15x3xbf16>
    %6 = tpu.concatenate %4, %5 in 1 : vector<18x1x3xbf16>, vector<18x15x3xbf16> -> vector<18x16x3xbf16>
    %7 = vector.extract_strided_slice %3 {offsets = [0, 1, 0], sizes = [18, 15, 3], strides = [1, 1, 1]} : vector<18x16x3xbf16> to vector<18x15x3xbf16>
    %8 = tpu.concatenate %7, %4 in 1 : vector<18x15x3xbf16>, vector<18x1x3xbf16> -> vector<18x16x3xbf16>
    %9 = vector.extract_strided_slice %6 {offsets = [0, 0, 0], sizes = [16, 16, 3], strides = [1, 1, 1]} : vector<18x16x3xbf16> to vector<16x16x3xbf16>
    %10 = vector.shape_cast %9 : vector<16x16x3xbf16> to vector<256x3xbf16>
    %c0_4 = arith.constant 0 : index
    %c0_5 = arith.constant 0 : index
    %c0_6 = arith.constant 0 : index
    %c0_7 = arith.constant 0 : index
    %11 = vector.load %arg2[%c0_4, %c0_5, %c0_6, %c0_7] : memref<3x3x3x64xbf16, #tpu.memory_space<vmem>>, vector<1x1x3x64xbf16>
    %12 = vector.shape_cast %11 : vector<1x1x3x64xbf16> to vector<3x64xbf16>
    %cst_8 = arith.constant dense<0.000000e+00> : vector<256x64xf32>
    %13 = tpu.matmul %10, %12, %cst_8 {dimension_numbers = #tpu.dot_dimension_numbers<[1], [0], [0], [1], [0, 0, 1, 1], [], []>} : vector<256x3xbf16>, vector<3x64xbf16>, vector<256x64xf32> -> vector<256x64xf32>
    %14 = vector.extract_strided_slice %3 {offsets = [0, 0, 0], sizes = [16, 16, 3], strides = [1, 1, 1]} : vector<18x16x3xbf16> to vector<16x16x3xbf16>
    %15 = vector.shape_cast %14 : vector<16x16x3xbf16> to vector<256x3xbf16>
    %c0_9 = arith.constant 0 : index
    %c1 = arith.constant 1 : index
    %c0_10 = arith.constant 0 : index
    %c0_11 = arith.constant 0 : index
    %16 = vector.load %arg2[%c0_9, %c1, %c0_10, %c0_11] : memref<3x3x3x64xbf16, #tpu.memory_space<vmem>>, vector<1x1x3x64xbf16>
    %17 = vector.shape_cast %16 : vector<1x1x3x64xbf16> to vector<3x64xbf16>
    %cst_12 = arith.constant dense<0.000000e+00> : vector<256x64xf32>
    %18 = tpu.matmul %15, %17, %cst_12 {dimension_numbers = #tpu.dot_dimension_numbers<[1], [0], [0], [1], [0, 0, 1, 1], [], []>} : vector<256x3xbf16>, vector<3x64xbf16>, vector<256x64xf32> -> vector<256x64xf32>
    %19 = arith.addf %13, %18 : vector<256x64xf32>
    %20 = vector.extract_strided_slice %8 {offsets = [0, 0, 0], sizes = [16, 16, 3], strides = [1, 1, 1]} : vector<18x16x3xbf16> to vector<16x16x3xbf16>
    %21 = vector.shape_cast %20 : vector<16x16x3xbf16> to vector<256x3xbf16>
    %c0_13 = arith.constant 0 : index
    %c2 = arith.constant 2 : index
    %c0_14 = arith.constant 0 : index
    %c0_15 = arith.constant 0 : index
    %22 = vector.load %arg2[%c0_13, %c2, %c0_14, %c0_15] : memref<3x3x3x64xbf16, #tpu.memory_space<vmem>>, vector<1x1x3x64xbf16>
    %23 = vector.shape_cast %22 : vector<1x1x3x64xbf16> to vector<3x64xbf16>
    %cst_16 = arith.constant dense<0.000000e+00> : vector<256x64xf32>
    %24 = tpu.matmul %21, %23, %cst_16 {dimension_numbers = #tpu.dot_dimension_numbers<[1], [0], [0], [1], [0, 0, 1, 1], [], []>} : vector<256x3xbf16>, vector<3x64xbf16>, vector<256x64xf32> -> vector<256x64xf32>
    %25 = arith.addf %19, %24 : vector<256x64xf32>
    %26 = vector.extract_strided_slice %6 {offsets = [1, 0, 0], sizes = [16, 16, 3], strides = [1, 1, 1]} : vector<18x16x3xbf16> to vector<16x16x3xbf16>
    %27 = vector.shape_cast %26 : vector<16x16x3xbf16> to vector<256x3xbf16>
    %c1_17 = arith.constant 1 : index
    %c0_18 = arith.constant 0 : index
    %c0_19 = arith.constant 0 : index
    %c0_20 = arith.constant 0 : index
    %28 = vector.load %arg2[%c1_17, %c0_18, %c0_19, %c0_20] : memref<3x3x3x64xbf16, #tpu.memory_space<vmem>>, vector<1x1x3x64xbf16>
    %29 = vector.shape_cast %28 : vector<1x1x3x64xbf16> to vector<3x64xbf16>
    %cst_21 = arith.constant dense<0.000000e+00> : vector<256x64xf32>
    %30 = tpu.matmul %27, %29, %cst_21 {dimension_numbers = #tpu.dot_dimension_numbers<[1], [0], [0], [1], [0, 0, 1, 1], [], []>} : vector<256x3xbf16>, vector<3x64xbf16>, vector<256x64xf32> -> vector<256x64xf32>
    %31 = arith.addf %25, %30 : vector<256x64xf32>
    %32 = vector.extract_strided_slice %3 {offsets = [1, 0, 0], sizes = [16, 16, 3], strides = [1, 1, 1]} : vector<18x16x3xbf16> to vector<16x16x3xbf16>
    %33 = vector.shape_cast %32 : vector<16x16x3xbf16> to vector<256x3xbf16>
    %c1_22 = arith.constant 1 : index
    %c1_23 = arith.constant 1 : index
    %c0_24 = arith.constant 0 : index
    %c0_25 = arith.constant 0 : index
    %34 = vector.load %arg2[%c1_22, %c1_23, %c0_24, %c0_25] : memref<3x3x3x64xbf16, #tpu.memory_space<vmem>>, vector<1x1x3x64xbf16>
    %35 = vector.shape_cast %34 : vector<1x1x3x64xbf16> to vector<3x64xbf16>
    %cst_26 = arith.constant dense<0.000000e+00> : vector<256x64xf32>
    %36 = tpu.matmul %33, %35, %cst_26 {dimension_numbers = #tpu.dot_dimension_numbers<[1], [0], [0], [1], [0, 0, 1, 1], [], []>} : vector<256x3xbf16>, vector<3x64xbf16>, vector<256x64xf32> -> vector<256x64xf32>
    %37 = arith.addf %31, %36 : vector<256x64xf32>
    %38 = vector.extract_strided_slice %8 {offsets = [1, 0, 0], sizes = [16, 16, 3], strides = [1, 1, 1]} : vector<18x16x3xbf16> to vector<16x16x3xbf16>
    %39 = vector.shape_cast %38 : vector<16x16x3xbf16> to vector<256x3xbf16>
    %c1_27 = arith.constant 1 : index
    %c2_28 = arith.constant 2 : index
    %c0_29 = arith.constant 0 : index
    %c0_30 = arith.constant 0 : index
    %40 = vector.load %arg2[%c1_27, %c2_28, %c0_29, %c0_30] : memref<3x3x3x64xbf16, #tpu.memory_space<vmem>>, vector<1x1x3x64xbf16>
    %41 = vector.shape_cast %40 : vector<1x1x3x64xbf16> to vector<3x64xbf16>
    %cst_31 = arith.constant dense<0.000000e+00> : vector<256x64xf32>
    %42 = tpu.matmul %39, %41, %cst_31 {dimension_numbers = #tpu.dot_dimension_numbers<[1], [0], [0], [1], [0, 0, 1, 1], [], []>} : vector<256x3xbf16>, vector<3x64xbf16>, vector<256x64xf32> -> vector<256x64xf32>
    %43 = arith.addf %37, %42 : vector<256x64xf32>
    %44 = vector.extract_strided_slice %6 {offsets = [2, 0, 0], sizes = [16, 16, 3], strides = [1, 1, 1]} : vector<18x16x3xbf16> to vector<16x16x3xbf16>
    %45 = vector.shape_cast %44 : vector<16x16x3xbf16> to vector<256x3xbf16>
    %c2_32 = arith.constant 2 : index
    %c0_33 = arith.constant 0 : index
    %c0_34 = arith.constant 0 : index
    %c0_35 = arith.constant 0 : index
    %46 = vector.load %arg2[%c2_32, %c0_33, %c0_34, %c0_35] : memref<3x3x3x64xbf16, #tpu.memory_space<vmem>>, vector<1x1x3x64xbf16>
    %47 = vector.shape_cast %46 : vector<1x1x3x64xbf16> to vector<3x64xbf16>
    %cst_36 = arith.constant dense<0.000000e+00> : vector<256x64xf32>
    %48 = tpu.matmul %45, %47, %cst_36 {dimension_numbers = #tpu.dot_dimension_numbers<[1], [0], [0], [1], [0, 0, 1, 1], [], []>} : vector<256x3xbf16>, vector<3x64xbf16>, vector<256x64xf32> -> vector<256x64xf32>
    %49 = arith.addf %43, %48 : vector<256x64xf32>
    %50 = vector.extract_strided_slice %3 {offsets = [2, 0, 0], sizes = [16, 16, 3], strides = [1, 1, 1]} : vector<18x16x3xbf16> to vector<16x16x3xbf16>
    %51 = vector.shape_cast %50 : vector<16x16x3xbf16> to vector<256x3xbf16>
    %c2_37 = arith.constant 2 : index
    %c1_38 = arith.constant 1 : index
    %c0_39 = arith.constant 0 : index
    %c0_40 = arith.constant 0 : index
    %52 = vector.load %arg2[%c2_37, %c1_38, %c0_39, %c0_40] : memref<3x3x3x64xbf16, #tpu.memory_space<vmem>>, vector<1x1x3x64xbf16>
    %53 = vector.shape_cast %52 : vector<1x1x3x64xbf16> to vector<3x64xbf16>
    %cst_41 = arith.constant dense<0.000000e+00> : vector<256x64xf32>
    %54 = tpu.matmul %51, %53, %cst_41 {dimension_numbers = #tpu.dot_dimension_numbers<[1], [0], [0], [1], [0, 0, 1, 1], [], []>} : vector<256x3xbf16>, vector<3x64xbf16>, vector<256x64xf32> -> vector<256x64xf32>
    %55 = arith.addf %49, %54 : vector<256x64xf32>
    %56 = vector.extract_strided_slice %8 {offsets = [2, 0, 0], sizes = [16, 16, 3], strides = [1, 1, 1]} : vector<18x16x3xbf16> to vector<16x16x3xbf16>
    %57 = vector.shape_cast %56 : vector<16x16x3xbf16> to vector<256x3xbf16>
    %c2_42 = arith.constant 2 : index
    %c2_43 = arith.constant 2 : index
    %c0_44 = arith.constant 0 : index
    %c0_45 = arith.constant 0 : index
    %58 = vector.load %arg2[%c2_42, %c2_43, %c0_44, %c0_45] : memref<3x3x3x64xbf16, #tpu.memory_space<vmem>>, vector<1x1x3x64xbf16>
    %59 = vector.shape_cast %58 : vector<1x1x3x64xbf16> to vector<3x64xbf16>
    %cst_46 = arith.constant dense<0.000000e+00> : vector<256x64xf32>
    %60 = tpu.matmul %57, %59, %cst_46 {dimension_numbers = #tpu.dot_dimension_numbers<[1], [0], [0], [1], [0, 0, 1, 1], [], []>} : vector<256x3xbf16>, vector<3x64xbf16>, vector<256x64xf32> -> vector<256x64xf32>
    %61 = arith.addf %55, %60 : vector<256x64xf32>
    %c0_47 = arith.constant 0 : index
    %c0_48 = arith.constant 0 : index
    %62 = vector.load %arg3[%c0_47, %c0_48] : memref<1x64xf32, #tpu.memory_space<vmem>>, vector<1x64xf32>
    %63 = vector.shape_cast %62 : vector<1x64xf32> to vector<64xf32>
    %64 = vector.shape_cast %63 : vector<64xf32> to vector<1x64xf32>
    %65 = vector.broadcast %64 : vector<1x64xf32> to vector<256x64xf32>
    %66 = arith.mulf %61, %65 : vector<256x64xf32>
    %c0_49 = arith.constant 0 : index
    %c0_50 = arith.constant 0 : index
    %67 = vector.load %arg4[%c0_49, %c0_50] : memref<1x64xf32, #tpu.memory_space<vmem>>, vector<1x64xf32>
    %68 = vector.shape_cast %67 : vector<1x64xf32> to vector<64xf32>
    %69 = vector.shape_cast %68 : vector<64xf32> to vector<1x64xf32>
    %70 = vector.broadcast %69 : vector<1x64xf32> to vector<256x64xf32>
    %71 = arith.addf %66, %70 : vector<256x64xf32>
    %cst_51 = arith.constant 0.000000e+00 : f32
    %72 = vector.broadcast %cst_51 : f32 to vector<256x64xf32>
    %73 = arith.maximumf %71, %72 : vector<256x64xf32>
    %74 = vector.shape_cast %73 : vector<256x64xf32> to vector<16x16x64xf32>
    %75 = arith.truncf %74 : vector<16x16x64xf32> to vector<16x16x64xbf16>
    %cst_52 = arith.constant 0.000000e+00 : bf16
    %76 = vector.broadcast %cst_52 : bf16 to vector<1x16x64xbf16>
    %77 = tpu.concatenate %76, %75, %76 in 0 : vector<1x16x64xbf16>, vector<16x16x64xbf16>, vector<1x16x64xbf16> -> vector<18x16x64xbf16>
    %cst_53 = arith.constant 0.000000e+00 : bf16
    %78 = vector.broadcast %cst_53 : bf16 to vector<18x1x64xbf16>
    %79 = vector.extract_strided_slice %77 {offsets = [0, 0, 0], sizes = [18, 15, 64], strides = [1, 1, 1]} : vector<18x16x64xbf16> to vector<18x15x64xbf16>
    %80 = tpu.concatenate %78, %79 in 1 : vector<18x1x64xbf16>, vector<18x15x64xbf16> -> vector<18x16x64xbf16>
    %81 = vector.extract_strided_slice %77 {offsets = [0, 1, 0], sizes = [18, 15, 64], strides = [1, 1, 1]} : vector<18x16x64xbf16> to vector<18x15x64xbf16>
    %82 = tpu.concatenate %81, %78 in 1 : vector<18x15x64xbf16>, vector<18x1x64xbf16> -> vector<18x16x64xbf16>
    %83 = vector.extract_strided_slice %80 {offsets = [0, 0, 0], sizes = [16, 16, 64], strides = [1, 1, 1]} : vector<18x16x64xbf16> to vector<16x16x64xbf16>
    %84 = vector.shape_cast %83 : vector<16x16x64xbf16> to vector<256x64xbf16>
    %c0_54 = arith.constant 0 : index
    %c0_55 = arith.constant 0 : index
    %c0_56 = arith.constant 0 : index
    %c0_57 = arith.constant 0 : index
    %85 = vector.load %arg5[%c0_54, %c0_55, %c0_56, %c0_57] : memref<3x3x64x64xbf16, #tpu.memory_space<vmem>>, vector<1x1x64x64xbf16>
    %86 = vector.shape_cast %85 : vector<1x1x64x64xbf16> to vector<64x64xbf16>
    %cst_58 = arith.constant dense<0.000000e+00> : vector<256x64xf32>
    %87 = tpu.matmul %84, %86, %cst_58 {dimension_numbers = #tpu.dot_dimension_numbers<[1], [0], [0], [1], [0, 0, 1, 1], [], []>} : vector<256x64xbf16>, vector<64x64xbf16>, vector<256x64xf32> -> vector<256x64xf32>
    %88 = vector.extract_strided_slice %77 {offsets = [0, 0, 0], sizes = [16, 16, 64], strides = [1, 1, 1]} : vector<18x16x64xbf16> to vector<16x16x64xbf16>
    %89 = vector.shape_cast %88 : vector<16x16x64xbf16> to vector<256x64xbf16>
    %c0_59 = arith.constant 0 : index
    %c1_60 = arith.constant 1 : index
    %c0_61 = arith.constant 0 : index
    %c0_62 = arith.constant 0 : index
    %90 = vector.load %arg5[%c0_59, %c1_60, %c0_61, %c0_62] : memref<3x3x64x64xbf16, #tpu.memory_space<vmem>>, vector<1x1x64x64xbf16>
    %91 = vector.shape_cast %90 : vector<1x1x64x64xbf16> to vector<64x64xbf16>
    %cst_63 = arith.constant dense<0.000000e+00> : vector<256x64xf32>
    %92 = tpu.matmul %89, %91, %cst_63 {dimension_numbers = #tpu.dot_dimension_numbers<[1], [0], [0], [1], [0, 0, 1, 1], [], []>} : vector<256x64xbf16>, vector<64x64xbf16>, vector<256x64xf32> -> vector<256x64xf32>
    %93 = arith.addf %87, %92 : vector<256x64xf32>
    %94 = vector.extract_strided_slice %82 {offsets = [0, 0, 0], sizes = [16, 16, 64], strides = [1, 1, 1]} : vector<18x16x64xbf16> to vector<16x16x64xbf16>
    %95 = vector.shape_cast %94 : vector<16x16x64xbf16> to vector<256x64xbf16>
    %c0_64 = arith.constant 0 : index
    %c2_65 = arith.constant 2 : index
    %c0_66 = arith.constant 0 : index
    %c0_67 = arith.constant 0 : index
    %96 = vector.load %arg5[%c0_64, %c2_65, %c0_66, %c0_67] : memref<3x3x64x64xbf16, #tpu.memory_space<vmem>>, vector<1x1x64x64xbf16>
    %97 = vector.shape_cast %96 : vector<1x1x64x64xbf16> to vector<64x64xbf16>
    %cst_68 = arith.constant dense<0.000000e+00> : vector<256x64xf32>
    %98 = tpu.matmul %95, %97, %cst_68 {dimension_numbers = #tpu.dot_dimension_numbers<[1], [0], [0], [1], [0, 0, 1, 1], [], []>} : vector<256x64xbf16>, vector<64x64xbf16>, vector<256x64xf32> -> vector<256x64xf32>
    %99 = arith.addf %93, %98 : vector<256x64xf32>
    %100 = vector.extract_strided_slice %80 {offsets = [1, 0, 0], sizes = [16, 16, 64], strides = [1, 1, 1]} : vector<18x16x64xbf16> to vector<16x16x64xbf16>
    %101 = vector.shape_cast %100 : vector<16x16x64xbf16> to vector<256x64xbf16>
    %c1_69 = arith.constant 1 : index
    %c0_70 = arith.constant 0 : index
    %c0_71 = arith.constant 0 : index
    %c0_72 = arith.constant 0 : index
    %102 = vector.load %arg5[%c1_69, %c0_70, %c0_71, %c0_72] : memref<3x3x64x64xbf16, #tpu.memory_space<vmem>>, vector<1x1x64x64xbf16>
    %103 = vector.shape_cast %102 : vector<1x1x64x64xbf16> to vector<64x64xbf16>
    %cst_73 = arith.constant dense<0.000000e+00> : vector<256x64xf32>
    %104 = tpu.matmul %101, %103, %cst_73 {dimension_numbers = #tpu.dot_dimension_numbers<[1], [0], [0], [1], [0, 0, 1, 1], [], []>} : vector<256x64xbf16>, vector<64x64xbf16>, vector<256x64xf32> -> vector<256x64xf32>
    %105 = arith.addf %99, %104 : vector<256x64xf32>
    %106 = vector.extract_strided_slice %77 {offsets = [1, 0, 0], sizes = [16, 16, 64], strides = [1, 1, 1]} : vector<18x16x64xbf16> to vector<16x16x64xbf16>
    %107 = vector.shape_cast %106 : vector<16x16x64xbf16> to vector<256x64xbf16>
    %c1_74 = arith.constant 1 : index
    %c1_75 = arith.constant 1 : index
    %c0_76 = arith.constant 0 : index
    %c0_77 = arith.constant 0 : index
    %108 = vector.load %arg5[%c1_74, %c1_75, %c0_76, %c0_77] : memref<3x3x64x64xbf16, #tpu.memory_space<vmem>>, vector<1x1x64x64xbf16>
    %109 = vector.shape_cast %108 : vector<1x1x64x64xbf16> to vector<64x64xbf16>
    %cst_78 = arith.constant dense<0.000000e+00> : vector<256x64xf32>
    %110 = tpu.matmul %107, %109, %cst_78 {dimension_numbers = #tpu.dot_dimension_numbers<[1], [0], [0], [1], [0, 0, 1, 1], [], []>} : vector<256x64xbf16>, vector<64x64xbf16>, vector<256x64xf32> -> vector<256x64xf32>
    %111 = arith.addf %105, %110 : vector<256x64xf32>
    %112 = vector.extract_strided_slice %82 {offsets = [1, 0, 0], sizes = [16, 16, 64], strides = [1, 1, 1]} : vector<18x16x64xbf16> to vector<16x16x64xbf16>
    %113 = vector.shape_cast %112 : vector<16x16x64xbf16> to vector<256x64xbf16>
    %c1_79 = arith.constant 1 : index
    %c2_80 = arith.constant 2 : index
    %c0_81 = arith.constant 0 : index
    %c0_82 = arith.constant 0 : index
    %114 = vector.load %arg5[%c1_79, %c2_80, %c0_81, %c0_82] : memref<3x3x64x64xbf16, #tpu.memory_space<vmem>>, vector<1x1x64x64xbf16>
    %115 = vector.shape_cast %114 : vector<1x1x64x64xbf16> to vector<64x64xbf16>
    %cst_83 = arith.constant dense<0.000000e+00> : vector<256x64xf32>
    %116 = tpu.matmul %113, %115, %cst_83 {dimension_numbers = #tpu.dot_dimension_numbers<[1], [0], [0], [1], [0, 0, 1, 1], [], []>} : vector<256x64xbf16>, vector<64x64xbf16>, vector<256x64xf32> -> vector<256x64xf32>
    %117 = arith.addf %111, %116 : vector<256x64xf32>
    %118 = vector.extract_strided_slice %80 {offsets = [2, 0, 0], sizes = [16, 16, 64], strides = [1, 1, 1]} : vector<18x16x64xbf16> to vector<16x16x64xbf16>
    %119 = vector.shape_cast %118 : vector<16x16x64xbf16> to vector<256x64xbf16>
    %c2_84 = arith.constant 2 : index
    %c0_85 = arith.constant 0 : index
    %c0_86 = arith.constant 0 : index
    %c0_87 = arith.constant 0 : index
    %120 = vector.load %arg5[%c2_84, %c0_85, %c0_86, %c0_87] : memref<3x3x64x64xbf16, #tpu.memory_space<vmem>>, vector<1x1x64x64xbf16>
    %121 = vector.shape_cast %120 : vector<1x1x64x64xbf16> to vector<64x64xbf16>
    %cst_88 = arith.constant dense<0.000000e+00> : vector<256x64xf32>
    %122 = tpu.matmul %119, %121, %cst_88 {dimension_numbers = #tpu.dot_dimension_numbers<[1], [0], [0], [1], [0, 0, 1, 1], [], []>} : vector<256x64xbf16>, vector<64x64xbf16>, vector<256x64xf32> -> vector<256x64xf32>
    %123 = arith.addf %117, %122 : vector<256x64xf32>
    %124 = vector.extract_strided_slice %77 {offsets = [2, 0, 0], sizes = [16, 16, 64], strides = [1, 1, 1]} : vector<18x16x64xbf16> to vector<16x16x64xbf16>
    %125 = vector.shape_cast %124 : vector<16x16x64xbf16> to vector<256x64xbf16>
    %c2_89 = arith.constant 2 : index
    %c1_90 = arith.constant 1 : index
    %c0_91 = arith.constant 0 : index
    %c0_92 = arith.constant 0 : index
    %126 = vector.load %arg5[%c2_89, %c1_90, %c0_91, %c0_92] : memref<3x3x64x64xbf16, #tpu.memory_space<vmem>>, vector<1x1x64x64xbf16>
    %127 = vector.shape_cast %126 : vector<1x1x64x64xbf16> to vector<64x64xbf16>
    %cst_93 = arith.constant dense<0.000000e+00> : vector<256x64xf32>
    %128 = tpu.matmul %125, %127, %cst_93 {dimension_numbers = #tpu.dot_dimension_numbers<[1], [0], [0], [1], [0, 0, 1, 1], [], []>} : vector<256x64xbf16>, vector<64x64xbf16>, vector<256x64xf32> -> vector<256x64xf32>
    %129 = arith.addf %123, %128 : vector<256x64xf32>
    %130 = vector.extract_strided_slice %82 {offsets = [2, 0, 0], sizes = [16, 16, 64], strides = [1, 1, 1]} : vector<18x16x64xbf16> to vector<16x16x64xbf16>
    %131 = vector.shape_cast %130 : vector<16x16x64xbf16> to vector<256x64xbf16>
    %c2_94 = arith.constant 2 : index
    %c2_95 = arith.constant 2 : index
    %c0_96 = arith.constant 0 : index
    %c0_97 = arith.constant 0 : index
    %132 = vector.load %arg5[%c2_94, %c2_95, %c0_96, %c0_97] : memref<3x3x64x64xbf16, #tpu.memory_space<vmem>>, vector<1x1x64x64xbf16>
    %133 = vector.shape_cast %132 : vector<1x1x64x64xbf16> to vector<64x64xbf16>
    %cst_98 = arith.constant dense<0.000000e+00> : vector<256x64xf32>
    %134 = tpu.matmul %131, %133, %cst_98 {dimension_numbers = #tpu.dot_dimension_numbers<[1], [0], [0], [1], [0, 0, 1, 1], [], []>} : vector<256x64xbf16>, vector<64x64xbf16>, vector<256x64xf32> -> vector<256x64xf32>
    %135 = arith.addf %129, %134 : vector<256x64xf32>
    %c0_99 = arith.constant 0 : index
    %c0_100 = arith.constant 0 : index
    %136 = vector.load %arg6[%c0_99, %c0_100] : memref<1x64xf32, #tpu.memory_space<vmem>>, vector<1x64xf32>
    %137 = vector.shape_cast %136 : vector<1x64xf32> to vector<64xf32>
    %138 = vector.shape_cast %137 : vector<64xf32> to vector<1x64xf32>
    %139 = vector.broadcast %138 : vector<1x64xf32> to vector<256x64xf32>
    %140 = arith.mulf %135, %139 : vector<256x64xf32>
    %c0_101 = arith.constant 0 : index
    %c0_102 = arith.constant 0 : index
    %141 = vector.load %arg7[%c0_101, %c0_102] : memref<1x64xf32, #tpu.memory_space<vmem>>, vector<1x64xf32>
    %142 = vector.shape_cast %141 : vector<1x64xf32> to vector<64xf32>
    %143 = vector.shape_cast %142 : vector<64xf32> to vector<1x64xf32>
    %144 = vector.broadcast %143 : vector<1x64xf32> to vector<256x64xf32>
    %145 = arith.addf %140, %144 : vector<256x64xf32>
    %cst_103 = arith.constant 0.000000e+00 : f32
    %146 = vector.broadcast %cst_103 : f32 to vector<256x64xf32>
    %147 = arith.maximumf %145, %146 : vector<256x64xf32>
    %148 = vector.shape_cast %147 : vector<256x64xf32> to vector<16x16x64xf32>
    %149 = vector.shape_cast %148 : vector<16x16x64xf32> to vector<8x2x16x64xf32>
    %cst_104 = arith.constant dense<0xFF800000> : vector<8x16x64xf32>
    %150 = vector.multi_reduction <maximumf>, %149, %cst_104 [1] : vector<8x2x16x64xf32> to vector<8x16x64xf32>
    %151 = vector.shape_cast %150 : vector<8x16x64xf32> to vector<8x8x2x64xf32>
    %cst_105 = arith.constant dense<0xFF800000> : vector<8x8x64xf32>
    %152 = vector.multi_reduction <maximumf>, %151, %cst_105 [2] : vector<8x8x2x64xf32> to vector<8x8x64xf32>
    %153 = arith.truncf %152 : vector<8x8x64xf32> to vector<8x8x64xbf16>
    %c0_106 = arith.constant 0 : index
    %c0_107 = arith.constant 0 : index
    %c0_108 = arith.constant 0 : index
    %c0_109 = arith.constant 0 : index
    %154 = vector.load %arg8[%c0_106, %c0_107, %c0_108, %c0_109] : memref<1x8x8x64xbf16, #tpu.memory_space<vmem>>, vector<1x8x8x64xbf16>
    %155 = vector.shape_cast %154 : vector<1x8x8x64xbf16> to vector<8x8x64xbf16>
    %156 = vector.shape_cast %153 : vector<8x8x64xbf16> to vector<1x8x8x64xbf16>
    tpu.vector_store %arg8[%c0_106, %c0_107, %c0_108, %c0_109], %156 {strides = array<i32>} : memref<1x8x8x64xbf16, #tpu.memory_space<vmem>>, vector<1x8x8x64xbf16>,
    return
  }
  func.func @transform_0(%arg0: i32) -> (i32, i32, i32, i32) {
    %c0_i32 = arith.constant 0 : i32
    %c0_i32_0 = arith.constant 0 : i32
    %c0_i32_1 = arith.constant 0 : i32
    %c0_i32_2 = arith.constant 0 : i32
    return %arg0, %c0_i32, %c0_i32_0, %c0_i32_1 : i32, i32, i32, i32
  }
  func.func @transform_1(%arg0: i32) -> (i32, i32, i32, i32) {
    %c0_i32 = arith.constant 0 : i32
    %c0_i32_0 = arith.constant 0 : i32
    %c0_i32_1 = arith.constant 0 : i32
    %c0_i32_2 = arith.constant 0 : i32
    %c0_i32_3 = arith.constant 0 : i32
    return %c0_i32, %c0_i32_0, %c0_i32_1, %c0_i32_2 : i32, i32, i32, i32
  }
  func.func @transform_2(%arg0: i32) -> (i32, i32) {
    %c0_i32 = arith.constant 0 : i32
    %c0_i32_0 = arith.constant 0 : i32
    %c0_i32_1 = arith.constant 0 : i32
    return %c0_i32, %c0_i32_0 : i32, i32
  }
  func.func @transform_3(%arg0: i32) -> (i32, i32) {
    %c0_i32 = arith.constant 0 : i32
    %c0_i32_0 = arith.constant 0 : i32
    %c0_i32_1 = arith.constant 0 : i32
    return %c0_i32, %c0_i32_0 : i32, i32
  }
  func.func @transform_4(%arg0: i32) -> (i32, i32, i32, i32) {
    %c0_i32 = arith.constant 0 : i32
    %c0_i32_0 = arith.constant 0 : i32
    %c0_i32_1 = arith.constant 0 : i32
    %c0_i32_2 = arith.constant 0 : i32
    %c0_i32_3 = arith.constant 0 : i32
    return %c0_i32, %c0_i32_0, %c0_i32_1, %c0_i32_2 : i32, i32, i32, i32
  }
  func.func @transform_5(%arg0: i32) -> (i32, i32) {
    %c0_i32 = arith.constant 0 : i32
    %c0_i32_0 = arith.constant 0 : i32
    %c0_i32_1 = arith.constant 0 : i32
    return %c0_i32, %c0_i32_0 : i32, i32
  }
  func.func @transform_6(%arg0: i32) -> (i32, i32) {
    %c0_i32 = arith.constant 0 : i32
    %c0_i32_0 = arith.constant 0 : i32
    %c0_i32_1 = arith.constant 0 : i32
    return %c0_i32, %c0_i32_0 : i32, i32
  }
  func.func @transform_7(%arg0: i32) -> (i32, i32, i32, i32) {
    %c0_i32 = arith.constant 0 : i32
    %c0_i32_0 = arith.constant 0 : i32
    %c0_i32_1 = arith.constant 0 : i32
    %c0_i32_2 = arith.constant 0 : i32
    return %arg0, %c0_i32, %c0_i32_0, %c0_i32_1 : i32, i32, i32, i32
  }
}

</mosaic_0001>

<bundles_post_ra>
// kernel: tpu_custom_call.1
= control target key start
LH: loop header
LB: loop body
LE: loop exit
PB: predicated region body
PF: predicated region fallthrough
CT: control target
= control target key end

     0   :  { %12 = vsyncpa [#allocation3], 0  ;;  %s10604_s0 = inlined_call_operand.vmem [shape: bf16[2,16,16,3], index: 0, kind: input, shape index: {}]   ;;  %s10605_s1 = inlined_call_operand.vmem [shape: bf16[3,3,3,64], index: 1, kind: input, shape index: {}]   ;;  %s10606_s2 = inlined_call_operand.vmem [shape: f32[1,64], index: 2, kind: input, shape index: {}]   ;;  %s10607_s3 = inlined_call_operand.vmem [shape: f32[1,64], index: 3, kind: input, shape index: {}]   ;;  %s10608_s4 = inlined_call_operand.vmem [shape: bf16[3,3,64,64], index: 4, kind: input, shape index: {}]   ;;  %s10609_s5 = inlined_call_operand.vmem [shape: f32[1,64], index: 5, kind: input, shape index: {}]   ;;  %s10610_s6 = inlined_call_operand.vmem [shape: f32[1,64], index: 6, kind: input, shape index: {}]   ;;  %s10611_s7 = inlined_call_operand.hbm [shape: bf16[2,8,8,64], index: 7, kind: output, shape index: {}]  }
   0x1   :  { %14 = vsyncpa [#allocation3 + $0x1], 0  ;;  %s8629_s24 = smov 0   ;;  %s8631_s25 = smov 0  }
   0x2   :  { %s8633_s26 = smov 0   ;;  %s8635_s27 = smov 0  }
   0x3 LB: > { %s8650_s28 = sadd.s32 4294967295, %s8581_s27   ;;  %s6356_s29 = sadd.s32 4294967294, %s8581_s27   ;;  %s8581_s27 = sphi %s8635_s27, %s10662_s27   ;;  %s8577_s26 = sphi %s8633_s26, %s10661_s26   ;;  %s8573_s25 = sphi %s8631_s25, %s10660_s25   ;;  %s8569_s24 = sphi %s8629_s24, %s10659_s24  }
   0x4   : > { %s8654_s30 = sadd.s32 1, %s8581_s27   ;;  %s179_s8 = sadd.s32 1, %s8577_s26 }
   0x5   : > { %s176_s9 = ssub.s32 %s8581_s27, %s8654_s30  ;;  %p189_p0 = scmp.ne.s32.totalorder %s8577_s26, %s8573_s25 }
   0x6   : > { %p177_p1 = scmp.eq.s32.totalorder %s176_s9, 0  ;;  %p190_p2 = scmp.eq.s32.totalorder %s8650_s28, 1 }
   0x7   : > { %p195_p3 = scmp.ne.s32.totalorder %s8573_s25, %s8569_s24  ;;  %p196_p4 = scmp.eq.s32.totalorder %s6356_s29, 1 }
   0x8   : > { %s8665_s10 = scalar_select %p177_p1, %s8577_s26, %s179_s8  }
   0x9   : > { %p8667_p5 = por %p190_p2, %p189_p0  ;;  %p8671_p6 = por %p196_p4, %p195_p3 }
   0xa   : > { %p6359_p7 = scmp.ge.s32.totalorder %s8581_s27, 1  ;;  %p240_p8 = scmp.lt.s32.totalorder %s8581_s27, 3 }
   0xc   : > { %p241_p9 = pnand %p6359_p7, %p240_p8 }
   0xd   : > { %vm526_vm0 = vcmask (!%p241_p9), 1040384   ;;  %v6379_v0 = vld [vmem:[%s10605_s1 + $0x2] sm:$0x3] (!%p241_p9)  ;;  %vm654_vm1 = vcmask (!%p241_p9), 1041408   ;;  %p272_p10 = scmp.lt.s32.totalorder (!%p241_p9), %s8650_s28, 1  ;;  %v8583_v2 = vmov (!%p241_p9), 65535  }
   0xe   : > { %244 = sbr.rel (%p241_p9) target bundleno = 1731 (0x6c3), region = 48  ;;  %v617_v1 = vld [vmem:[%s10605_s1] sm:$0x3] (!%p241_p9)  ;;  %v655_v3 = vsel (!%p241_p9), %vm526_vm0, 4294967295, %v8583_v2  ;;  %v10619_v4 = vmov (!%p241_p9), 0   ;;  %vm620_vm2 = vcmask (!%p241_p9), 23552  }
   0xf   : > { %7245 = vmatprep.mubr.bf16.mxu0 (!%p241_p9), %v10619_v4  ;;  %7557 = vmatprep.mubr.bf16.mxu1 (!%p241_p9), %v10619_v4  ;;  %v8687_v5 = vsel (!%p241_p9), %vm654_vm1, %v655_v3, 0  ;;  %v6411_v8 = vld [vmem:[%s10605_s1 + $0x4] sm:$0x3] (!%p241_p9)  ;;  %vm527_vm3 = vsmask.f32 (!%p241_p9), 256  ;;  %v393_v25 = vrot.slane (!%p241_p9), %v10619_v4, 7 }
  0x10   : > { %v658_v6 = vand.u32 (!%p241_p9), %v6379_v0, %v8687_v5  ;;  %v870_v7 = vand.u32 (!%p241_p9), %v8687_v5, %v617_v1  ;;  %v1084_v11 = vand.u32 (!%p241_p9), %v6411_v8, %v8687_v5  ;;  %vm8775_vm4 = vmand (!%p241_p9), %vm526_vm0, %vm527_vm3  ;;  %v6428_v38 = vld [vmem:[%s10605_s1 + $0x6] sm:$0x3] (!%p241_p9)  ;;  %vm597_vm5 = vcmask (!%p241_p9), 1047552   ;;  %v8503_v27 = vld [vmem:[%s10608_s4 + $0xb0] sm:$0xff] (!%p241_p9)   ;;  %s269_s18 = sand.u32 (!%p241_p9), 1, %s8573_s25   ;;  %s6909_s8 = sshll.u32 (!%p241_p9), %s8650_s28, 9 }
  0x11   : > { %v8787_v31 = vsel (!%p241_p9), %vm8775_vm4, 0, %v393_v25  ;;  %v8820_v45 = vand.u32 (!%p241_p9), %v6428_v38, %v8687_v5  ;;  %vm598_vm6 = vsmask.f32 (!%p241_p9), 7424  ;;  %vm2850_vm8 = vcmask (!%p241_p9), 523264   ;;  %s6360_s19 = sshll.u32 (!%p241_p9), %s269_s18, 5  ;;  %s10555_s15 = scalar_lea.hbm (!%p241_p9), %s10611_s7, %s6909_s8 }
  0x12   : > { %7243 = vmatprep.subr.bf16.mxu0 (!%p241_p9), %v658_v6  ;;  %vm8970_vm7 = vmand (!%p241_p9), %vm597_vm5, %vm598_vm6  ;;  %vm5423_vm9 = vcmask (!%p241_p9), 517120   ;;  %vm6192_vm10 = vcmask (!%p241_p9), 1041409   ;;  %vm6194_vm11 = vcmask (!%p241_p9), 1042434   ;;  %vm6196_vm12 = vcmask (!%p241_p9), 1043459  }
  0x13   : > { %7244 = vmatpush3.bf16.msra.mxu0 (!%p241_p9), %v658_v6  ;;  %vm6198_vm13 = vcmask (!%p241_p9), 1044484   ;;  %vm6200_vm14 = vcmask (!%p241_p9), 1045509   ;;  %vm6202_vm15 = vcmask (!%p241_p9), 1046534   ;;  %vm6204_vm0 = vcmask (!%p241_p9), 1047559  }
  0x14   : > { %7277 = vmatprep.subr.bf16.mxu0 (!%p241_p9), %v870_v7  ;;  %vm6271_vm1 = vcmask (!%p241_p9), 519168  }
  0x15   : > { %s273_s17 = scalar_select %p272_p10, %s8650_s28, 1 }
  0x16   : > { %s10563_s28 = scalar_lea.sflag [#allocation3], %s269_s18 }
  0x17   : > { %s6844_s20 = sshll.u32 %s273_s17, 7  ;;  %s8586_s17 = smov [#allocation2]  }
  0x18   : > { %s8698_s23 = scalar_lea.vmem %s10604_s0, %s6844_s20  ;;  %s10269_s20 = scalar_lea.vmem [#allocation2], %s6360_s19 }
  0x19   : > { %v8701_v9 = vld [vmem:[%s8698_s23] sm:$0xff]   ;;  %v8704_v10 = vld [vmem:[%s8698_s23 + $0x8] sm:$0xff]   ;;  %v8712_v12 = vld [vmem:[%s8698_s23 + $0x10] sm:$0xff]   ;;  %s6294_s9 = sshll.u32 %s10269_s20, 4  ;;  %s8523_s19 = sshll.u32 %s8586_s17, 4  ;;  %s10557_s9 = int_to_ptr.vmem [resolvable:$true] %s6294_s9  ;;  %s8524_s19 = int_to_ptr.vmem [resolvable:$false] %s8523_s19 }
  0x1a   : > { %7246 = vmatmul.mubr.msk.bf16.vlgmr.msra.gmra.mrb[0].mxu0 %vm620_vm2, %v8701_v9  ;;  %v8715_v13 = vld [vmem:[%s8698_s23 + $0x18] sm:$0xff]   ;;  %v8722_v14 = vld [vmem:[%s8698_s23 + $0x20] sm:$0xff]   ;;  %v8725_v15 = vld [vmem:[%s8698_s23 + $0x28] sm:$0xff]   ;;  %v398_v24 = vshrl.u32 %v8701_v9, 16  ;;  %v405_v26 = vshrl.u32 %v8704_v10, 16  ;;  %v401_v30 = vshll.u32 %v8701_v9, 16  ;;  %p8526_p0 = scmp.lt.s32.totalorder %s10557_s9, %s8524_s19 }
  0x1b   : > { %7278 = vmatpush3.bf16.msra.mxu0 %v870_v7  ;;  %7249 = vmatprep.mubr.msk.bf16.mxu0 %vm620_vm2, %v8704_v10  ;;  %v8732_v16 = vld [vmem:[%s8698_s23 + $0x30] sm:$0xff]   ;;  %v8735_v17 = vld [vmem:[%s8698_s23 + $0x38] sm:$0xff]   ;;  %v8742_v18 = vld [vmem:[%s8698_s23 + $0x40] sm:$0xff]   ;;  %v408_v33 = vshll.u32 %v8704_v10, 16  ;;  %v412_v35 = vshrl.u32 %v8712_v12, 16  ;;  %v419_v37 = vshrl.u32 %v8715_v13, 16 }
  0x1c   : > { %7311 = vmatprep.subr.bf16.mxu0 %v1084_v11  ;;  %v8745_v19 = vld [vmem:[%s8698_s23 + $0x48] sm:$0xff]   ;;  %v8752_v20 = vld [vmem:[%s8698_s23 + $0x50] sm:$0xff]   ;;  %v8755_v21 = vld [vmem:[%s8698_s23 + $0x58] sm:$0xff]   ;;  %v400_v29 = vrot.slane %v398_v24, 7  ;;  %v407_v32 = vrot.slane %v405_v26, 7  ;;  %v415_v41 = vshll.u32 %v8712_v12, 16 }
  0x1d   : > { %v8762_v22 = vld [vmem:[%s8698_s23 + $0x60] sm:$0xff]   ;;  %v8765_v23 = vld [vmem:[%s8698_s23 + $0x68] sm:$0xff]   ;;  %v8780_v28 = vld [vmem:[%s8698_s23 + $0x70] sm:$0xff]   ;;  %v414_v40 = vrot.slane %v412_v35, 7  ;;  %v421_v43 = vrot.slane %v419_v37, 7  ;;  %v422_v44 = vshll.u32 %v8715_v13, 16 }
  0x1e   : > { %v403_v34 = vor.u32 %v401_v30, %v400_v29  ;;  %v410_v36 = vor.u32 %v408_v33, %v407_v32  ;;  %v426_v47 = vshrl.u32 %v8722_v14, 16  ;;  %v433_v49 = vshrl.u32 %v8725_v15, 16  ;;  %s8519_s16 = scalar_lea.vmem %s10557_s9, 512  ;;  %s8525_s21 = scalar_lea.vmem %s8524_s19, 1024 }
  0x1f   : > { %v417_v46 = vor.u32 %v415_v41, %v414_v40  ;;  %v424_v48 = vor.u32 %v422_v44, %v421_v43  ;;  %v429_v52 = vshll.u32 %v8722_v14, 16  ;;  %v436_v55 = vshll.u32 %v8725_v15, 16  ;;  %p8520_p11 = scmp.ne.s32.totalorder %s10557_s9, %s8519_s16  ;;  %p8527_p1 = scmp.lt.s32.totalorder %s8525_s21, %s8519_s16 }
  0x20   : > { %v8807_v39 = vsel %vm8775_vm4, 0, %v403_v34  ;;  %v8814_v42 = vsel %vm8775_vm4, 0, %v410_v36  ;;  %v428_v51 = vrot.slane %v426_v47, 7  ;;  %v435_v54 = vrot.slane %v433_v49, 7 }
  0x21   : > { %v8835_v50 = vsel %vm8775_vm4, 0, %v417_v46  ;;  %v8842_v53 = vsel %vm8775_vm4, 0, %v424_v48  ;;  %v440_v57 = vshrl.u32 %v8732_v16, 16  ;;  %v447_v59 = vshrl.u32 %v8735_v17, 16  ;;  %p8521_p12 = pnand %p8520_p11, %p8667_p5  ;;  %p8528_p2 = por %p8527_p1, %p8526_p0 }
  0x22   : > { %7250 = vmatmul.mubr.msk.bf16.gmra.mrb[4].mxu0 %vm620_vm2, %v8712_v12  ;;  %v431_v56 = vor.u32 %v429_v52, %v428_v51  ;;  %v438_v58 = vor.u32 %v436_v55, %v435_v54  ;;  %v443_v62 = vshll.u32 %v8732_v16, 16  ;;  %v450_v1 = vshll.u32 %v8735_v17, 16 }
  0x23   : > { %7253 = vmatprep.mubr.msk.bf16.mxu0 %vm620_vm2, %v8715_v13  ;;  %v442_v61 = vrot.slane %v440_v57, 7  ;;  %v449_v0 = vrot.slane %v447_v59, 7  ;;  %v454_v3 = vshrl.u32 %v8742_v18, 16  ;;  %v461_v7 = vshrl.u32 %v8745_v19, 16  ;;  %p8522_p13 = pneg %p8521_p12 }
  0x24   : > { %v8859_v60 = vsel %vm8775_vm4, 0, %v431_v56  ;;  %v8866_v63 = vsel %vm8775_vm4, 0, %v438_v58  ;;  %v457_v25 = vshll.u32 %v8742_v18, 16  ;;  %v464_v34 = vshll.u32 %v8745_v19, 16 }
  0x25   : > { %v445_v2 = vor.u32 %v443_v62, %v442_v61  ;;  %v452_v6 = vor.u32 %v450_v1, %v449_v0  ;;  %v463_v32 = vrot.slane %v461_v7, 7  ;;  %v10615_v38 = vshrl.u32 %v8752_v20, 16  ;;  %p8529_p3 = pnand %p8528_p2, %p8522_p13 }
  0x26   : > { %v10613_v43 = vshrl.u32 %v8755_v21, 16  ;;  %v471_v51 = vshll.u32 %v8752_v20, 16  ;;  %v10616_v58 = vshll.u32 %v8755_v21, 16  ;;  %v10612_v0 = vshrl.u32 %v8762_v22, 16 }
  0x27   : > { %v8883_v8 = vsel %vm8775_vm4, 0, %v445_v2  ;;  %v8890_v29 = vsel %vm8775_vm4, 0, %v452_v6  ;;  %v466_v40 = vor.u32 %v464_v34, %v463_v32  ;;  %v470_v48 = vrot.slane %v10615_v38, 7 }
  0x28   : > { %v477_v56 = vrot.slane %v10613_v43, 7  ;;  %v10614_v6 = vshrl.u32 %v8765_v23, 16  ;;  %v484_v32 = vrot.slane %v10612_v0, 7  ;;  %v10617_v0 = vshrl.u32 %v8780_v28, 16 }
  0x29   : > { %v8914_v54 = vsel %vm8775_vm4, 0, %v466_v40  ;;  %v473_v61 = vor.u32 %v471_v51, %v470_v48  ;;  %v10621_v38 = vshll.u32 %v8780_v28, 16 }
  0x2a   : > { %7254 = vmatmul.mubr.msk.bf16.gmra.mrb[8].mxu0 %vm620_vm2, %v8722_v14  ;;  %v480_v2 = vor.u32 %v10616_v58, %v477_v56  ;;  %v491_v48 = vrot.slane %v10614_v6, 7  ;;  %v10618_v56 = vshll.u32 %v8765_v23, 16  ;;  %v498_v6 = vrot.slane %v10617_v0, 7 }
  0x2b   : > { %7257 = vmatprep.mubr.msk.bf16.mxu0 %vm620_vm2, %v8725_v15  ;;  %v548_v0 = vrot.slane %v401_v30, 1  ;;  %v6445_v30 = vld [vmem:[%s10605_s1 + $0x8] sm:$0x3] }
  0x2c   : > { %v8938_v40 = vsel %vm8775_vm4, 0, %v480_v2  ;;  %v494_v2 = vor.u32 %v10618_v56, %v491_v48  ;;  %v546_v48 = vrot.slane %v10619_v4, 1 }
  0x2e   : > { %v8961_v58 = vsel %vm8775_vm4, 0, %v494_v2  ;;  %v8982_v56 = vsel %vm8970_vm7, %v546_v48, 0 }
  0x32   : > { %7258 = vmatmul.mubr.msk.bf16.gmra.mrb[12].mxu0 %vm620_vm2, %v8732_v16 }
  0x33   : > { %7261 = vmatprep.mubr.msk.bf16.mxu0 %vm620_vm2, %v8735_v17 }
  0x3a   : > { %7262 = vmatmul.mubr.msk.bf16.gmra.mrb[16].mxu0 %vm620_vm2, %v8742_v18 }
  0x3b   : > { %7265 = vmatprep.mubr.msk.bf16.mxu0 %vm620_vm2, %v8745_v19 }
  0x42   : > { %7266 = vmatmul.mubr.msk.bf16.gmra.mrb[20].mxu0 %vm620_vm2, %v8752_v20 }
  0x43   : > { %7269 = vmatprep.mubr.msk.bf16.mxu0 %vm620_vm2, %v8755_v21 }
  0x4a   : > { %7270 = vmatmul.mubr.msk.bf16.gmra.mrb[24].mxu0 %vm620_vm2, %v8762_v22 }
  0x4b   : > { %7273 = vmatprep.mubr.msk.bf16.mxu0 %vm620_vm2, %v8765_v23 }
  0x52   : > { %7274 = vmatmul.mubr.msk.bf16.gmra.mrb[28].mxu0 %vm620_vm2, %v8780_v28 }
  0x53   : > { %7279 = vmatprep.mubr.msk.bf16.mxu0 %vm620_vm2, %v8787_v31 }
  0x5a   : > { %7280 = vmatmul.mubr.msk.bf16.vlgmr.msra.gmra.mrb[0].mxu0 %vm620_vm2, %v8807_v39 }
  0x5b   : > { %7312 = vmatpush3.bf16.msra.mxu0 %v1084_v11  ;;  %7283 = vmatprep.mubr.msk.bf16.mxu0 %vm620_vm2, %v8814_v42  ;;  %v456_v11 = vrot.slane %v454_v3, 7 }
  0x5c   : > { %7345 = vmatprep.subr.bf16.mxu0 %v8820_v45 }
  0x5d   : > { %v459_v36 = vor.u32 %v457_v25, %v456_v11  ;;  %v8931_v11 = vsel %vm8775_vm4, 0, %v473_v61 }
  0x5f   : > { %v8907_v46 = vsel %vm8775_vm4, 0, %v459_v36  ;;  %v485_v36 = vshll.u32 %v8762_v22, 16 }
  0x61   : > { %v487_v61 = vor.u32 %v485_v36, %v484_v32  ;;  %v501_v32 = vor.u32 %v10621_v38, %v498_v6  ;;  %v550_v6 = vrot.slane %v408_v33, 1  ;;  %v552_v33 = vrot.slane %v415_v41, 1 }
  0x62   : > { %7284 = vmatmul.mubr.msk.bf16.gmra.mrb[4].mxu0 %vm620_vm2, %v8835_v50 }
  0x63   : > { %7287 = vmatprep.mubr.msk.bf16.mxu0 %vm620_vm2, %v8842_v53  ;;  %v8954_v43 = vsel %vm8775_vm4, 0, %v487_v61  ;;  %v8976_v2 = vsel %vm8775_vm4, 0, %v501_v32  ;;  %v549_v32 = vor.u32 %v548_v0, %v398_v24  ;;  %v551_v4 = vor.u32 %v550_v6, %v405_v26  ;;  %v8511_v61 = vld [vmem:[%s10608_s4 + $0xf0] sm:$0xff]  }
  0x64   : > { %v554_v24 = vrot.slane %v422_v44, 1  ;;  %v1485_v26 = vand.u32 %v6445_v30, %v8687_v5  ;;  %v553_v41 = vor.u32 %v552_v33, %v412_v35  ;;  %v556_v0 = vrot.slane %v429_v52, 1 }
  0x65   : > { %v8999_v48 = vsel %vm8970_vm7, %v549_v32, 0  ;;  %v9005_v38 = vsel %vm8970_vm7, %v551_v4, 0  ;;  %v558_v6 = vrot.slane %v436_v55, 1  ;;  %v560_v32 = vrot.slane %v443_v62, 1 }
  0x66   : > { %v555_v4 = vor.u32 %v554_v24, %v419_v37  ;;  %v9021_v44 = vsel %vm8970_vm7, %v553_v41, 0  ;;  %v557_v35 = vor.u32 %v556_v0, %v426_v47  ;;  %v562_v30 = vrot.slane %v450_v1, 1 }
  0x67   : > { %v559_v37 = vor.u32 %v558_v6, %v433_v49  ;;  %v561_v47 = vor.u32 %v560_v32, %v440_v57  ;;  %v564_v33 = vrot.slane %v457_v25, 1  ;;  %v566_v24 = vrot.slane %v464_v34, 1 }
  0x68   : > { %v9041_v52 = vsel %vm8970_vm7, %v557_v35, 0  ;;  %v563_v49 = vor.u32 %v562_v30, %v447_v59  ;;  %v568_v41 = vrot.slane %v471_v51, 1  ;;  %v10641_v6 = vshrl.u32 %v8755_v21, 16 }
  0x69   : > { %v9047_v55 = vsel %vm8970_vm7, %v559_v37, 0  ;;  %v9061_v62 = vsel %vm8970_vm7, %v561_v47, 0  ;;  %v565_v57 = vor.u32 %v564_v33, %v454_v3  ;;  %v567_v59 = vor.u32 %v566_v24, %v461_v7 }
  0x6a   : > { %7288 = vmatmul.mubr.msk.bf16.gmra.mrb[8].mxu0 %vm620_vm2, %v8859_v60  ;;  %v9067_v1 = vsel %vm8970_vm7, %v563_v49, 0  ;;  %v10640_v3 = vshrl.u32 %v8752_v20, 16  ;;  %v572_v37 = vrot.slane %v485_v36, 1  ;;  %v10642_v30 = vshll.u32 %v8765_v23, 16 }
  0x6b   : > { %7291 = vmatprep.mubr.msk.bf16.mxu0 %vm620_vm2, %v8866_v63  ;;  %v9081_v25 = vsel %vm8970_vm7, %v565_v57, 0  ;;  %v9087_v34 = vsel %vm8970_vm7, %v567_v59, 0  ;;  %v10643_v49 = vshrl.u32 %v8762_v22, 16  ;;  %v10644_v24 = vshrl.u32 %v8765_v23, 16 }
  0x6c   : > { %v569_v7 = vor.u32 %v568_v41, %v10640_v3  ;;  %v574_v47 = vrot.slane %v10642_v30, 1  ;;  %v10645_v59 = vshll.u32 %v8780_v28, 16 }
  0x6d   : > { %v573_v33 = vor.u32 %v572_v37, %v10643_v49 }
  0x6e   : > { %v9101_v51 = vsel %vm8970_vm7, %v569_v7, 0  ;;  %v575_v57 = vor.u32 %v574_v47, %v10644_v24  ;;  %v576_v41 = vrot.slane %v10645_v59, 1 }
  0x6f   : > { %v9121_v36 = vsel %vm8970_vm7, %v573_v33, 0  ;;  %v6479_v33 = vld [vmem:[%s10605_s1 + $0xc] sm:$0x3] }
  0x70   : > { %v1884_v24 = vand.u32 %v6479_v33, %v8687_v5  ;;  %v8488_v33 = vld [vmem:[%s10608_s4 + $0x18] sm:$0xff]  }
  0x72   : > { %7292 = vmatmul.mubr.msk.bf16.gmra.mrb[12].mxu0 %vm620_vm2, %v8883_v8 }
  0x73   : > { %7295 = vmatprep.mubr.msk.bf16.mxu0 %vm620_vm2, %v8890_v29 }
  0x7a   : > { %7296 = vmatmul.mubr.msk.bf16.gmra.mrb[16].mxu0 %vm620_vm2, %v8907_v46 }
  0x7b   : > { %7299 = vmatprep.mubr.msk.bf16.mxu0 %vm620_vm2, %v8914_v54 }
  0x82   : > { %7300 = vmatmul.mubr.msk.bf16.gmra.mrb[20].mxu0 %vm620_vm2, %v8931_v11 }
  0x83   : > { %7303 = vmatprep.mubr.msk.bf16.mxu0 %vm620_vm2, %v8938_v40 }
  0x8a   : > { %7304 = vmatmul.mubr.msk.bf16.gmra.mrb[24].mxu0 %vm620_vm2, %v8954_v43 }
  0x8b   : > { %7307 = vmatprep.mubr.msk.bf16.mxu0 %vm620_vm2, %v8961_v58 }
  0x92   : > { %7308 = vmatmul.mubr.msk.bf16.gmra.mrb[28].mxu0 %vm620_vm2, %v8976_v2 }
  0x93   : > { %7313 = vmatprep.mubr.msk.bf16.mxu0 %vm620_vm2, %v8982_v56 }
  0x9a   : > { %7314 = vmatmul.mubr.msk.bf16.vlgmr.msra.gmra.mrb[0].mxu0 %vm620_vm2, %v8999_v48 }
  0x9b   : > { %7346 = vmatpush3.bf16.msra.mxu0 %v8820_v45  ;;  %7317 = vmatprep.mubr.msk.bf16.mxu0 %vm620_vm2, %v9005_v38  ;;  %v9027_v45 = vsel %vm8970_vm7, %v555_v4, 0  ;;  %v10639_v4 = vshll.u32 %v8755_v21, 16 }
  0x9c   : > { %7379 = vmatprep.subr.bf16.mxu0 %v1485_v26 }
  0x9d   : > { %v570_v0 = vrot.slane %v10639_v4, 1  ;;  %v9127_v4 = vsel %vm8970_vm7, %v575_v57, 0 }
  0x9f   : > { %v571_v35 = vor.u32 %v570_v0, %v10641_v6  ;;  %v10646_v0 = vshrl.u32 %v8780_v28, 16  ;;  %v6462_v6 = vld [vmem:[%s10605_s1 + $0xa] sm:$0x3] }
  0xa1   : > { %v9107_v32 = vsel %vm8970_vm7, %v571_v35, 0  ;;  %v577_v3 = vor.u32 %v576_v41, %v10646_v0  ;;  %v1686_v35 = vand.u32 %v6462_v6, %v8687_v5  ;;  %v6512_v0 = vld [vmem:[%s10605_s1 + $0x10] sm:$0x3] }
  0xa2   : > { %7318 = vmatmul.mubr.msk.bf16.gmra.mrb[4].mxu0 %vm620_vm2, %v9021_v44 }
  0xa3   : > { %7321 = vmatprep.mubr.msk.bf16.mxu0 %vm620_vm2, %v9027_v45  ;;  %v9137_v7 = vsel %vm8970_vm7, %v577_v3, 0  ;;  %v2280_v3 = vand.u32 %v6512_v0, %v8687_v5 }
  0xaa   : > { %7322 = vmatmul.mubr.msk.bf16.gmra.mrb[8].mxu0 %vm620_vm2, %v9041_v52 }
  0xab   : > { %7325 = vmatprep.mubr.msk.bf16.mxu0 %vm620_vm2, %v9047_v55 }
  0xb2   : > { %7326 = vmatmul.mubr.msk.bf16.gmra.mrb[12].mxu0 %vm620_vm2, %v9061_v62 }
  0xb3   : > { %7329 = vmatprep.mubr.msk.bf16.mxu0 %vm620_vm2, %v9067_v1 }
  0xba   : > { %7330 = vmatmul.mubr.msk.bf16.gmra.mrb[16].mxu0 %vm620_vm2, %v9081_v25 }
  0xbb   : > { %7333 = vmatprep.mubr.msk.bf16.mxu0 %vm620_vm2, %v9087_v34 }
  0xc2   : > { %7334 = vmatmul.mubr.msk.bf16.gmra.mrb[20].mxu0 %vm620_vm2, %v9101_v51 }
  0xc3   : > { %7337 = vmatprep.mubr.msk.bf16.mxu0 %vm620_vm2, %v9107_v32 }
  0xca   : > { %7338 = vmatmul.mubr.msk.bf16.gmra.mrb[24].mxu0 %vm620_vm2, %v9121_v36 }
  0xcb   : > { %7341 = vmatprep.mubr.msk.bf16.mxu0 %vm620_vm2, %v9127_v4 }
  0xd2   : > { %7342 = vmatmul.mubr.msk.bf16.gmra.mrb[28].mxu0 %vm620_vm2, %v9137_v7 }
  0xd3   : > { %7347 = vmatprep.mubr.msk.bf16.mxu0 %vm620_vm2, %v8807_v39  ;;  %v9168_v39 = vld [vmem:[%s8698_s23 + $0x78] sm:$0xff]  }
  0xd4   : > { %v506_v30 = vshll.u32 %v9168_v39, 16 }
  0xda   : > { %7348 = vmatmul.mubr.msk.bf16.vlgmr.msra.gmra.mrb[0].mxu0 %vm620_vm2, %v8814_v42 }
  0xdb   : > { %7380 = vmatpush3.bf16.msra.mxu0 %v1485_v26  ;;  %7351 = vmatprep.mubr.msk.bf16.mxu0 %vm620_vm2, %v8835_v50  ;;  %v503_v26 = vshrl.u32 %v9168_v39, 16 }
  0xdc   : > { %7413 = vmatprep.subr.bf16.mxu0 %v1686_v35 }
  0xdd   : > { %v505_v37 = vrot.slane %v503_v26, 7 }
  0xdf   : > { %v508_v47 = vor.u32 %v506_v30, %v505_v37 }
  0xe1   : > { %v9182_v49 = vsel %vm8775_vm4, 0, %v508_v47 }
  0xe2   : > { %7352 = vmatmul.mubr.msk.bf16.gmra.mrb[4].mxu0 %vm620_vm2, %v8842_v53 }
  0xe3   : > { %7355 = vmatprep.mubr.msk.bf16.mxu0 %vm620_vm2, %v8859_v60 }
  0xea   : > { %7356 = vmatmul.mubr.msk.bf16.gmra.mrb[8].mxu0 %vm620_vm2, %v8866_v63 }
  0xeb   : > { %7359 = vmatprep.mubr.msk.bf16.mxu0 %vm620_vm2, %v8883_v8 }
  0xf2   : > { %7360 = vmatmul.mubr.msk.bf16.gmra.mrb[12].mxu0 %vm620_vm2, %v8890_v29 }
  0xf3   : > { %7363 = vmatprep.mubr.msk.bf16.mxu0 %vm620_vm2, %v8907_v46 }
  0xfa   : > { %7364 = vmatmul.mubr.msk.bf16.gmra.mrb[16].mxu0 %vm620_vm2, %v8914_v54 }
  0xfb   : > { %7367 = vmatprep.mubr.msk.bf16.mxu0 %vm620_vm2, %v8931_v11 }
 0x102   : > { %7368 = vmatmul.mubr.msk.bf16.gmra.mrb[20].mxu0 %vm620_vm2, %v8938_v40 }
 0x103   : > { %7371 = vmatprep.mubr.msk.bf16.mxu0 %vm620_vm2, %v8954_v43 }
 0x10a   : > { %7372 = vmatmul.mubr.msk.bf16.gmra.mrb[24].mxu0 %vm620_vm2, %v8961_v58 }
 0x10b   : > { %7375 = vmatprep.mubr.msk.bf16.mxu0 %vm620_vm2, %v8976_v2 }
 0x112   : > { %7376 = vmatmul.mubr.msk.bf16.gmra.mrb[28].mxu0 %vm620_vm2, %v9182_v49 }
 0x113   : > { %7381 = vmatprep.mubr.msk.bf16.mxu0 %vm620_vm2, %v8701_v9  ;;  %v6496_v9 = vld [vmem:[%s10605_s1 + $0xe] sm:$0x3] }
 0x114   : > { %v2082_v57 = vand.u32 %v6496_v9, %v8687_v5  ;;  %v8481_v5 = vld [vmem:[%s10608_s4 + $0x20] sm:$0xff]  }
 0x115   : > { %7549 = vmatprep.subr.bf16.mxu1 %v8481_v5 }
 0x116   : > { %7550 = vmatpush3.bf16.msra.mxu1 %v8481_v5 }
 0x11a   : > { %7382 = vmatmul.mubr.msk.bf16.vlgmr.msra.gmra.mrb[0].mxu0 %vm620_vm2, %v8704_v10 }
 0x11b   : > { %7414 = vmatpush3.bf16.msra.mxu0 %v1686_v35  ;;  %7385 = vmatprep.mubr.msk.bf16.mxu0 %vm620_vm2, %v8712_v12 }
 0x11c   : > { %7447 = vmatprep.subr.bf16.mxu0 %v1884_v24 }
 0x122   : > { %7386 = vmatmul.mubr.msk.bf16.gmra.mrb[4].mxu0 %vm620_vm2, %v8715_v13 }
 0x123   : > { %7389 = vmatprep.mubr.msk.bf16.mxu0 %vm620_vm2, %v8722_v14 }
 0x12a   : > { %7390 = vmatmul.mubr.msk.bf16.gmra.mrb[8].mxu0 %vm620_vm2, %v8725_v15 }
 0x12b   : > { %7393 = vmatprep.mubr.msk.bf16.mxu0 %vm620_vm2, %v8732_v16 }
 0x132   : > { %7394 = vmatmul.mubr.msk.bf16.gmra.mrb[12].mxu0 %vm620_vm2, %v8735_v17 }
 0x133   : > { %7397 = vmatprep.mubr.msk.bf16.mxu0 %vm620_vm2, %v8742_v18 }
 0x13a   : > { %7398 = vmatmul.mubr.msk.bf16.gmra.mrb[16].mxu0 %vm620_vm2, %v8745_v19 }
 0x13b   : > { %7401 = vmatprep.mubr.msk.bf16.mxu0 %vm620_vm2, %v8752_v20 }
 0x142   : > { %7402 = vmatmul.mubr.msk.bf16.gmra.mrb[20].mxu0 %vm620_vm2, %v8755_v21 }
 0x143   : > { %7405 = vmatprep.mubr.msk.bf16.mxu0 %vm620_vm2, %v8762_v22 }
 0x14a   : > { %7406 = vmatmul.mubr.msk.bf16.gmra.mrb[24].mxu0 %vm620_vm2, %v8765_v23 }
 0x14b   : > { %7409 = vmatprep.mubr.msk.bf16.mxu0 %vm620_vm2, %v8780_v28 }
 0x152   : > { %7410 = vmatmul.mubr.msk.bf16.gmra.mrb[28].mxu0 %vm620_vm2, %v9168_v39 }
 0x153   : > { %7415 = vmatprep.mubr.msk.bf16.mxu0 %vm620_vm2, %v8999_v48  ;;  %v578_v48 = vrot.slane %v506_v30, 1 }
 0x155   : > { %v579_v59 = vor.u32 %v578_v48, %v503_v26 }
 0x157   : > { %v616_v41 = vsel %vm8970_vm7, %v579_v59, 0 }
 0x15a   : > { %7416 = vmatmul.mubr.msk.bf16.vlgmr.msra.gmra.mrb[0].mxu0 %vm620_vm2, %v9005_v38 }
 0x15b   : > { %7448 = vmatpush3.bf16.msra.mxu0 %v1884_v24  ;;  %7419 = vmatprep.mubr.msk.bf16.mxu0 %vm620_vm2, %v9021_v44 }
 0x15c   : > { %7481 = vmatprep.subr.bf16.mxu0 %v2082_v57 }
 0x162   : > { %7420 = vmatmul.mubr.msk.bf16.gmra.mrb[4].mxu0 %vm620_vm2, %v9027_v45 }
 0x163   : > { %7423 = vmatprep.mubr.msk.bf16.mxu0 %vm620_vm2, %v9041_v52 }
 0x16a   : > { %7424 = vmatmul.mubr.msk.bf16.gmra.mrb[8].mxu0 %vm620_vm2, %v9047_v55 }
 0x16b   : > { %7427 = vmatprep.mubr.msk.bf16.mxu0 %vm620_vm2, %v9061_v62 }
 0x172   : > { %7428 = vmatmul.mubr.msk.bf16.gmra.mrb[12].mxu0 %vm620_vm2, %v9067_v1 }
 0x173   : > { %7431 = vmatprep.mubr.msk.bf16.mxu0 %vm620_vm2, %v9081_v25 }
 0x17a   : > { %7432 = vmatmul.mubr.msk.bf16.gmra.mrb[16].mxu0 %vm620_vm2, %v9087_v34 }
 0x17b   : > { %7435 = vmatprep.mubr.msk.bf16.mxu0 %vm620_vm2, %v9101_v51 }
 0x182   : > { %7436 = vmatmul.mubr.msk.bf16.gmra.mrb[20].mxu0 %vm620_vm2, %v9107_v32 }
 0x183   : > { %7439 = vmatprep.mubr.msk.bf16.mxu0 %vm620_vm2, %v9121_v36 }
 0x18a   : > { %7440 = vmatmul.mubr.msk.bf16.gmra.mrb[24].mxu0 %vm620_vm2, %v9127_v4 }
 0x18b   : > { %7443 = vmatprep.mubr.msk.bf16.mxu0 %vm620_vm2, %v9137_v7 }
 0x192   : > { %7444 = vmatmul.mubr.msk.bf16.gmra.mrb[28].mxu0 %vm620_vm2, %v616_v41 }
 0x193   : > { %7449 = vmatprep.mubr.msk.bf16.mxu0 %vm620_vm2, %v8814_v42 }
 0x19a   : > { %7450 = vmatmul.mubr.msk.bf16.vlgmr.msra.gmra.mrb[0].mxu0 %vm620_vm2, %v8835_v50 }
 0x19b   : > { %7482 = vmatpush3.bf16.msra.mxu0 %v2082_v57  ;;  %7453 = vmatprep.mubr.msk.bf16.mxu0 %vm620_vm2, %v8842_v53 }
 0x19c   : > { %7515 = vmatprep.subr.bf16.mxu0 %v2280_v3 }
 0x1a2   : > { %7454 = vmatmul.mubr.msk.bf16.gmra.mrb[4].mxu0 %vm620_vm2, %v8859_v60 }
 0x1a3   : > { %7457 = vmatprep.mubr.msk.bf16.mxu0 %vm620_vm2, %v8866_v63 }
 0x1aa   : > { %7458 = vmatmul.mubr.msk.bf16.gmra.mrb[8].mxu0 %vm620_vm2, %v8883_v8 }
 0x1ab   : > { %7461 = vmatprep.mubr.msk.bf16.mxu0 %vm620_vm2, %v8890_v29 }
 0x1b2   : > { %7462 = vmatmul.mubr.msk.bf16.gmra.mrb[12].mxu0 %vm620_vm2, %v8907_v46 }
 0x1b3   : > { %7465 = vmatprep.mubr.msk.bf16.mxu0 %vm620_vm2, %v8914_v54 }
 0x1ba   : > { %7466 = vmatmul.mubr.msk.bf16.gmra.mrb[16].mxu0 %vm620_vm2, %v8931_v11 }
 0x1bb   : > { %7469 = vmatprep.mubr.msk.bf16.mxu0 %vm620_vm2, %v8938_v40 }
 0x1c2   : > { %7470 = vmatmul.mubr.msk.bf16.gmra.mrb[20].mxu0 %vm620_vm2, %v8954_v43 }
 0x1c3   : > { %7473 = vmatprep.mubr.msk.bf16.mxu0 %vm620_vm2, %v8961_v58 }
 0x1ca   : > { %7474 = vmatmul.mubr.msk.bf16.gmra.mrb[24].mxu0 %vm620_vm2, %v8976_v2 }
 0x1cb   : > { %7477 = vmatprep.mubr.msk.bf16.mxu0 %vm620_vm2, %v9182_v49 }
 0x1d2   : > { %7478 = vmatmul.mubr.msk.bf16.gmra.mrb[28].mxu0 %vm620_vm2, %v8787_v31 }
 0x1d3   : > { %7483 = vmatprep.mubr.msk.bf16.mxu0 %vm620_vm2, %v8704_v10  ;;  %v10647_v10 = vmov 0  }
 0x1da   : > { %7484 = vmatmul.mubr.msk.bf16.vlgmr.msra.gmra.mrb[0].mxu0 %vm620_vm2, %v8712_v12  ;;  %v8482_v12 = vld [vmem:[%s10608_s4 + $0x28] sm:$0xff]  }
 0x1db   : > { %7516 = vmatpush3.bf16.msra.mxu0 %v2280_v3  ;;  %7487 = vmatprep.mubr.msk.bf16.mxu0 %vm620_vm2, %v8715_v13  ;;  %v8483_v13 = vld [vmem:[%s10608_s4 + $0x30] sm:$0xff]   ;;  %v9434_v3 = vld [vmem:[%s10608_s4 + $0x40] sm:$0xff]  }
 0x1dc   : > { %7551 = vmatprep.subr.bf16.mxu1 %v8482_v12 }
 0x1dd   : > { %7552 = vmatpush3.bf16.msra.mxu1 %v8482_v12 }
 0x1de   : > { %7553 = vmatprep.subr.bf16.mxu1 %v8483_v13 }
 0x1e1   : > { %7554 = vmatpush3.bf16.msra.mxu1 %v8483_v13 }
 0x1e2   : > { %7488 = vmatmul.mubr.msk.bf16.gmra.mrb[4].mxu0 %vm620_vm2, %v8722_v14  ;;  %v8484_v14 = vld [vmem:[%s10608_s4 + $0x38] sm:$0xff]  }
 0x1e3   : > { %7491 = vmatprep.mubr.msk.bf16.mxu0 %vm620_vm2, %v8725_v15  ;;  %7555 = vmatprep.subr.bf16.mxu1 %v8484_v14  ;;  %v8485_v15 = vld [vmem:[%s10608_s4] sm:$0xff]  }
 0x1e5   : > { %7556 = vmatpush3.bf16.msra.mxu1 %v8484_v14 }
 0x1e6   : > { %7589 = vmatprep.subr.bf16.mxu1 %v8485_v15 }
 0x1ea   : > { %7492 = vmatmul.mubr.msk.bf16.gmra.mrb[8].mxu0 %vm620_vm2, %v8732_v16  ;;  %v9375_v16 = vld [vmem:[%s10606_s2] ss:$0 sm:$0xff] }
 0x1eb   : > { %7495 = vmatprep.mubr.msk.bf16.mxu0 %vm620_vm2, %v8735_v17 }
 0x1f2   : > { %7496 = vmatmul.mubr.msk.bf16.gmra.mrb[12].mxu0 %vm620_vm2, %v8742_v18  ;;  %v9380_v18 = vld [vmem:[%s10607_s3] ss:$0 sm:$0xff] }
 0x1f3   : > { %7499 = vmatprep.mubr.msk.bf16.mxu0 %vm620_vm2, %v8745_v19 }
 0x1fa   : > { %7500 = vmatmul.mubr.msk.bf16.gmra.mrb[16].mxu0 %vm620_vm2, %v8752_v20 }
 0x1fb   : > { %7503 = vmatprep.mubr.msk.bf16.mxu0 %vm620_vm2, %v8755_v21 }
 0x202   : > { %7504 = vmatmul.mubr.msk.bf16.gmra.mrb[20].mxu0 %vm620_vm2, %v8762_v22 }
 0x203   : > { %7507 = vmatprep.mubr.msk.bf16.mxu0 %vm620_vm2, %v8765_v23 }
 0x20a   : > { %7508 = vmatmul.mubr.msk.bf16.gmra.mrb[24].mxu0 %vm620_vm2, %v8780_v28 }
 0x20b   : > { %7511 = vmatprep.mubr.msk.bf16.mxu0 %vm620_vm2, %v9168_v39 }
 0x212   : > { %7512 = vmatmul.mubr.bf16.gmra.mrb[28].mxu0 %v10647_v10 }
 0x213   : > { %7517 = vmatprep.mubr.msk.bf16.mxu0 %vm620_vm2, %v9005_v38 }
 0x21a   : > { %7518 = vmatmul.mubr.msk.bf16.vlgmr.msra.gmra.mrb[0].mxu0 %vm620_vm2, %v9021_v44 }
 0x21b   : > { %7521 = vmatprep.mubr.msk.bf16.mxu0 %vm620_vm2, %v9027_v45  ;;  %v8486_v45 = vld [vmem:[%s10608_s4 + $0x8] sm:$0xff]  }
 0x222   : > { %7522 = vmatmul.mubr.msk.bf16.gmra.mrb[4].mxu0 %vm620_vm2, %v9041_v52 }
 0x223   : > { %7525 = vmatprep.mubr.msk.bf16.mxu0 %vm620_vm2, %v9047_v55 }
 0x22a   : > { %7526 = vmatmul.mubr.msk.bf16.gmra.mrb[8].mxu0 %vm620_vm2, %v9061_v62 }
 0x22b   : > { %7529 = vmatprep.mubr.msk.bf16.mxu0 %vm620_vm2, %v9067_v1 }
 0x232   : > { %7530 = vmatmul.mubr.msk.bf16.gmra.mrb[12].mxu0 %vm620_vm2, %v9081_v25 }
 0x233   : > { %7533 = vmatprep.mubr.msk.bf16.mxu0 %vm620_vm2, %v9087_v34 }
 0x23a   : > { %7534 = vmatmul.mubr.msk.bf16.gmra.mrb[16].mxu0 %vm620_vm2, %v9101_v51 }
 0x23b   : > { %7537 = vmatprep.mubr.msk.bf16.mxu0 %vm620_vm2, %v9107_v32  ;;  %v8487_v32 = vld [vmem:[%s10608_s4 + $0x10] sm:$0xff]  }
 0x242   : > { %7538 = vmatmul.mubr.msk.bf16.gmra.mrb[20].mxu0 %vm620_vm2, %v9121_v36 }
 0x243   : > { %7541 = vmatprep.mubr.msk.bf16.mxu0 %vm620_vm2, %v9127_v4 }
 0x24a   : > { %7542 = vmatmul.mubr.msk.bf16.gmra.mrb[24].mxu0 %vm620_vm2, %v9137_v7 }
 0x24b   : > { %7545 = vmatprep.mubr.msk.bf16.mxu0 %vm620_vm2, %v616_v41 }
 0x252   : > { %7546 = vmatmul.mubr.msk.bf16.gmra.mrb[28].mxu0 %vm620_vm2, %v8982_v56 }
 0x2ed   : > { %v7519_v17 = vpop.f32.mrb[0].mxu0 }
 0x2ee   : > { %v2484_v19 = vmul.f32 %v7519_v17, %v9375_v16  ;;  %v2316_v20 = vpop.f32.mrb[1].mxu0 }
 0x2ef   : > { %v2482_v21 = vmul.f32 %v9375_v16, %v2316_v20  ;;  %v7520_v22 = vpop.f32.mrb[2].mxu0 }
 0x2f0   : > { %v2523_v23 = vadd.f32 %v9380_v18, %v2484_v19  ;;  %v2485_v28 = vmul.f32 %v7520_v22, %v9375_v16  ;;  %v2319_v42 = vpop.f32.mrb[3].mxu0 }
 0x2f1   : > { %v2521_v50 = vadd.f32 %v9380_v18, %v2482_v21  ;;  %v2483_v53 = vmul.f32 %v9375_v16, %v2319_v42 }
 0x2f2   : > { %v2524_v60 = vadd.f32 %v9380_v18, %v2485_v28  ;;  %v2555_v8 = vmax.f32 %v2523_v23, 0.0 }
 0x2f3   : > { %v2522_v63 = vadd.f32 %v9380_v18, %v2483_v53  ;;  %v2553_v38 = vmax.f32 %v2521_v50, 0.0 }
 0x2f4   : > { %v2556_v29 = vmax.f32 %v2524_v60, 0.0 }
 0x2f5   : > { %v2554_v43 = vmax.f32 %v2522_v63, 0.0  ;;  %v7523_v46 = vpop.f32.mrb[4].mxu0 }
 0x2f6   : > { %v9390_v54 = vpack.c.bf16 %v2556_v29, %v2555_v8  ;;  %v2488_v58 = vmul.f32 %v7523_v46, %v9375_v16  ;;  %v2332_v11 = vpop.f32.mrb[5].mxu0 }
 0x2f7   : > { %v9393_v40 = vpack.c.bf16 %v2554_v43, %v2553_v38  ;;  %v2486_v2 = vmul.f32 %v9375_v16, %v2332_v11  ;;  %v7524_v44 = vpop.f32.mrb[6].mxu0 }
 0x2f8   : > { %v2527_v52 = vadd.f32 %v9380_v18, %v2488_v58  ;;  %v2489_v55 = vmul.f32 %v7524_v44, %v9375_v16  ;;  %v2335_v62 = vpop.f32.mrb[7].mxu0 }
 0x2f9   : > { %v2525_v1 = vadd.f32 %v9380_v18, %v2486_v2  ;;  %v2487_v25 = vmul.f32 %v9375_v16, %v2335_v62  ;;  %7558 = vmatmul.mubr.msk.bf16.vlgmr.msra.gmra.mrb[0].mxu1 %vm2850_vm8, %v9393_v40 }
 0x2fa   : > { %v2528_v34 = vadd.f32 %v9380_v18, %v2489_v55  ;;  %7561 = vmatprep.mubr.msk.bf16.mxu1 %vm2850_vm8, %v9390_v54  ;;  %7590 = vmatpush3.bf16.msra.mxu1 %v8485_v15  ;;  %v2559_v36 = vmax.f32 %v2527_v52, 0.0 }
 0x2fb   : > { %v2526_v51 = vadd.f32 %v9380_v18, %v2487_v25  ;;  %7591 = vmatprep.subr.bf16.mxu1 %v8486_v45  ;;  %v2557_v7 = vmax.f32 %v2525_v1, 0.0 }
 0x2fc   : > { %v2560_v4 = vmax.f32 %v2528_v34, 0.0 }
 0x2fd   : > { %v2558_v6 = vmax.f32 %v2526_v51, 0.0  ;;  %v7527_v35 = vpop.f32.mrb[8].mxu0 }
 0x2fe   : > { %v9412_v39 = vpack.c.bf16 %v2560_v4, %v2559_v36  ;;  %v2492_v26 = vmul.f32 %v7527_v35, %v9375_v16  ;;  %v2348_v37 = vpop.f32.mrb[9].mxu0  ;;  %7592 = vmatpush3.bf16.msra.mxu1 %v8486_v45 }
 0x2ff   : > { %v9415_v30 = vpack.c.bf16 %v2558_v6, %v2557_v7  ;;  %v2490_v47 = vmul.f32 %v9375_v16, %v2348_v37  ;;  %v7528_v49 = vpop.f32.mrb[10].mxu0  ;;  %7593 = vmatprep.subr.bf16.mxu1 %v8487_v32 }
 0x300   : > { %v2531_v24 = vadd.f32 %v9380_v18, %v2492_v26  ;;  %v2493_v9 = vmul.f32 %v7528_v49, %v9375_v16  ;;  %v2351_v57 = vpop.f32.mrb[11].mxu0 }
 0x301   : > { %v2529_v48 = vadd.f32 %v9380_v18, %v2490_v47  ;;  %v2491_v59 = vmul.f32 %v9375_v16, %v2351_v57  ;;  %7562 = vmatmul.mubr.msk.bf16.gmra.mrb[4].mxu1 %vm2850_vm8, %v9415_v30 }
 0x302   : > { %v2532_v41 = vadd.f32 %v9380_v18, %v2493_v9  ;;  %7565 = vmatprep.mubr.msk.bf16.mxu1 %vm2850_vm8, %v9412_v39  ;;  %7594 = vmatpush3.bf16.msra.mxu1 %v8487_v32  ;;  %v2563_v5 = vmax.f32 %v2531_v24, 0.0 }
 0x303   : > { %v2530_v0 = vadd.f32 %v9380_v18, %v2491_v59  ;;  %7595 = vmatprep.subr.bf16.mxu1 %v8488_v33  ;;  %v2561_v13 = vmax.f32 %v2529_v48, 0.0 }
 0x304   : > { %v2564_v12 = vmax.f32 %v2532_v41, 0.0 }
 0x305   : > { %v2562_v14 = vmax.f32 %v2530_v0, 0.0  ;;  %v7531_v15 = vpop.f32.mrb[12].mxu0 }
 0x306   : > { %v9436_v17 = vpack.c.bf16 %v2564_v12, %v2563_v5  ;;  %v2496_v19 = vmul.f32 %v7531_v15, %v9375_v16  ;;  %v2364_v20 = vpop.f32.mrb[13].mxu0  ;;  %7596 = vmatpush3.bf16.msra.mxu1 %v8488_v33 }
 0x307   : > { %v9439_v21 = vpack.c.bf16 %v2562_v14, %v2561_v13  ;;  %v2494_v22 = vmul.f32 %v9375_v16, %v2364_v20  ;;  %v7532_v23 = vpop.f32.mrb[14].mxu0  ;;  %7629 = vmatprep.subr.bf16.mxu1 %v9434_v3 }
 0x308   : > { %v2535_v28 = vadd.f32 %v9380_v18, %v2496_v19  ;;  %v2497_v42 = vmul.f32 %v7532_v23, %v9375_v16  ;;  %v2367_v50 = vpop.f32.mrb[15].mxu0 }
 0x309   : > { %v2533_v53 = vadd.f32 %v9380_v18, %v2494_v22  ;;  %v2495_v60 = vmul.f32 %v9375_v16, %v2367_v50  ;;  %7566 = vmatmul.mubr.msk.bf16.gmra.mrb[8].mxu1 %vm2850_vm8, %v9439_v21 }
 0x30a   : > { %v2536_v63 = vadd.f32 %v9380_v18, %v2497_v42  ;;  %7569 = vmatprep.mubr.msk.bf16.mxu1 %vm2850_vm8, %v9436_v17  ;;  %v2567_v29 = vmax.f32 %v2535_v28, 0.0 }
 0x30b   : > { %v2534_v8 = vadd.f32 %v9380_v18, %v2495_v60  ;;  %v2565_v43 = vmax.f32 %v2533_v53, 0.0 }
 0x30c   : > { %v2568_v38 = vmax.f32 %v2536_v63, 0.0 }
 0x30d   : > { %v2566_v46 = vmax.f32 %v2534_v8, 0.0  ;;  %v7535_v58 = vpop.f32.mrb[16].mxu0 }
 0x30e   : > { %v9453_v11 = vpack.c.bf16 %v2568_v38, %v2567_v29  ;;  %v2500_v2 = vmul.f32 %v7535_v58, %v9375_v16  ;;  %v2380_v44 = vpop.f32.mrb[17].mxu0 }
 0x30f   : > { %v9456_v45 = vpack.c.bf16 %v2566_v46, %v2565_v43  ;;  %v2498_v52 = vmul.f32 %v9375_v16, %v2380_v44  ;;  %v7536_v55 = vpop.f32.mrb[18].mxu0 }
 0x310   : > { %v2539_v62 = vadd.f32 %v9380_v18, %v2500_v2  ;;  %v2501_v1 = vmul.f32 %v7536_v55, %v9375_v16  ;;  %v2383_v25 = vpop.f32.mrb[19].mxu0 }
 0x311   : > { %v2537_v34 = vadd.f32 %v9380_v18, %v2498_v52  ;;  %v2499_v51 = vmul.f32 %v9375_v16, %v2383_v25  ;;  %7570 = vmatmul.mubr.msk.bf16.gmra.mrb[12].mxu1 %vm2850_vm8, %v9456_v45 }
 0x312   : > { %v2540_v32 = vadd.f32 %v9380_v18, %v2501_v1  ;;  %7573 = vmatprep.mubr.msk.bf16.mxu1 %vm2850_vm8, %v9453_v11  ;;  %v2571_v4 = vmax.f32 %v2539_v62, 0.0 }
 0x313   : > { %v2538_v36 = vadd.f32 %v9380_v18, %v2499_v51  ;;  %v2569_v6 = vmax.f32 %v2537_v34, 0.0 }
 0x314   : > { %v2572_v7 = vmax.f32 %v2540_v32, 0.0 }
 0x315   : > { %v2570_v35 = vmax.f32 %v2538_v36, 0.0  ;;  %v7539_v26 = vpop.f32.mrb[20].mxu0 }
 0x316   : > { %v9469_v37 = vpack.c.bf16 %v2572_v7, %v2571_v4  ;;  %v2504_v47 = vmul.f32 %v7539_v26, %v9375_v16  ;;  %v2396_v49 = vpop.f32.mrb[21].mxu0 }
 0x317   : > { %v9472_v33 = vpack.c.bf16 %v2570_v35, %v2569_v6  ;;  %v2502_v24 = vmul.f32 %v9375_v16, %v2396_v49  ;;  %v7540_v9 = vpop.f32.mrb[22].mxu0  ;;  %v2602_v49 = vshrl.u32 %v9393_v40, 16 }
 0x318   : > { %v2543_v57 = vadd.f32 %v9380_v18, %v2504_v47  ;;  %v2505_v48 = vmul.f32 %v7540_v9, %v9375_v16  ;;  %v2399_v59 = vpop.f32.mrb[23].mxu0 }
 0x319   : > { %v2541_v41 = vadd.f32 %v9380_v18, %v2502_v24  ;;  %v2503_v0 = vmul.f32 %v9375_v16, %v2399_v59  ;;  %7574 = vmatmul.mubr.msk.bf16.gmra.mrb[16].mxu1 %vm2850_vm8, %v9472_v33  ;;  %v2609_v59 = vshrl.u32 %v9390_v54, 16 }
 0x31a   : > { %v2544_v5 = vadd.f32 %v9380_v18, %v2505_v48  ;;  %7577 = vmatprep.mubr.msk.bf16.mxu1 %vm2850_vm8, %v9469_v37  ;;  %v2575_v13 = vmax.f32 %v2543_v57, 0.0 }
 0x31b   : > { %v2542_v12 = vadd.f32 %v9380_v18, %v2503_v0  ;;  %v2573_v15 = vmax.f32 %v2541_v41, 0.0  ;;  %v2604_v0 = vrot.slane %v2602_v49, 7 }
 0x31c   : > { %v2576_v14 = vmax.f32 %v2544_v5, 0.0 }
 0x31d   : > { %v2574_v19 = vmax.f32 %v2542_v12, 0.0  ;;  %v7543_v20 = vpop.f32.mrb[24].mxu0  ;;  %v2605_v12 = vshll.u32 %v9393_v40, 16 }
 0x31e   : > { %v9485_v22 = vpack.c.bf16 %v2576_v14, %v2575_v13  ;;  %v2508_v23 = vmul.f32 %v7543_v20, %v9375_v16  ;;  %v2412_v28 = vpop.f32.mrb[25].mxu0  ;;  %v2616_v20 = vshrl.u32 %v9415_v30, 16 }
 0x31f   : > { %v9488_v42 = vpack.c.bf16 %v2574_v19, %v2573_v15  ;;  %v2506_v50 = vmul.f32 %v9375_v16, %v2412_v28  ;;  %v7544_v53 = vpop.f32.mrb[26].mxu0  ;;  %v2612_v15 = vshll.u32 %v9390_v54, 16  ;;  %v2607_v19 = vor.u32 %v2605_v12, %v2604_v0 }
 0x320   : > { %v2547_v60 = vadd.f32 %v9380_v18, %v2508_v23  ;;  %v2509_v63 = vmul.f32 %v7544_v53, %v9375_v16  ;;  %v2415_v8 = vpop.f32.mrb[27].mxu0  ;;  %v8490_v53 = vld [vmem:[%s10608_s4 + $0x48] sm:$0xff]   ;;  %v2654_v0 = vshll.u32 %v9453_v11, 16 }
 0x321   : > { %v2545_v29 = vadd.f32 %v9380_v18, %v2506_v50  ;;  %v2507_v38 = vmul.f32 %v9375_v16, %v2415_v8  ;;  %7578 = vmatmul.mubr.msk.bf16.gmra.mrb[20].mxu1 %vm2850_vm8, %v9488_v42  ;;  %v2623_v50 = vshrl.u32 %v9412_v39, 16 }
 0x322   : > { %v2548_v43 = vadd.f32 %v9380_v18, %v2509_v63  ;;  %7581 = vmatprep.mubr.msk.bf16.mxu1 %vm2850_vm8, %v9485_v22  ;;  %v2579_v58 = vmax.f32 %v2547_v60, 0.0  ;;  %v9552_v60 = vsel %vm8775_vm4, 0, %v2607_v19  ;;  %v2618_v63 = vrot.slane %v2616_v20, 7 }
 0x323   : > { %v2546_v46 = vadd.f32 %v9380_v18, %v2507_v38  ;;  %v2577_v44 = vmax.f32 %v2545_v29, 0.0  ;;  %v2625_v29 = vrot.slane %v2623_v50, 7  ;;  %v2619_v38 = vshll.u32 %v9415_v30, 16 }
 0x324   : > { %v2580_v2 = vmax.f32 %v2548_v43, 0.0  ;;  %v2626_v43 = vshll.u32 %v9412_v39, 16 }
 0x325   : > { %v2578_v52 = vmax.f32 %v2546_v46, 0.0  ;;  %v7547_v55 = vpop.f32.mrb[28].mxu0  ;;  %v8491_v46 = vld [vmem:[%s10608_s4 + $0x50] sm:$0xff]  }
 0x326   : > { %v9501_v62 = vpack.c.bf16 %v2580_v2, %v2579_v58  ;;  %v2512_v1 = vmul.f32 %v7547_v55, %v9375_v16  ;;  %v2428_v25 = vpop.f32.mrb[29].mxu0  ;;  %v2621_v58 = vor.u32 %v2619_v38, %v2618_v63  ;;  %v2630_v2 = vshrl.u32 %v9439_v21, 16 }
 0x327   : > { %v9504_v34 = vpack.c.bf16 %v2578_v52, %v2577_v44  ;;  %v2510_v51 = vmul.f32 %v9375_v16, %v2428_v25  ;;  %v7548_v32 = vpop.f32.mrb[30].mxu0  ;;  %v2628_v44 = vor.u32 %v2626_v43, %v2625_v29  ;;  %v2637_v52 = vshrl.u32 %v9436_v17, 16 }
 0x328   : > { %v2551_v36 = vadd.f32 %v9380_v18, %v2512_v1  ;;  %v2513_v4 = vmul.f32 %v7548_v32, %v9375_v16  ;;  %v2431_v7 = vpop.f32.mrb[31].mxu0  ;;  %v9583_v55 = vsel %vm8775_vm4, 0, %v2621_v58  ;;  %v2632_v1 = vrot.slane %v2630_v2, 7 }
 0x329   : > { %v2549_v6 = vadd.f32 %v9380_v18, %v2510_v51  ;;  %v2511_v35 = vmul.f32 %v9375_v16, %v2431_v7  ;;  %7582 = vmatmul.mubr.msk.bf16.gmra.mrb[24].mxu1 %vm2850_vm8, %v9504_v34  ;;  %v9591_v25 = vsel %vm8775_vm4, 0, %v2628_v44  ;;  %v2639_v51 = vrot.slane %v2637_v52, 7 }
 0x32a   : > { %v2552_v26 = vadd.f32 %v9380_v18, %v2513_v4  ;;  %7585 = vmatprep.mubr.msk.bf16.mxu1 %vm2850_vm8, %v9501_v62  ;;  %v2583_v24 = vmax.f32 %v2551_v36, 0.0  ;;  %v2633_v32 = vshll.u32 %v9439_v21, 16  ;;  %v2640_v36 = vshll.u32 %v9436_v17, 16  ;;  %v9602_v4 = vld [vmem:[%s10608_s4 + $0x60] sm:$0xff]  }
 0x32b   : > { %v2550_v47 = vadd.f32 %v9380_v18, %v2511_v35  ;;  %v2581_v57 = vmax.f32 %v2549_v6, 0.0  ;;  %v2611_v18 = vrot.slane %v2609_v59, 7  ;;  %v2644_v6 = vshrl.u32 %v9456_v45, 16 }
 0x32c   : > { %v2584_v9 = vmax.f32 %v2552_v26, 0.0  ;;  %v2635_v7 = vor.u32 %v2633_v32, %v2632_v1  ;;  %v2642_v35 = vor.u32 %v2640_v36, %v2639_v51  ;;  %v2651_v26 = vshrl.u32 %v9453_v11, 16 }
 0x32d   : > { %v2582_v48 = vmax.f32 %v2550_v47, 0.0  ;;  %v2614_v28 = vor.u32 %v2612_v15, %v2611_v18  ;;  %v2661_v58 = vshll.u32 %v9472_v33, 16  ;;  %v2668_v44 = vshll.u32 %v9469_v37, 16 }
 0x32e   : > { %v9519_v41 = vpack.c.bf16 %v2584_v9, %v2583_v24  ;;  %v9613_v47 = vsel %vm8775_vm4, 0, %v2635_v7  ;;  %v2646_v24 = vrot.slane %v2644_v6, 7  ;;  %v9621_v9 = vsel %vm8775_vm4, 0, %v2642_v35 }
 0x32f   : > { %v9521_v16 = vpack.c.bf16 %v2582_v48, %v2581_v57  ;;  %v9560_v8 = vsel %vm8775_vm4, 0, %v2614_v28  ;;  %v2653_v57 = vrot.slane %v2651_v26, 7  ;;  %v2647_v48 = vshll.u32 %v9456_v45, 16 }
 0x330   : > { %v10622_v5 = vshll.u32 %v9519_v41, 16  ;;  %v10623_v13 = vshrl.u32 %v9519_v41, 16  ;;  %v10630_v28 = vshrl.u32 %v9469_v37, 16  ;;  %v10625_v1 = vshrl.u32 %v9488_v42, 16 }
 0x331   : > { %7586 = vmatmul.mubr.msk.bf16.gmra.mrb[28].mxu1 %vm2850_vm8, %v9521_v16  ;;  %v2649_v18 = vor.u32 %v2647_v48, %v2646_v24  ;;  %v2656_v19 = vor.u32 %v2654_v0, %v2653_v57  ;;  %v10624_v7 = vshrl.u32 %v9485_v22, 16 }
 0x332   : > { %7597 = vmatprep.mubr.msk.bf16.mxu1 %vm2850_vm8, %v8787_v31  ;;  %v2775_v14 = vrot.slane %v10622_v5, 1  ;;  %v2674_v24 = vrot.slane %v10625_v1, 7 }
 0x333   : > { %v9645_v29 = vsel %vm8775_vm4, 0, %v2656_v19  ;;  %v10628_v19 = vshll.u32 %v9488_v42, 16 }
 0x334   : > { %v9542_v23 = vor.u32 %v2775_v14, %v10623_v13  ;;  %v2658_v14 = vshrl.u32 %v9472_v33, 16 }
 0x336   : > { %v2660_v63 = vrot.slane %v2658_v14, 7 }
 0x339   : > { %7598 = vmatmul.mubr.msk.bf16.vlgmr.msra.gmra.mrb[0].mxu1 %vm2850_vm8, %v9552_v60 }
 0x33a   : > { %7601 = vmatprep.mubr.msk.bf16.mxu1 %vm2850_vm8, %v9560_v8  ;;  %7630 = vmatpush3.bf16.msra.mxu1 %v9434_v3  ;;  %v8492_v3 = vld [vmem:[%s10608_s4 + $0x58] sm:$0xff]  }
 0x33b   : > { %7631 = vmatprep.subr.bf16.mxu1 %v8490_v53 }
 0x33e   : > { %7632 = vmatpush3.bf16.msra.mxu1 %v8490_v53  ;;  %v9637_v53 = vsel %vm8775_vm4, 0, %v2649_v18  ;;  %v2681_v18 = vrot.slane %v10624_v7, 7 }
 0x33f   : > { %7633 = vmatprep.subr.bf16.mxu1 %v8491_v46 }
 0x341   : > { %7602 = vmatmul.mubr.msk.bf16.gmra.mrb[4].mxu1 %vm2850_vm8, %v9583_v55 }
 0x342   : > { %7605 = vmatprep.mubr.msk.bf16.mxu1 %vm2850_vm8, %v9591_v25  ;;  %7634 = vmatpush3.bf16.msra.mxu1 %v8491_v46  ;;  %v2667_v46 = vrot.slane %v10630_v28, 7 }
 0x343   : > { %7635 = vmatprep.subr.bf16.mxu1 %v8492_v3 }
 0x344   : > { %v2670_v51 = vor.u32 %v2668_v44, %v2667_v46  ;;  %v2677_v46 = vor.u32 %v10628_v19, %v2674_v24 }
 0x346   : > { %7636 = vmatpush3.bf16.msra.mxu1 %v8492_v3  ;;  %v2663_v3 = vor.u32 %v2661_v58, %v2660_v63  ;;  %v9669_v57 = vsel %vm8775_vm4, 0, %v2670_v51  ;;  %v10627_v63 = vshll.u32 %v9485_v22, 16  ;;  %v10629_v51 = vshrl.u32 %v9501_v62, 16 }
 0x347   : > { %7669 = vmatprep.subr.bf16.mxu1 %v9602_v4  ;;  %v9685_v13 = vsel %vm8775_vm4, 0, %v2677_v46  ;;  %v10632_v46 = vshll.u32 %v9501_v62, 16 }
 0x348   : > { %v9661_v35 = vsel %vm8775_vm4, 0, %v2663_v3  ;;  %v10626_v3 = vshrl.u32 %v9504_v34, 16  ;;  %v2684_v5 = vor.u32 %v10627_v63, %v2681_v18  ;;  %v2695_v1 = vrot.slane %v10629_v51, 7 }
 0x349   : > { %7606 = vmatmul.mubr.msk.bf16.gmra.mrb[8].mxu1 %vm2850_vm8, %v9613_v47  ;;  %v2689_v18 = vshll.u32 %v9504_v34, 16  ;;  %v10631_v63 = vshrl.u32 %v9521_v16, 16 }
 0x34a   : > { %7609 = vmatprep.mubr.msk.bf16.mxu1 %vm2850_vm8, %v9621_v9  ;;  %v2688_v7 = vrot.slane %v10626_v3, 7  ;;  %v9693_v24 = vsel %vm8775_vm4, 0, %v2684_v5  ;;  %v2698_v19 = vor.u32 %v10632_v46, %v2695_v1 }
 0x34b   : > { %v2702_v51 = vrot.slane %v10631_v63, 7  ;;  %v2745_v63 = vrot.slane %v2605_v12, 1 }
 0x34c   : > { %v2691_v3 = vor.u32 %v2689_v18, %v2688_v7  ;;  %v9716_v28 = vsel %vm8775_vm4, 0, %v2698_v19  ;;  %v2703_v7 = vshll.u32 %v9521_v16, 16  ;;  %v2747_v19 = vrot.slane %v2612_v15, 1 }
 0x34d   : > { %v2746_v46 = vor.u32 %v2745_v63, %v2602_v49  ;;  %v2749_v15 = vrot.slane %v2619_v38, 1  ;;  %v8495_v38 = vld [vmem:[%s10608_s4 + $0x70] sm:$0xff]  }
 0x34e   : > { %v9708_v5 = vsel %vm8775_vm4, 0, %v2691_v3  ;;  %v2705_v1 = vor.u32 %v2703_v7, %v2702_v51  ;;  %v2748_v51 = vor.u32 %v2747_v19, %v2609_v59  ;;  %v2751_v59 = vrot.slane %v2626_v43, 1  ;;  %v8496_v43 = vld [vmem:[%s10608_s4 + $0x78] sm:$0xff]  }
 0x34f   : > { %v9744_v12 = vsel %vm8970_vm7, %v2746_v46, 0  ;;  %v2750_v63 = vor.u32 %v2749_v15, %v2616_v20  ;;  %v2753_v19 = vrot.slane %v2633_v32, 1  ;;  %v2757_v15 = vrot.slane %v2647_v48, 1 }
 0x350   : > { %v9725_v3 = vsel %vm8775_vm4, 0, %v2705_v1  ;;  %v8494_v1 = vld [vmem:[%s10608_s4 + $0x68] sm:$0xff]   ;;  %v9752_v49 = vsel %vm8970_vm7, %v2748_v51, 0  ;;  %v2752_v46 = vor.u32 %v2751_v59, %v2623_v50  ;;  %v2755_v50 = vrot.slane %v2640_v36, 1  ;;  %v8497_v51 = vld [vmem:[%s10608_s4 + $0x80] sm:$0xff]  }
 0x351   : > { %7610 = vmatmul.mubr.msk.bf16.gmra.mrb[12].mxu1 %vm2850_vm8, %v9637_v53  ;;  %v2754_v32 = vor.u32 %v2753_v19, %v2630_v2  ;;  %v2759_v2 = vrot.slane %v2654_v0, 1  ;;  %v10649_v19 = vshll.u32 %v9488_v42, 16 }
 0x352   : > { %7613 = vmatprep.mubr.msk.bf16.mxu1 %vm2850_vm8, %v9645_v29  ;;  %v9779_v20 = vsel %vm8970_vm7, %v2752_v46, 0  ;;  %v10648_v46 = vshrl.u32 %v9469_v37, 16 }
 0x353   : > { %v9794_v36 = vsel %vm8970_vm7, %v2754_v32, 0  ;;  %v10650_v32 = vshll.u32 %v9485_v22, 16 }
 0x359   : > { %7614 = vmatmul.mubr.msk.bf16.gmra.mrb[16].mxu1 %vm2850_vm8, %v9661_v35 }
 0x35a   : > { %7617 = vmatprep.mubr.msk.bf16.mxu1 %vm2850_vm8, %v9669_v57 }
 0x361   : > { %7618 = vmatmul.mubr.msk.bf16.gmra.mrb[20].mxu1 %vm2850_vm8, %v9685_v13 }
 0x362   : > { %7621 = vmatprep.mubr.msk.bf16.mxu1 %vm2850_vm8, %v9693_v24 }
 0x369   : > { %7622 = vmatmul.mubr.msk.bf16.gmra.mrb[24].mxu1 %vm2850_vm8, %v9708_v5 }
 0x36a   : > { %7625 = vmatprep.mubr.msk.bf16.mxu1 %vm2850_vm8, %v9716_v28 }
 0x371   : > { %7626 = vmatmul.mubr.msk.bf16.gmra.mrb[28].mxu1 %vm2850_vm8, %v9725_v3 }
 0x372   : > { %7637 = vmatprep.mubr.msk.bf16.mxu1 %vm2850_vm8, %v8982_v56 }
 0x379   : > { %7638 = vmatmul.mubr.msk.bf16.vlgmr.msra.gmra.mrb[0].mxu1 %vm2850_vm8, %v9744_v12 }
 0x37a   : > { %7641 = vmatprep.mubr.msk.bf16.mxu1 %vm2850_vm8, %v9752_v49  ;;  %7670 = vmatpush3.bf16.msra.mxu1 %v9602_v4  ;;  %v9771_v4 = vsel %vm8970_vm7, %v2750_v63, 0  ;;  %v2761_v63 = vrot.slane %v2661_v58, 1 }
 0x37b   : > { %7671 = vmatprep.subr.bf16.mxu1 %v8494_v1 }
 0x37e   : > { %7672 = vmatpush3.bf16.msra.mxu1 %v8494_v1  ;;  %v2756_v1 = vor.u32 %v2755_v50, %v2637_v52  ;;  %v2758_v52 = vor.u32 %v2757_v15, %v2644_v6  ;;  %v2763_v6 = vrot.slane %v2668_v44, 1  ;;  %v2765_v50 = vrot.slane %v10649_v19, 1 }
 0x37f   : > { %7673 = vmatprep.subr.bf16.mxu1 %v8495_v38 }
 0x380   : > { %v9802_v59 = vsel %vm8970_vm7, %v2756_v1, 0  ;;  %v9814_v48 = vsel %vm8970_vm7, %v2758_v52, 0  ;;  %v10651_v1 = vshrl.u32 %v9488_v42, 16 }
 0x381   : > { %7642 = vmatmul.mubr.msk.bf16.gmra.mrb[4].mxu1 %vm2850_vm8, %v9771_v4 }
 0x382   : > { %7645 = vmatprep.mubr.msk.bf16.mxu1 %vm2850_vm8, %v9779_v20  ;;  %7674 = vmatpush3.bf16.msra.mxu1 %v8495_v38  ;;  %v2760_v38 = vor.u32 %v2759_v2, %v2651_v26  ;;  %v2762_v26 = vor.u32 %v2761_v63, %v2658_v14  ;;  %v2767_v14 = vrot.slane %v10650_v32, 1  ;;  %v2766_v15 = vor.u32 %v2765_v50, %v10651_v1 }
 0x383   : > { %7675 = vmatprep.subr.bf16.mxu1 %v8496_v43  ;;  %v10652_v2 = vshrl.u32 %v9485_v22, 16  ;;  %v2769_v63 = vrot.slane %v2689_v18, 1  ;;  %v10655_v50 = vshrl.u32 %v9501_v62, 16 }
 0x384   : > { %v9822_v0 = vsel %vm8970_vm7, %v2760_v38, 0  ;;  %v9834_v58 = vsel %vm8970_vm7, %v2762_v26, 0  ;;  %v9854_v38 = vsel %vm8970_vm7, %v2766_v15, 0  ;;  %v10653_v26 = vshll.u32 %v9501_v62, 16 }
 0x385   : > { %v2768_v52 = vor.u32 %v2767_v14, %v10652_v2  ;;  %v2773_v14 = vrot.slane %v2703_v7, 1  ;;  %v10656_v15 = vshrl.u32 %v9521_v16, 16  ;;  %v8498_v7 = vld [vmem:[%s10608_s4 + $0x88] sm:$0xff]  }
 0x386   : > { %7676 = vmatpush3.bf16.msra.mxu1 %v8496_v43  ;;  %v2764_v43 = vor.u32 %v2763_v6, %v10648_v46  ;;  %v2771_v46 = vrot.slane %v10653_v26, 1  ;;  %v10657_v26 = vshrl.u32 %v9519_v41, 16 }
 0x387   : > { %7709 = vmatprep.subr.bf16.mxu1 %v8497_v51  ;;  %v9862_v6 = vsel %vm8970_vm7, %v2768_v52, 0  ;;  %v2774_v2 = vor.u32 %v2773_v14, %v10656_v15  ;;  %v8505_v14 = vld [vmem:[%s10608_s4 + $0xc0] sm:$0xff]   ;;  %v8506_v15 = vld [vmem:[%s10608_s4 + $0xc8] sm:$0xff]  }
 0x388   : > { %v9842_v44 = vsel %vm8970_vm7, %v2764_v43, 0  ;;  %v10654_v43 = vshrl.u32 %v9504_v34, 16  ;;  %v2772_v32 = vor.u32 %v2771_v46, %v10655_v50  ;;  %v2709_v46 = vrot.slane %v10657_v26, 7 }
 0x389   : > { %7646 = vmatmul.mubr.msk.bf16.gmra.mrb[8].mxu1 %vm2850_vm8, %v9794_v36  ;;  %v9890_v52 = vsel %vm8970_vm7, %v2774_v2, 0  ;;  %v8507_v2 = vld [vmem:[%s10608_s4 + $0xd0] sm:$0xff]  }
 0x38a   : > { %7649 = vmatprep.mubr.msk.bf16.mxu1 %vm2850_vm8, %v9802_v59  ;;  %v2770_v19 = vor.u32 %v2769_v63, %v10654_v43  ;;  %v9882_v1 = vsel %vm8970_vm7, %v2772_v32, 0  ;;  %v8499_v63 = vld [vmem:[%s10608_s4 + $0x90] sm:$0xff]   ;;  %v10658_v43 = vshll.u32 %v9519_v41, 16  ;;  %v8502_v32 = vld [vmem:[%s10608_s4 + $0xa8] sm:$0xff]  }
 0x38c   : > { %v9874_v18 = vsel %vm8970_vm7, %v2770_v19, 0  ;;  %v2712_v19 = vor.u32 %v10658_v43, %v2709_v46 }
 0x38e   : > { %v9942_v50 = vsel %vm8775_vm4, 0, %v2712_v19 }
 0x391   : > { %7650 = vmatmul.mubr.msk.bf16.gmra.mrb[12].mxu1 %vm2850_vm8, %v9814_v48 }
 0x392   : > { %7653 = vmatprep.mubr.msk.bf16.mxu1 %vm2850_vm8, %v9822_v0 }
 0x399   : > { %7654 = vmatmul.mubr.msk.bf16.gmra.mrb[16].mxu1 %vm2850_vm8, %v9834_v58 }
 0x39a   : > { %7657 = vmatprep.mubr.msk.bf16.mxu1 %vm2850_vm8, %v9842_v44 }
 0x3a1   : > { %7658 = vmatmul.mubr.msk.bf16.gmra.mrb[20].mxu1 %vm2850_vm8, %v9854_v38 }
 0x3a2   : > { %7661 = vmatprep.mubr.msk.bf16.mxu1 %vm2850_vm8, %v9862_v6 }
 0x3a9   : > { %7662 = vmatmul.mubr.msk.bf16.gmra.mrb[24].mxu1 %vm2850_vm8, %v9874_v18 }
 0x3aa   : > { %7665 = vmatprep.mubr.msk.bf16.mxu1 %vm2850_vm8, %v9882_v1 }
 0x3b1   : > { %7666 = vmatmul.mubr.msk.bf16.gmra.mrb[28].mxu1 %vm2850_vm8, %v9890_v52 }
 0x3b2   : > { %7677 = vmatprep.mubr.msk.bf16.mxu1 %vm2850_vm8, %v9552_v60  ;;  %v8500_v60 = vld [vmem:[%s10608_s4 + $0x98] sm:$0xff]  }
 0x3b9   : > { %7678 = vmatmul.mubr.msk.bf16.vlgmr.msra.gmra.mrb[0].mxu1 %vm2850_vm8, %v9560_v8 }
 0x3ba   : > { %7681 = vmatprep.mubr.msk.bf16.mxu1 %vm2850_vm8, %v9583_v55  ;;  %7710 = vmatpush3.bf16.msra.mxu1 %v8497_v51  ;;  %v8501_v51 = vld [vmem:[%s10608_s4 + $0xa0] sm:$0xff]  }
 0x3bb   : > { %7711 = vmatprep.subr.bf16.mxu1 %v8498_v7 }
 0x3be   : > { %7712 = vmatpush3.bf16.msra.mxu1 %v8498_v7  ;;  %v8509_v7 = vld [vmem:[%s10608_s4 + $0xe0] sm:$0xff]  }
 0x3bf   : > { %7713 = vmatprep.subr.bf16.mxu1 %v8499_v63 }
 0x3c1   : > { %7682 = vmatmul.mubr.msk.bf16.gmra.mrb[4].mxu1 %vm2850_vm8, %v9591_v25 }
 0x3c2   : > { %7685 = vmatprep.mubr.msk.bf16.mxu1 %vm2850_vm8, %v9613_v47  ;;  %7714 = vmatpush3.bf16.msra.mxu1 %v8499_v63  ;;  %v10035_v63 = vsel %vm8970_vm7, %v9542_v23, 0  ;;  %v8512_v23 = vld [vmem:[%s10608_s4 + $0xf8] sm:$0xff]  }
 0x3c3   : > { %7715 = vmatprep.subr.bf16.mxu1 %v8500_v60 }
 0x3c6   : > { %7716 = vmatpush3.bf16.msra.mxu1 %v8500_v60  ;;  %v8510_v60 = vld [vmem:[%s10608_s4 + $0xe8] sm:$0xff]  }
 0x3c7   : > { %7749 = vmatprep.subr.bf16.mxu1 %v8501_v51 }
 0x3c9   : > { %7686 = vmatmul.mubr.msk.bf16.gmra.mrb[8].mxu1 %vm2850_vm8, %v9621_v9 }
 0x3ca   : > { %7689 = vmatprep.mubr.msk.bf16.mxu1 %vm2850_vm8, %v9637_v53 }
 0x3d1   : > { %7690 = vmatmul.mubr.msk.bf16.gmra.mrb[12].mxu1 %vm2850_vm8, %v9645_v29 }
 0x3d2   : > { %7693 = vmatprep.mubr.msk.bf16.mxu1 %vm2850_vm8, %v9661_v35 }
 0x3d9   : > { %7694 = vmatmul.mubr.msk.bf16.gmra.mrb[16].mxu1 %vm2850_vm8, %v9669_v57 }
 0x3da   : > { %7697 = vmatprep.mubr.msk.bf16.mxu1 %vm2850_vm8, %v9685_v13 }
 0x3e1   : > { %7698 = vmatmul.mubr.msk.bf16.gmra.mrb[20].mxu1 %vm2850_vm8, %v9693_v24 }
 0x3e2   : > { %7701 = vmatprep.mubr.msk.bf16.mxu1 %vm2850_vm8, %v9708_v5 }
 0x3e9   : > { %7702 = vmatmul.mubr.msk.bf16.gmra.mrb[24].mxu1 %vm2850_vm8, %v9716_v28 }
 0x3ea   : > { %7705 = vmatprep.mubr.msk.bf16.mxu1 %vm2850_vm8, %v9725_v3 }
 0x3f1   : > { %7706 = vmatmul.mubr.msk.bf16.gmra.mrb[28].mxu1 %vm2850_vm8, %v9942_v50 }
 0x3f2   : > { %7717 = vmatprep.mubr.msk.bf16.mxu1 %vm2850_vm8, %v9393_v40  ;;  %v8504_v40 = vld [vmem:[%s10608_s4 + $0xb8] sm:$0xff]  }
 0x3f9   : > { %7718 = vmatmul.mubr.msk.bf16.vlgmr.msra.gmra.mrb[0].mxu1 %vm2850_vm8, %v9390_v54 }
 0x3fa   : > { %7721 = vmatprep.mubr.msk.bf16.mxu1 %vm2850_vm8, %v9415_v30  ;;  %7750 = vmatpush3.bf16.msra.mxu1 %v8501_v51 }
 0x3fb   : > { %7751 = vmatprep.subr.bf16.mxu1 %v8502_v32 }
 0x3fe   : > { %7752 = vmatpush3.bf16.msra.mxu1 %v8502_v32 }
 0x3ff   : > { %7753 = vmatprep.subr.bf16.mxu1 %v8503_v27 }
 0x401   : > { %7722 = vmatmul.mubr.msk.bf16.gmra.mrb[4].mxu1 %vm2850_vm8, %v9412_v39 }
 0x402   : > { %7725 = vmatprep.mubr.msk.bf16.mxu1 %vm2850_vm8, %v9439_v21  ;;  %7754 = vmatpush3.bf16.msra.mxu1 %v8503_v27 }
 0x403   : > { %7755 = vmatprep.subr.bf16.mxu1 %v8504_v40 }
 0x406   : > { %7756 = vmatpush3.bf16.msra.mxu1 %v8504_v40 }
 0x407   : > { %7789 = vmatprep.subr.bf16.mxu1 %v8505_v14 }
 0x409   : > { %7726 = vmatmul.mubr.msk.bf16.gmra.mrb[8].mxu1 %vm2850_vm8, %v9436_v17 }
 0x40a   : > { %7729 = vmatprep.mubr.msk.bf16.mxu1 %vm2850_vm8, %v9456_v45 }
 0x411   : > { %7730 = vmatmul.mubr.msk.bf16.gmra.mrb[12].mxu1 %vm2850_vm8, %v9453_v11 }
 0x412   : > { %7733 = vmatprep.mubr.msk.bf16.mxu1 %vm2850_vm8, %v9472_v33 }
 0x419   : > { %7734 = vmatmul.mubr.msk.bf16.gmra.mrb[16].mxu1 %vm2850_vm8, %v9469_v37 }
 0x41a   : > { %7737 = vmatprep.mubr.msk.bf16.mxu1 %vm2850_vm8, %v9488_v42 }
 0x421   : > { %7738 = vmatmul.mubr.msk.bf16.gmra.mrb[20].mxu1 %vm2850_vm8, %v9485_v22 }
 0x422   : > { %7741 = vmatprep.mubr.msk.bf16.mxu1 %vm2850_vm8, %v9504_v34 }
 0x429   : > { %7742 = vmatmul.mubr.msk.bf16.gmra.mrb[24].mxu1 %vm2850_vm8, %v9501_v62 }
 0x42a   : > { %7745 = vmatprep.mubr.msk.bf16.mxu1 %vm2850_vm8, %v9521_v16 }
 0x431   : > { %7746 = vmatmul.mubr.msk.bf16.gmra.mrb[28].mxu1 %vm2850_vm8, %v9519_v41 }
 0x432   : > { %7757 = vmatprep.mubr.msk.bf16.mxu1 %vm2850_vm8, %v9744_v12  ;;  %v8508_v12 = vld [vmem:[%s10608_s4 + $0xd8] sm:$0xff]  }
 0x439   : > { %7758 = vmatmul.mubr.msk.bf16.vlgmr.msra.gmra.mrb[0].mxu1 %vm2850_vm8, %v9752_v49 }
 0x43a   : > { %7761 = vmatprep.mubr.msk.bf16.mxu1 %vm2850_vm8, %v9771_v4  ;;  %7790 = vmatpush3.bf16.msra.mxu1 %v8505_v14 }
 0x43b   : > { %7791 = vmatprep.subr.bf16.mxu1 %v8506_v15 }
 0x43e   : > { %7792 = vmatpush3.bf16.msra.mxu1 %v8506_v15 }
 0x43f   : > { %7793 = vmatprep.subr.bf16.mxu1 %v8507_v2 }
 0x441   : > { %7762 = vmatmul.mubr.msk.bf16.gmra.mrb[4].mxu1 %vm2850_vm8, %v9779_v20 }
 0x442   : > { %7765 = vmatprep.mubr.msk.bf16.mxu1 %vm2850_vm8, %v9794_v36  ;;  %7794 = vmatpush3.bf16.msra.mxu1 %v8507_v2 }
 0x443   : > { %7795 = vmatprep.subr.bf16.mxu1 %v8508_v12 }
 0x446   : > { %7796 = vmatpush3.bf16.msra.mxu1 %v8508_v12 }
 0x447   : > { %7829 = vmatprep.subr.bf16.mxu1 %v8509_v7 }
 0x449   : > { %7766 = vmatmul.mubr.msk.bf16.gmra.mrb[8].mxu1 %vm2850_vm8, %v9802_v59 }
 0x44a   : > { %7769 = vmatprep.mubr.msk.bf16.mxu1 %vm2850_vm8, %v9814_v48 }
 0x451   : > { %7770 = vmatmul.mubr.msk.bf16.gmra.mrb[12].mxu1 %vm2850_vm8, %v9822_v0 }
 0x452   : > { %7773 = vmatprep.mubr.msk.bf16.mxu1 %vm2850_vm8, %v9834_v58 }
 0x459   : > { %7774 = vmatmul.mubr.msk.bf16.gmra.mrb[16].mxu1 %vm2850_vm8, %v9842_v44 }
 0x45a   : > { %7777 = vmatprep.mubr.msk.bf16.mxu1 %vm2850_vm8, %v9854_v38 }
 0x461   : > { %7778 = vmatmul.mubr.msk.bf16.gmra.mrb[20].mxu1 %vm2850_vm8, %v9862_v6 }
 0x462   : > { %7781 = vmatprep.mubr.msk.bf16.mxu1 %vm2850_vm8, %v9874_v18 }
 0x469   : > { %7782 = vmatmul.mubr.msk.bf16.gmra.mrb[24].mxu1 %vm2850_vm8, %v9882_v1 }
 0x46a   : > { %7785 = vmatprep.mubr.msk.bf16.mxu1 %vm2850_vm8, %v9890_v52 }
 0x471   : > { %7786 = vmatmul.mubr.msk.bf16.gmra.mrb[28].mxu1 %vm2850_vm8, %v10035_v63 }
 0x472   : > { %7797 = vmatprep.mubr.msk.bf16.mxu1 %vm2850_vm8, %v9560_v8  ;;  %v8513_v8 = vld [vmem:[%s10608_s4 + $0x100] sm:$0xff]  }
 0x479   : > { %7798 = vmatmul.mubr.msk.bf16.vlgmr.msra.gmra.mrb[0].mxu1 %vm2850_vm8, %v9583_v55  ;;  %v8515_v55 = vld [vmem:[%s10608_s4 + $0x110] sm:$0xff]  }
 0x47a   : > { %7801 = vmatprep.mubr.msk.bf16.mxu1 %vm2850_vm8, %v9591_v25  ;;  %7830 = vmatpush3.bf16.msra.mxu1 %v8509_v7 }
 0x47b   : > { %7831 = vmatprep.subr.bf16.mxu1 %v8510_v60 }
 0x47e   : > { %7832 = vmatpush3.bf16.msra.mxu1 %v8510_v60 }
 0x47f   : > { %7833 = vmatprep.subr.bf16.mxu1 %v8511_v61 }
 0x481   : > { %7802 = vmatmul.mubr.msk.bf16.gmra.mrb[4].mxu1 %vm2850_vm8, %v9613_v47 }
 0x482   : > { %7805 = vmatprep.mubr.msk.bf16.mxu1 %vm2850_vm8, %v9621_v9  ;;  %7834 = vmatpush3.bf16.msra.mxu1 %v8511_v61 }
 0x483   : > { %7835 = vmatprep.subr.bf16.mxu1 %v8512_v23 }
 0x486   : > { %7836 = vmatpush3.bf16.msra.mxu1 %v8512_v23 }
 0x487   : > { %7869 = vmatprep.subr.bf16.mxu1 %v8513_v8 }
 0x489   : > { %7806 = vmatmul.mubr.msk.bf16.gmra.mrb[8].mxu1 %vm2850_vm8, %v9637_v53 }
 0x48a   : > { %7809 = vmatprep.mubr.msk.bf16.mxu1 %vm2850_vm8, %v9645_v29 }
 0x491   : > { %7810 = vmatmul.mubr.msk.bf16.gmra.mrb[12].mxu1 %vm2850_vm8, %v9661_v35 }
 0x492   : > { %7813 = vmatprep.mubr.msk.bf16.mxu1 %vm2850_vm8, %v9669_v57 }
 0x499   : > { %7814 = vmatmul.mubr.msk.bf16.gmra.mrb[16].mxu1 %vm2850_vm8, %v9685_v13  ;;  %v8514_v13 = vld [vmem:[%s10608_s4 + $0x108] sm:$0xff]  }
 0x49a   : > { %7817 = vmatprep.mubr.msk.bf16.mxu1 %vm2850_vm8, %v9693_v24 }
 0x4a1   : > { %7818 = vmatmul.mubr.msk.bf16.gmra.mrb[20].mxu1 %vm2850_vm8, %v9708_v5 }
 0x4a2   : > { %7821 = vmatprep.mubr.msk.bf16.mxu1 %vm2850_vm8, %v9716_v28 }
 0x4a9   : > { %7822 = vmatmul.mubr.msk.bf16.gmra.mrb[24].mxu1 %vm2850_vm8, %v9725_v3 }
 0x4aa   : > { %7825 = vmatprep.mubr.msk.bf16.mxu1 %vm2850_vm8, %v9942_v50 }
 0x4b1   : > { %7826 = vmatmul.mubr.msk.bf16.gmra.mrb[28].mxu1 %vm2850_vm8, %v8787_v31  ;;  %v8516_v31 = vld [vmem:[%s10608_s4 + $0x118] sm:$0xff]  }
 0x4b2   : > { %7837 = vmatprep.mubr.msk.bf16.mxu1 %vm2850_vm8, %v9390_v54  ;;  %v8585_v54 = vmov 1983009808  }
 0x4b9   : > { %7838 = vmatmul.mubr.msk.bf16.vlgmr.msra.gmra.mrb[0].mxu1 %vm2850_vm8, %v9415_v30  ;;  %v5091_v30 = vlaneseq }
 0x4ba   : > { %7841 = vmatprep.mubr.msk.bf16.mxu1 %vm2850_vm8, %v9412_v39  ;;  %7870 = vmatpush3.bf16.msra.mxu1 %v8513_v8  ;;  %v5089_v39 = vunpack.c.l.s4 %v8585_v54 }
 0x4bb   : > { %7871 = vmatprep.subr.bf16.mxu1 %v8514_v13 }
 0x4be   : > { %7872 = vmatpush3.bf16.msra.mxu1 %v8514_v13 }
 0x4bf   : > { %7873 = vmatprep.subr.bf16.mxu1 %v8515_v55 }
 0x4c1   : > { %7842 = vmatmul.mubr.msk.bf16.gmra.mrb[4].mxu1 %vm2850_vm8, %v9439_v21  ;;  %v10163_v21 = vld [vmem:[%s10610_s6] ss:$0 sm:$0xff] }
 0x4c2   : > { %7845 = vmatprep.mubr.msk.bf16.mxu1 %vm2850_vm8, %v9436_v17  ;;  %7874 = vmatpush3.bf16.msra.mxu1 %v8515_v55 }
 0x4c3   : > { %7875 = vmatprep.subr.bf16.mxu1 %v8516_v31 }
 0x4c6   : > { %7876 = vmatpush3.bf16.msra.mxu1 %v8516_v31 }
 0x4c9   : > { %7846 = vmatmul.mubr.msk.bf16.gmra.mrb[8].mxu1 %vm2850_vm8, %v9456_v45 }
 0x4ca   : > { %7849 = vmatprep.mubr.msk.bf16.mxu1 %vm2850_vm8, %v9453_v11 }
 0x4d1   : > { %7850 = vmatmul.mubr.msk.bf16.gmra.mrb[12].mxu1 %vm2850_vm8, %v9472_v33 }
 0x4d2   : > { %7853 = vmatprep.mubr.msk.bf16.mxu1 %vm2850_vm8, %v9469_v37 }
 0x4d9   : > { %7854 = vmatmul.mubr.msk.bf16.gmra.mrb[16].mxu1 %vm2850_vm8, %v9488_v42  ;;  %v5092_v42 = vshrl.u32 %v5091_v30, 7 }
 0x4da   : > { %7857 = vmatprep.mubr.msk.bf16.mxu1 %vm2850_vm8, %v9485_v22  ;;  %v5090_v22 = vunpack.c.0.s8 %v5089_v39 }
 0x4dc   : > { %v10174_v29 = vsub.s32 %v5090_v22, %v5092_v42 }
 0x4e1   : > { %7858 = vmatmul.mubr.msk.bf16.gmra.mrb[20].mxu1 %vm2850_vm8, %v9504_v34 }
 0x4e2   : > { %7861 = vmatprep.mubr.msk.bf16.mxu1 %vm2850_vm8, %v9501_v62 }
 0x4e9   : > { %7862 = vmatmul.mubr.msk.bf16.gmra.mrb[24].mxu1 %vm2850_vm8, %v9521_v16 }
 0x4ea   : > { %7865 = vmatprep.mubr.msk.bf16.mxu1 %vm2850_vm8, %v9519_v41 }
 0x4f1   : > { %7866 = vmatmul.mubr.bf16.gmra.mrb[28].mxu1 %v10647_v10  ;;  %v10158_v10 = vld [vmem:[%s10609_s5] ss:$0 sm:$0xff] }
 0x4f2   : > { %7877 = vmatprep.mubr.msk.bf16.mxu1 %vm2850_vm8, %v9752_v49 }
 0x4f9   : > { %7878 = vmatmul.mubr.msk.bf16.vlgmr.msra.gmra.mrb[0].mxu1 %vm2850_vm8, %v9771_v4 }
 0x4fa   : > { %7881 = vmatprep.mubr.msk.bf16.mxu1 %vm2850_vm8, %v9779_v20 }
 0x501   : > { %7882 = vmatmul.mubr.msk.bf16.gmra.mrb[4].mxu1 %vm2850_vm8, %v9794_v36 }
 0x502   : > { %7885 = vmatprep.mubr.msk.bf16.mxu1 %vm2850_vm8, %v9802_v59 }
 0x509   : > { %7886 = vmatmul.mubr.msk.bf16.gmra.mrb[8].mxu1 %vm2850_vm8, %v9814_v48 }
 0x50a   : > { %7889 = vmatprep.mubr.msk.bf16.mxu1 %vm2850_vm8, %v9822_v0 }
 0x511   : > { %7890 = vmatmul.mubr.msk.bf16.gmra.mrb[12].mxu1 %vm2850_vm8, %v9834_v58 }
 0x512   : > { %7893 = vmatprep.mubr.msk.bf16.mxu1 %vm2850_vm8, %v9842_v44 }
 0x519   : > { %7894 = vmatmul.mubr.msk.bf16.gmra.mrb[16].mxu1 %vm2850_vm8, %v9854_v38 }
 0x51a   : > { %7897 = vmatprep.mubr.msk.bf16.mxu1 %vm2850_vm8, %v9862_v6 }
 0x521   : > { %7898 = vmatmul.mubr.msk.bf16.gmra.mrb[20].mxu1 %vm2850_vm8, %v9874_v18 }
 0x522   : > { %7901 = vmatprep.mubr.msk.bf16.mxu1 %vm2850_vm8, %v9882_v1 }
 0x529   : > { %7902 = vmatmul.mubr.msk.bf16.gmra.mrb[24].mxu1 %vm2850_vm8, %v9890_v52 }
 0x52a   : > { %7905 = vmatprep.mubr.msk.bf16.mxu1 %vm2850_vm8, %v10035_v63 }
 0x531   : > { %7906 = vmatmul.mubr.msk.bf16.gmra.mrb[28].mxu1 %vm2850_vm8, %v8982_v56 }
 0x5cc   : > { %v7879_v17 = vpop.f32.mrb[0].mxu1 }
 0x5cd   : > { %v4922_v11 = vmul.f32 %v7879_v17, %v10158_v10  ;;  %v4754_v45 = vpop.f32.mrb[1].mxu1 }
 0x5ce   : > { %v4920_v37 = vmul.f32 %v10158_v10, %v4754_v45  ;;  %v7880_v56 = vpop.f32.mrb[2].mxu1 }
 0x5cf   : > { %v4961_v33 = vadd.f32 %v10163_v21, %v4922_v11  ;;  %v4923_v62 = vmul.f32 %v7880_v56, %v10158_v10  ;;  %v4757_v34 = vpop.f32.mrb[3].mxu1 }
 0x5d0   : > { %v4959_v41 = vadd.f32 %v10163_v21, %v4920_v37  ;;  %v4921_v16 = vmul.f32 %v10158_v10, %v4757_v34 }
 0x5d1   : > { %v4993_v25 = vmax.f32 %v4961_v33, 0.0  ;;  %v4962_v47 = vadd.f32 %v10163_v21, %v4923_v62 }
 0x5d2   : > { %v4991_v9 = vmax.f32 %v4959_v41, 0.0  ;;  %v4960_v28 = vadd.f32 %v10163_v21, %v4921_v16 }
 0x5d3   : > { %v5024_v53 = vsel %vm2850_vm8, %v4993_v25, -inf  ;;  %v4994_v35 = vmax.f32 %v4962_v47, 0.0 }
 0x5d4   : > { %v5023_v57 = vsel %vm2850_vm8, %v4991_v9, -inf  ;;  %v4992_v24 = vmax.f32 %v4960_v28, 0.0  ;;  %v7883_v5 = vpop.f32.mrb[4].mxu1 }
 0x5d5   : > { %v5025_v3 = vmax.f32 %v5023_v57, %v5024_v53  ;;  %v5027_v49 = vsel %vm2850_vm8, %v4994_v35, -inf  ;;  %v4926_v4 = vmul.f32 %v7883_v5, %v10158_v10  ;;  %v4770_v20 = vpop.f32.mrb[5].mxu1 }
 0x5d6   : > { %v5026_v36 = vsel %vm2850_vm8, %v4992_v24, -inf  ;;  %v4924_v59 = vmul.f32 %v10158_v10, %v4770_v20  ;;  %v7884_v48 = vpop.f32.mrb[6].mxu1 }
 0x5d7   : > { %v5087_v0 = vcombine.high %v5025_v3, %v5025_v3  ;;  %v5094_v58 = vrot.slane %v5025_v3, %v10174_v29  ;;  %v5028_v44 = vmax.f32 %v5026_v36, %v5027_v49  ;;  %v10183_v38 = vadd.f32 %v10163_v21, %v4926_v4  ;;  %v4773_v6 = vpop.f32.mrb[7].mxu1 }
 0x5d8   : > { %v10186_v18 = vadd.f32 %v10163_v21, %v4924_v59  ;;  %v10189_v1 = vmul.f32 %v7884_v48, %v10158_v10  ;;  %v10192_v52 = vmul.f32 %v10158_v10, %v4773_v6 }
 0x5d9   : > { %v5101_v51 = vrot.slane %v5087_v0, %v10174_v29  ;;  %v5102_v26 = vcombine.high %v5094_v58, %v5094_v58  ;;  %v5424_v46 = vsel %vm5423_vm9, %v5094_v58, -inf  ;;  %v5104_v43 = vcombine.high %v5028_v44, %v5028_v44 }
 0x5da   : > { %v5425_v19 = vrot.slane %v5424_v46, 4  ;;  %v5111_v50 = vrot.slane %v5028_v44, %v10174_v29  ;;  %v4997_v32 = vmax.f32 %v10183_v38, 0.0  ;;  %v4995_v27 = vmax.f32 %v10186_v18, 0.0 }
 0x5db   : > { %v5103_v40 = vcombine.high %v5101_v51, %v5101_v51  ;;  %v5431_v14 = vsel %vm5423_vm9, %v5102_v26, -inf  ;;  %v5438_v15 = vsel %vm5423_vm9, %v5101_v51, -inf  ;;  %v5118_v2 = vrot.slane %v5104_v43, %v10174_v29 }
 0x5dc   : > { %v5426_v12 = vmax.f32 %v5424_v46, %v5425_v19  ;;  %v5432_v7 = vrot.slane %v5431_v14, 4  ;;  %v5439_v63 = vrot.slane %v5438_v15, 4  ;;  %v5119_v60 = vcombine.high %v5111_v50, %v5111_v50  ;;  %v10202_v61 = vpop.f32.mrb[8].mxu1 }
 0x5dd   : > { %v5445_v23 = vsel %vm5423_vm9, %v5103_v40, -inf  ;;  %v5120_v8 = vcombine.high %v5118_v2, %v5118_v2  ;;  %v5452_v13 = vsel %vm5423_vm9, %v5111_v50, -inf  ;;  %v5466_v55 = vsel %vm5423_vm9, %v5118_v2, -inf  ;;  %v10207_v31 = vpop.f32.mrb[9].mxu1 }
 0x5de   : > { %v5427_v54 = vrot.slane %v5426_v12, 2  ;;  %v5433_v39 = vmax.f32 %v5431_v14, %v5432_v7  ;;  %v5440_v30 = vmax.f32 %v5438_v15, %v5439_v63  ;;  %v5446_v17 = vrot.slane %v5445_v23, 4  ;;  %v10209_v11 = vpop.f32.mrb[10].mxu1 }
 0x5df   : > { %v5453_v45 = vrot.slane %v5452_v13, 4  ;;  %v5459_v37 = vsel %vm5423_vm9, %v5119_v60, -inf  ;;  %v5467_v56 = vrot.slane %v5466_v55, 4  ;;  %v5473_v33 = vsel %vm5423_vm9, %v5120_v8, -inf  ;;  %v10213_v22 = vpop.f32.mrb[11].mxu1 }
 0x5e0   : > { %v5428_v42 = vmax.f32 %v5426_v12, %v5427_v54  ;;  %v5434_v62 = vrot.slane %v5433_v39, 2  ;;  %v5441_v34 = vrot.slane %v5440_v30, 2  ;;  %v5447_v41 = vmax.f32 %v5445_v23, %v5446_v17 }
 0x5e1   : > { %v5454_v16 = vmax.f32 %v5452_v13, %v5453_v45  ;;  %v5460_v25 = vrot.slane %v5459_v37, 4  ;;  %v5468_v47 = vmax.f32 %v5466_v55, %v5467_v56  ;;  %v5474_v9 = vrot.slane %v5473_v33, 4 }
 0x5e2   : > { %v5429_v28 = vrot.slane %v5428_v42, 1  ;;  %v5435_v53 = vmax.f32 %v5433_v39, %v5434_v62  ;;  %v5442_v35 = vmax.f32 %v5440_v30, %v5441_v34  ;;  %v5448_v57 = vrot.slane %v5447_v41, 2 }
 0x5e3   : > { %v5455_v24 = vrot.slane %v5454_v16, 2  ;;  %v5461_v5 = vmax.f32 %v5459_v37, %v5460_v25  ;;  %v5469_v3 = vrot.slane %v5468_v47, 2  ;;  %v5475_v49 = vmax.f32 %v5473_v33, %v5474_v9 }
 0x5e4   : > { %v5430_v4 = vmax.f32 %v5428_v42, %v5429_v28  ;;  %v5436_v20 = vrot.slane %v5435_v53, 1  ;;  %v5443_v36 = vrot.slane %v5442_v35, 1  ;;  %v5449_v59 = vmax.f32 %v5447_v41, %v5448_v57  ;;  %v10215_v48 = vpop.f32.mrb[12].mxu1 }
 0x5e5   : > { %v5456_v0 = vmax.f32 %v5454_v16, %v5455_v24  ;;  %v5462_v58 = vrot.slane %v5461_v5, 2  ;;  %v5470_v44 = vmax.f32 %v5468_v47, %v5469_v3  ;;  %v5476_v6 = vrot.slane %v5475_v49, 2  ;;  %v10217_v51 = vpop.f32.mrb[13].mxu1 }
 0x5e6   : > { %v5437_v26 = vmax.f32 %v5435_v53, %v5436_v20  ;;  %v5444_v46 = vmax.f32 %v5442_v35, %v5443_v36  ;;  %v5450_v43 = vrot.slane %v5449_v59, 1  ;;  %v6845_v19 = vpack.c.bf16 %v5430_v4, %v5430_v4  ;;  %v10219_v50 = vpop.f32.mrb[14].mxu1 }
 0x5e7   : > { %v5457_v40 = vrot.slane %v5456_v0, 1  ;;  %v5463_v14 = vmax.f32 %v5461_v5, %v5462_v58  ;;  %v5471_v15 = vrot.slane %v5470_v44, 1  ;;  %v5477_v2 = vmax.f32 %v5475_v49, %v5476_v6  ;;  %v10221_v12 = vpop.f32.mrb[15].mxu1 }
 0x5e8   : > { %v5451_v7 = vmax.f32 %v5449_v59, %v5450_v43  ;;  %v6846_v63 = vpack.c.bf16 %v5437_v26, %v5437_v26  ;;  %v6847_v60 = vpack.c.bf16 %v5444_v46, %v5444_v46  ;;  %v6128_v23 = vunpack.c.l.b16 %v6845_v19 }
 0x5e9   : > { %v5458_v8 = vmax.f32 %v5456_v0, %v5457_v40  ;;  %v5464_v13 = vrot.slane %v5463_v14, 1  ;;  %v5472_v55 = vmax.f32 %v5470_v44, %v5471_v15  ;;  %v5478_v54 = vrot.slane %v5477_v2, 1 }
 0x5ea   : > { %v6848_v39 = vpack.c.bf16 %v5451_v7, %v5451_v7  ;;  %v6129_v30 = vunpack.c.l.b16 %v6846_v63  ;;  %v6130_v17 = vunpack.c.l.b16 %v6847_v60  ;;  %v5030_v45 = vsel %vm2850_vm8, %v4997_v32, -inf }
 0x5eb   : > { %v5465_v37 = vmax.f32 %v5463_v14, %v5464_v13  ;;  %v5479_v56 = vmax.f32 %v5477_v2, %v5478_v54  ;;  %v6849_v33 = vpack.c.bf16 %v5458_v8, %v5458_v8  ;;  %v6851_v42 = vpack.c.bf16 %v5472_v55, %v5472_v55 }
 0x5ec   : > { %v6131_v62 = vunpack.c.l.b16 %v6848_v39  ;;  %v6193_v34 = vsel %vm6192_vm10, %v6129_v30, %v6128_v23  ;;  %v5029_v41 = vsel %vm2850_vm8, %v4995_v27, -inf  ;;  %v4966_v16 = vadd.f32 %v10163_v21, %v10189_v1  ;;  %v10232_v25 = vpop.f32.mrb[16].mxu1 }
 0x5ed   : > { %v6195_v38 = vsel %vm6194_vm11, %v6130_v17, %v6193_v34  ;;  %v6850_v32 = vpack.c.bf16 %v5465_v37, %v5465_v37  ;;  %v6852_v47 = vpack.c.bf16 %v5479_v56, %v5479_v56  ;;  %v6132_v9 = vunpack.c.l.b16 %v6849_v33  ;;  %v10236_v28 = vpop.f32.mrb[17].mxu1 }
 0x5ee   : > { %v6134_v53 = vunpack.c.l.b16 %v6851_v42  ;;  %v6197_v35 = vsel %vm6196_vm12, %v6131_v62, %v6195_v38  ;;  %v5031_v18 = vmax.f32 %v5029_v41, %v5030_v45  ;;  %v4998_v57 = vmax.f32 %v4966_v16, 0.0  ;;  %v10239_v27 = vpop.f32.mrb[18].mxu1 }
 0x5ef   : > { %v6133_v24 = vunpack.c.l.b16 %v6850_v32  ;;  %v6135_v1 = vunpack.c.l.b16 %v6852_v47  ;;  %v6199_v5 = vsel %vm6198_vm13, %v6132_v9, %v6197_v35  ;;  %v4964_v3 = vadd.f32 %v10163_v21, %v10192_v52  ;;  %v10244_v49 = vpop.f32.mrb[19].mxu1 }
 0x5f0   : > { %v5121_v4 = vcombine.high %v5031_v18, %v5031_v18  ;;  %v5128_v20 = vrot.slane %v5031_v18, %v10174_v29  ;;  %v5033_v36 = vsel %vm2850_vm8, %v4998_v57, -inf  ;;  %v4930_v59 = vmul.f32 %v10202_v61, %v10158_v10 }
 0x5f1   : > { %v6201_v0 = vsel %vm6200_vm14, %v6133_v24, %v6199_v5  ;;  %v4996_v58 = vmax.f32 %v4964_v3, 0.0  ;;  %v4928_v44 = vmul.f32 %v10158_v10, %v10207_v31  ;;  %v4931_v52 = vmul.f32 %v10209_v11, %v10158_v10 }
 0x5f2   : > { %v6203_v6 = vsel %vm6202_vm15, %v6134_v53, %v6201_v0  ;;  %v5135_v26 = vrot.slane %v5121_v4, %v10174_v29  ;;  %v5136_v46 = vcombine.high %v5128_v20, %v5128_v20  ;;  %v5480_v43 = vsel %vm5423_vm9, %v5128_v20, -inf }
 0x5f3   : > { %v6205_v19 = vsel %vm6204_vm0, %v6135_v1, %v6203_v6  ;;  %v5481_v40 = vrot.slane %v5480_v43, 4  ;;  %v5032_v61 = vsel %vm2850_vm8, %v4996_v58, -inf  ;;  %v4969_v14 = vadd.f32 %v10163_v21, %v4930_v59 }
 0x5f4   : > { %v6255_v15 = vpack.c.b16 %v6205_v19, %v6205_v19  ;;  %v5137_v2 = vcombine.high %v5135_v26, %v5135_v26  ;;  %v5487_v31 = vsel %vm5423_vm9, %v5136_v46, -inf  ;;  %v5494_v11 = vsel %vm5423_vm9, %v5135_v26, -inf  ;;  %v10265_v7 = vpop.f32.mrb[20].mxu1 }
 0x5f5   : > { %v5482_v63 = vmax.f32 %v5480_v43, %v5481_v40  ;;  %v5488_v60 = vrot.slane %v5487_v31, 4  ;;  %v5495_v23 = vrot.slane %v5494_v11, 4  ;;  %v5034_v8 = vmax.f32 %v5032_v61, %v5033_v36  ;;  %v10267_v13 = vpop.f32.mrb[21].mxu1 }
 0x5f6   : > { %6272 = vst.msk [vmem:[%s10269_s20] sm:$0xf] %vm6271_vm1, %v6255_v15  ;;  %v5501_v55 = vsel %vm5423_vm9, %v5137_v2, -inf  ;;  %v5001_v54 = vmax.f32 %v4969_v14, 0.0  ;;  %v4967_v39 = vadd.f32 %v10163_v21, %v4928_v44  ;;  %v10276_v30 = vadd.f32 %v10163_v21, %v4931_v52  ;;  %v10278_v17 = vpop.f32.mrb[22].mxu1 }
 0x5f7   : > { %v5483_v45 = vrot.slane %v5482_v63, 2  ;;  %v5489_v37 = vmax.f32 %v5487_v31, %v5488_v60  ;;  %v5496_v56 = vmax.f32 %v5494_v11, %v5495_v23  ;;  %v5502_v33 = vrot.slane %v5501_v55, 4  ;;  %v10280_v42 = vpop.f32.mrb[23].mxu1 }
 0x5f8   : > { %v5138_v62 = vcombine.high %v5034_v8, %v5034_v8  ;;  %v5145_v34 = vrot.slane %v5034_v8, %v10174_v29  ;;  %v5036_v41 = vsel %vm2850_vm8, %v5001_v54, -inf  ;;  %v4999_v16 = vmax.f32 %v4967_v39, 0.0 }
 0x5f9   : > { %v5484_v38 = vmax.f32 %v5482_v63, %v5483_v45  ;;  %v5490_v32 = vrot.slane %v5489_v37, 2  ;;  %v5497_v47 = vrot.slane %v5496_v56, 2  ;;  %v5503_v9 = vmax.f32 %v5501_v55, %v5502_v33 }
 0x5fa   : > { %v5152_v53 = vrot.slane %v5138_v62, %v10174_v29  ;;  %v5153_v35 = vcombine.high %v5145_v34, %v5145_v34  ;;  %v5508_v18 = vsel %vm5423_vm9, %v5145_v34, -inf  ;;  %v5035_v57 = vsel %vm2850_vm8, %v4999_v16, -inf }
 0x5fb   : > { %v5485_v24 = vrot.slane %v5484_v38, 1  ;;  %v5491_v1 = vmax.f32 %v5489_v37, %v5490_v32  ;;  %v5498_v5 = vmax.f32 %v5496_v56, %v5497_v47  ;;  %v5504_v3 = vrot.slane %v5503_v9, 2 }
 0x5fc   : > { %v5154_v4 = vcombine.high %v5152_v53, %v5152_v53  ;;  %v5509_v20 = vrot.slane %v5508_v18, 4  ;;  %v5515_v36 = vsel %vm5423_vm9, %v5153_v35, -inf  ;;  %v5522_v59 = vsel %vm5423_vm9, %v5152_v53, -inf  ;;  %v10289_v0 = vpop.f32.mrb[24].mxu1 }
 0x5fd   : > { %v5486_v58 = vmax.f32 %v5484_v38, %v5485_v24  ;;  %v5492_v44 = vrot.slane %v5491_v1, 1  ;;  %v5499_v52 = vrot.slane %v5498_v5, 1  ;;  %v5505_v6 = vmax.f32 %v5503_v9, %v5504_v3  ;;  %v10291_v26 = vpop.f32.mrb[25].mxu1 }
 0x5fe   : > { %v5510_v46 = vmax.f32 %v5508_v18, %v5509_v20  ;;  %v5516_v43 = vrot.slane %v5515_v36, 4  ;;  %v5523_v19 = vrot.slane %v5522_v59, 4  ;;  %v5529_v40 = vsel %vm5423_vm9, %v5154_v4, -inf  ;;  %v10294_v61 = vpop.f32.mrb[26].mxu1 }
 0x5ff   : > { %v5493_v14 = vmax.f32 %v5491_v1, %v5492_v44  ;;  %v5500_v15 = vmax.f32 %v5498_v5, %v5499_v52  ;;  %v5506_v2 = vrot.slane %v5505_v6, 1  ;;  %v6853_v31 = vpack.c.bf16 %v5486_v58, %v5486_v58  ;;  %v10296_v11 = vpop.f32.mrb[27].mxu1 }
 0x600   : > { %v5511_v63 = vrot.slane %v5510_v46, 2  ;;  %v5517_v60 = vmax.f32 %v5515_v36, %v5516_v43  ;;  %v5524_v23 = vmax.f32 %v5522_v59, %v5523_v19  ;;  %v5530_v8 = vrot.slane %v5529_v40, 4 }
 0x601   : > { %v5507_v55 = vmax.f32 %v5505_v6, %v5506_v2  ;;  %v6854_v54 = vpack.c.bf16 %v5493_v14, %v5493_v14  ;;  %v6855_v39 = vpack.c.bf16 %v5500_v15, %v5500_v15  ;;  %v6136_v45 = vunpack.c.l.b16 %v6853_v31 }
 0x602   : > { %v5512_v37 = vmax.f32 %v5510_v46, %v5511_v63  ;;  %v5518_v56 = vrot.slane %v5517_v60, 2  ;;  %v5525_v33 = vrot.slane %v5524_v23, 2  ;;  %v5531_v62 = vmax.f32 %v5529_v40, %v5530_v8 }
 0x603   : > { %v6856_v34 = vpack.c.bf16 %v5507_v55, %v5507_v55  ;;  %v6137_v16 = vunpack.c.l.b16 %v6854_v54  ;;  %v6138_v38 = vunpack.c.l.b16 %v6855_v39  ;;  %v5037_v32 = vmax.f32 %v5035_v57, %v5036_v41 }
 0x604   : > { %v5513_v47 = vrot.slane %v5512_v37, 1  ;;  %v5519_v9 = vmax.f32 %v5517_v60, %v5518_v56  ;;  %v5526_v53 = vmax.f32 %v5524_v23, %v5525_v33  ;;  %v5532_v35 = vrot.slane %v5531_v62, 2  ;;  %v10298_v18 = vpop.f32.mrb[28].mxu1 }
 0x605   : > { %v6139_v24 = vunpack.c.l.b16 %v6856_v34  ;;  %v6206_v1 = vsel %vm6192_vm10, %v6137_v16, %v6136_v45  ;;  %v5155_v5 = vcombine.high %v5037_v32, %v5037_v32  ;;  %v5162_v3 = vrot.slane %v5037_v32, %v10174_v29  ;;  %v10302_v4 = vpop.f32.mrb[29].mxu1 }
 0x606   : > { %v6207_v20 = vsel %vm6194_vm11, %v6138_v38, %v6206_v1  ;;  %v5514_v36 = vmax.f32 %v5512_v37, %v5513_v47  ;;  %v5520_v59 = vrot.slane %v5519_v9, 1  ;;  %v5527_v58 = vrot.slane %v5526_v53, 1 }
 0x607   : > { %v5533_v41 = vmax.f32 %v5531_v62, %v5532_v35  ;;  %v6208_v57 = vsel %vm6196_vm12, %v6139_v24, %v6207_v20  ;;  %v5169_v44 = vrot.slane %v5155_v5, %v10174_v29  ;;  %v5170_v52 = vcombine.high %v5162_v3, %v5162_v3  ;;  %v10312_v62 = vpop.f32.mrb[30].mxu1 }
 0x608   : > { %v5521_v6 = vmax.f32 %v5519_v9, %v5520_v59  ;;  %v5528_v46 = vmax.f32 %v5526_v53, %v5527_v58  ;;  %v6857_v43 = vpack.c.bf16 %v5514_v36, %v5514_v36  ;;  %v5536_v19 = vsel %vm5423_vm9, %v5162_v3, -inf  ;;  %v10314_v47 = vpop.f32.mrb[31].mxu1 }
 0x609   : > { %v5534_v40 = vrot.slane %v5533_v41, 1  ;;  %v5171_v14 = vcombine.high %v5169_v44, %v5169_v44  ;;  %v5537_v15 = vrot.slane %v5536_v19, 4  ;;  %v5543_v2 = vsel %vm5423_vm9, %v5170_v52, -inf }
 0x60a   : > { %v6858_v31 = vpack.c.bf16 %v5521_v6, %v5521_v6  ;;  %v6859_v63 = vpack.c.bf16 %v5528_v46, %v5528_v46  ;;  %v6140_v60 = vunpack.c.l.b16 %v6857_v43  ;;  %v5544_v23 = vrot.slane %v5543_v2, 4 }
 0x60b   : > { %v5535_v8 = vmax.f32 %v5533_v41, %v5534_v40  ;;  %v5538_v55 = vmax.f32 %v5536_v19, %v5537_v15  ;;  %v5550_v54 = vsel %vm5423_vm9, %v5169_v44, -inf  ;;  %v5557_v39 = vsel %vm5423_vm9, %v5171_v14, -inf }
 0x60c   : > { %v6141_v45 = vunpack.c.l.b16 %v6858_v31  ;;  %v6142_v37 = vunpack.c.l.b16 %v6859_v63  ;;  %v6209_v56 = vsel %vm6198_vm13, %v6140_v60, %v6208_v57  ;;  %v5545_v33 = vmax.f32 %v5543_v2, %v5544_v23 }
 0x60d   : > { %v6860_v34 = vpack.c.bf16 %v5535_v8, %v5535_v8  ;;  %v5539_v16 = vrot.slane %v5538_v55, 2  ;;  %v5551_v38 = vrot.slane %v5550_v54, 4  ;;  %v5558_v32 = vrot.slane %v5557_v39, 4 }
 0x60e   : > { %v6210_v9 = vsel %vm6200_vm14, %v6141_v45, %v6209_v56  ;;  %v5546_v53 = vrot.slane %v5545_v33, 2  ;;  %v5002_v35 = vmax.f32 %v10276_v30, 0.0  ;;  %v4929_v24 = vmul.f32 %v10158_v10, %v10213_v22 }
 0x60f   : > { %v6143_v1 = vunpack.c.l.b16 %v6860_v34  ;;  %v6211_v5 = vsel %vm6202_vm15, %v6142_v37, %v6210_v9  ;;  %v5540_v3 = vmax.f32 %v5538_v55, %v5539_v16  ;;  %v5552_v20 = vmax.f32 %v5550_v54, %v5551_v38 }
 0x610   : > { %v5547_v36 = vmax.f32 %v5545_v33, %v5546_v53  ;;  %v5559_v59 = vmax.f32 %v5557_v39, %v5558_v32  ;;  %v5039_v58 = vsel %vm2850_vm8, %v5002_v35, -inf  ;;  %v4968_v41 = vadd.f32 %v10163_v21, %v4929_v24 }
 0x611   : > { %v6212_v57 = vsel %vm6204_vm0, %v6143_v1, %v6211_v5  ;;  %v5541_v44 = vrot.slane %v5540_v3, 1  ;;  %v5553_v52 = vrot.slane %v5552_v20, 2  ;;  %v4934_v30 = vmul.f32 %v10215_v48, %v10158_v10 }
 0x612   : > { %v6256_v22 = vpack.c.b16 %v6212_v57, %v6212_v57  ;;  %v5548_v6 = vrot.slane %v5547_v36, 1  ;;  %v5560_v46 = vrot.slane %v5559_v59, 2  ;;  %v5000_v43 = vmax.f32 %v4968_v41, 0.0 }
 0x613   : > { %v5542_v19 = vmax.f32 %v5540_v3, %v5541_v44  ;;  %v5554_v40 = vmax.f32 %v5552_v20, %v5553_v52  ;;  %v4973_v14 = vadd.f32 %v10163_v21, %v4934_v30  ;;  %v4932_v15 = vmul.f32 %v10158_v10, %v10217_v51 }
 0x614   : > { %6273 = vst.msk [vmem:[%s10269_s20 + $0x4] sm:$0xf] %vm6271_vm1, %v6256_v22  ;;  %v5549_v2 = vmax.f32 %v5547_v36, %v5548_v6  ;;  %v5561_v31 = vmax.f32 %v5559_v59, %v5560_v46  ;;  %v5038_v63 = vsel %vm2850_vm8, %v5000_v43, -inf  ;;  %v4935_v48 = vmul.f32 %v10219_v50, %v10158_v10 }
 0x615   : > { %v5555_v60 = vrot.slane %v5554_v40, 1  ;;  %v6861_v23 = vpack.c.bf16 %v5542_v19, %v5542_v19  ;;  %v5040_v8 = vmax.f32 %v5038_v63, %v5039_v58  ;;  %v5005_v55 = vmax.f32 %v4973_v14, 0.0 }
 0x616   : > { %v5562_v54 = vrot.slane %v5561_v31, 1  ;;  %v6862_v39 = vpack.c.bf16 %v5549_v2, %v5549_v2  ;;  %v4971_v45 = vadd.f32 %v10163_v21, %v4932_v15  ;;  %v4974_v37 = vadd.f32 %v10163_v21, %v4935_v48 }
 0x617   : > { %v5556_v51 = vmax.f32 %v5554_v40, %v5555_v60  ;;  %v6144_v56 = vunpack.c.l.b16 %v6861_v23  ;;  %v5172_v33 = vcombine.high %v5040_v8, %v5040_v8  ;;  %v5179_v34 = vrot.slane %v5040_v8, %v10174_v29 }
 0x618   : > { %v5563_v16 = vmax.f32 %v5561_v31, %v5562_v54  ;;  %v6145_v38 = vunpack.c.l.b16 %v6862_v39  ;;  %v5042_v32 = vsel %vm2850_vm8, %v5005_v55, -inf  ;;  %v5003_v50 = vmax.f32 %v4971_v45, 0.0 }
 0x619   : > { %v6863_v9 = vpack.c.bf16 %v5556_v51, %v5556_v51  ;;  %v5186_v53 = vrot.slane %v5172_v33, %v10174_v29  ;;  %v5187_v35 = vcombine.high %v5179_v34, %v5179_v34  ;;  %v5564_v24 = vsel %vm5423_vm9, %v5179_v34, -inf }
 0x61a   : > { %v6864_v1 = vpack.c.bf16 %v5563_v16, %v5563_v16  ;;  %v6213_v5 = vsel %vm6192_vm10, %v6145_v38, %v6144_v56  ;;  %v5565_v3 = vrot.slane %v5564_v24, 4  ;;  %v5041_v20 = vsel %vm2850_vm8, %v5003_v50, -inf }
 0x61b   : > { %v6146_v36 = vunpack.c.l.b16 %v6863_v9  ;;  %v5188_v59 = vcombine.high %v5186_v53, %v5186_v53  ;;  %v5571_v58 = vsel %vm5423_vm9, %v5187_v35, -inf  ;;  %v5578_v41 = vsel %vm5423_vm9, %v5186_v53, -inf }
 0x61c   : > { %v6147_v57 = vunpack.c.l.b16 %v6864_v1  ;;  %v5566_v44 = vmax.f32 %v5564_v24, %v5565_v3  ;;  %v5572_v52 = vrot.slane %v5571_v58, 4  ;;  %v5579_v30 = vrot.slane %v5578_v41, 4 }
 0x61d   : > { %v6214_v22 = vsel %vm6194_vm11, %v6146_v36, %v6213_v5  ;;  %v5585_v6 = vsel %vm5423_vm9, %v5188_v59, -inf  ;;  %v5043_v46 = vmax.f32 %v5041_v20, %v5042_v32  ;;  %v5006_v43 = vmax.f32 %v4974_v37, 0.0 }
 0x61e   : > { %v5567_v19 = vrot.slane %v5566_v44, 2  ;;  %v5573_v40 = vmax.f32 %v5571_v58, %v5572_v52  ;;  %v5580_v14 = vmax.f32 %v5578_v41, %v5579_v30  ;;  %v5586_v15 = vrot.slane %v5585_v6, 4 }
 0x61f   : > { %v6215_v2 = vsel %vm6196_vm12, %v6147_v57, %v6214_v22  ;;  %v5189_v31 = vcombine.high %v5043_v46, %v5043_v46  ;;  %v5196_v63 = vrot.slane %v5043_v46, %v10174_v29  ;;  %v10349_v48 = vsel %vm2850_vm8, %v5006_v43, -inf }
 0x620   : > { %v5568_v60 = vmax.f32 %v5566_v44, %v5567_v19  ;;  %v5574_v23 = vrot.slane %v5573_v40, 2  ;;  %v5581_v8 = vrot.slane %v5580_v14, 2  ;;  %v5587_v55 = vmax.f32 %v5585_v6, %v5586_v15 }
 0x621   : > { %v5203_v54 = vrot.slane %v5189_v31, %v10174_v29  ;;  %v5204_v39 = vcombine.high %v5196_v63, %v5196_v63  ;;  %v5592_v45 = vsel %vm5423_vm9, %v5196_v63, -inf  ;;  %v4933_v37 = vmul.f32 %v10158_v10, %v10221_v12 }
 0x622   : > { %v5569_v51 = vrot.slane %v5568_v60, 1  ;;  %v5575_v56 = vmax.f32 %v5573_v40, %v5574_v23  ;;  %v5582_v33 = vmax.f32 %v5580_v14, %v5581_v8  ;;  %v5588_v34 = vrot.slane %v5587_v55, 2 }
 0x623   : > { %v5205_v16 = vcombine.high %v5203_v54, %v5203_v54  ;;  %v5593_v38 = vrot.slane %v5592_v45, 4  ;;  %v5599_v32 = vsel %vm5423_vm9, %v5204_v39, -inf  ;;  %v5606_v50 = vsel %vm5423_vm9, %v5203_v54, -inf }
 0x624   : > { %v5570_v9 = vmax.f32 %v5568_v60, %v5569_v51  ;;  %v5576_v53 = vrot.slane %v5575_v56, 1  ;;  %v5583_v35 = vrot.slane %v5582_v33, 1  ;;  %v5589_v24 = vmax.f32 %v5587_v55, %v5588_v34 }
 0x625   : > { %v5594_v1 = vmax.f32 %v5592_v45, %v5593_v38  ;;  %v5600_v5 = vrot.slane %v5599_v32, 4  ;;  %v5607_v3 = vrot.slane %v5606_v50, 4  ;;  %v5613_v20 = vsel %vm5423_vm9, %v5205_v16, -inf }
 0x626   : > { %v5577_v12 = vmax.f32 %v5575_v56, %v5576_v53  ;;  %v5584_v36 = vmax.f32 %v5582_v33, %v5583_v35  ;;  %v5590_v59 = vrot.slane %v5589_v24, 1  ;;  %v6865_v58 = vpack.c.bf16 %v5570_v9, %v5570_v9 }
 0x627   : > { %v5595_v41 = vrot.slane %v5594_v1, 2  ;;  %v5601_v57 = vmax.f32 %v5599_v32, %v5600_v5  ;;  %v5608_v44 = vmax.f32 %v5606_v50, %v5607_v3  ;;  %v5614_v52 = vrot.slane %v5613_v20, 4 }
 0x628   : > { %v5591_v30 = vmax.f32 %v5589_v24, %v5590_v59  ;;  %v6866_v22 = vpack.c.bf16 %v5577_v12, %v5577_v12  ;;  %v6867_v6 = vpack.c.bf16 %v5584_v36, %v5584_v36  ;;  %v6148_v46 = vunpack.c.l.b16 %v6865_v58 }
 0x629   : > { %v5596_v43 = vmax.f32 %v5594_v1, %v5595_v41  ;;  %v5602_v19 = vrot.slane %v5601_v57, 2  ;;  %v5609_v40 = vrot.slane %v5608_v44, 2  ;;  %v5615_v14 = vmax.f32 %v5613_v20, %v5614_v52 }
 0x62a   : > { %v6868_v15 = vpack.c.bf16 %v5591_v30, %v5591_v30  ;;  %v6149_v31 = vunpack.c.l.b16 %v6866_v22  ;;  %v6150_v63 = vunpack.c.l.b16 %v6867_v6  ;;  %v6216_v60 = vsel %vm6198_vm13, %v6148_v46, %v6215_v2 }
 0x62b   : > { %v5597_v23 = vrot.slane %v5596_v43, 1  ;;  %v5603_v8 = vmax.f32 %v5601_v57, %v5602_v19  ;;  %v5610_v55 = vmax.f32 %v5608_v44, %v5609_v40  ;;  %v5616_v54 = vrot.slane %v5615_v14, 2 }
 0x62c   : > { %v6151_v39 = vunpack.c.l.b16 %v6868_v15  ;;  %v6217_v45 = vsel %vm6200_vm14, %v6149_v31, %v6216_v60  ;;  %v4972_v51 = vadd.f32 %v10163_v21, %v4933_v37  ;;  %v4938_v56 = vmul.f32 %v10232_v25, %v10158_v10 }
 0x62d   : > { %v6218_v33 = vsel %vm6202_vm15, %v6150_v63, %v6217_v45  ;;  %v5598_v34 = vmax.f32 %v5596_v43, %v5597_v23  ;;  %v5604_v16 = vrot.slane %v5603_v8, 1  ;;  %v5611_v38 = vrot.slane %v5610_v55, 1 }
 0x62e   : > { %v6219_v2 = vsel %vm6204_vm0, %v6151_v39, %v6218_v33  ;;  %v5617_v32 = vmax.f32 %v5615_v14, %v5616_v54  ;;  %v5004_v50 = vmax.f32 %v4972_v51, 0.0  ;;  %v4977_v9 = vadd.f32 %v10163_v21, %v4938_v56 }
 0x62f   : > { %v6257_v53 = vpack.c.b16 %v6219_v2, %v6219_v2  ;;  %v5605_v35 = vmax.f32 %v5603_v8, %v5604_v16  ;;  %v5612_v24 = vmax.f32 %v5610_v55, %v5611_v38  ;;  %v6869_v1 = vpack.c.bf16 %v5598_v34, %v5598_v34 }
 0x630   : > { %v5618_v37 = vrot.slane %v5617_v32, 1  ;;  %v5044_v5 = vsel %vm2850_vm8, %v5004_v50, -inf  ;;  %v5009_v25 = vmax.f32 %v4977_v9, 0.0  ;;  %v4936_v3 = vmul.f32 %v10158_v10, %v10236_v28 }
 0x631   : > { %6274 = vst.msk [vmem:[%s10269_s20 + $0x8] sm:$0xf] %vm6271_vm1, %v6257_v53  ;;  %v6870_v20 = vpack.c.bf16 %v5605_v35, %v5605_v35  ;;  %v6871_v12 = vpack.c.bf16 %v5612_v24, %v5612_v24  ;;  %v6152_v36 = vunpack.c.l.b16 %v6869_v1  ;;  %v5046_v59 = vmax.f32 %v5044_v5, %v10349_v48 }
 0x632   : > { %v5619_v58 = vmax.f32 %v5617_v32, %v5618_v37  ;;  %v5048_v41 = vsel %vm2850_vm8, %v5009_v25, -inf  ;;  %v4975_v57 = vadd.f32 %v10163_v21, %v4936_v3  ;;  %v4939_v44 = vmul.f32 %v10239_v27, %v10158_v10 }
 0x633   : > { %v6153_v52 = vunpack.c.l.b16 %v6870_v20  ;;  %v6154_v30 = vunpack.c.l.b16 %v6871_v12  ;;  %v5206_v22 = vcombine.high %v5046_v59, %v5046_v59  ;;  %v5213_v28 = vrot.slane %v5046_v59, %v10174_v29 }
 0x634   : > { %v6872_v6 = vpack.c.bf16 %v5619_v58, %v5619_v58  ;;  %v5007_v46 = vmax.f32 %v4975_v57, 0.0  ;;  %v4978_v43 = vadd.f32 %v10163_v21, %v4939_v44  ;;  %v10380_v48 = vmul.f32 %v10158_v10, %v10244_v49 }
 0x635   : > { %v6220_v19 = vsel %vm6192_vm10, %v6153_v52, %v6152_v36  ;;  %v5220_v40 = vrot.slane %v5206_v22, %v10174_v29  ;;  %v5221_v14 = vcombine.high %v5213_v28, %v5213_v28  ;;  %v5620_v27 = vsel %vm5423_vm9, %v5213_v28, -inf }
 0x636   : > { %v6155_v15 = vunpack.c.l.b16 %v6872_v6  ;;  %v6221_v31 = vsel %vm6194_vm11, %v6154_v30, %v6220_v19  ;;  %v5621_v63 = vrot.slane %v5620_v27, 4  ;;  %v5047_v60 = vsel %vm2850_vm8, %v5007_v46, -inf }
 0x637   : > { %v5222_v23 = vcombine.high %v5220_v40, %v5220_v40  ;;  %v5627_v21 = vsel %vm5423_vm9, %v5221_v14, -inf  ;;  %v5634_v8 = vsel %vm5423_vm9, %v5220_v40, -inf  ;;  %v5049_v10 = vmax.f32 %v5047_v60, %v5048_v41 }
 0x638   : > { %v5622_v49 = vmax.f32 %v5620_v27, %v5621_v63  ;;  %v5628_v55 = vrot.slane %v5627_v21, 4  ;;  %v5635_v54 = vrot.slane %v5634_v8, 4  ;;  %v6222_v39 = vsel %vm6196_vm12, %v6155_v15, %v6221_v31 }
 0x639   : > { %v5641_v45 = vsel %vm5423_vm9, %v5222_v23, -inf  ;;  %v5223_v51 = vcombine.high %v5049_v10, %v5049_v10  ;;  %v5230_v56 = vrot.slane %v5049_v10, %v10174_v29  ;;  %v5010_v33 = vmax.f32 %v4978_v43, 0.0 }
 0x63a   : > { %v5623_v34 = vrot.slane %v5622_v49, 2  ;;  %v5629_v16 = vmax.f32 %v5627_v21, %v5628_v55  ;;  %v5636_v38 = vmax.f32 %v5634_v8, %v5635_v54  ;;  %v5642_v2 = vrot.slane %v5641_v45, 4 }
 0x63b   : > { %v5237_v32 = vrot.slane %v5223_v51, %v10174_v29  ;;  %v5238_v50 = vcombine.high %v5230_v56, %v5230_v56  ;;  %v5648_v9 = vsel %vm5423_vm9, %v5230_v56, -inf  ;;  %v10395_v53 = vsel %vm2850_vm8, %v5010_v33, -inf }
 0x63c   : > { %v5624_v35 = vmax.f32 %v5622_v49, %v5623_v34  ;;  %v5630_v24 = vrot.slane %v5629_v16, 2  ;;  %v5637_v1 = vrot.slane %v5636_v38, 2  ;;  %v5643_v37 = vmax.f32 %v5641_v45, %v5642_v2 }
 0x63d   : > { %v5239_v5 = vcombine.high %v5237_v32, %v5237_v32  ;;  %v5649_v25 = vrot.slane %v5648_v9, 4  ;;  %v5655_v3 = vsel %vm5423_vm9, %v5238_v50, -inf  ;;  %v5662_v20 = vsel %vm5423_vm9, %v5237_v32, -inf }
 0x63e   : > { %v5625_v12 = vrot.slane %v5624_v35, 1  ;;  %v5631_v36 = vmax.f32 %v5629_v16, %v5630_v24  ;;  %v5638_v59 = vmax.f32 %v5636_v38, %v5637_v1  ;;  %v5644_v58 = vrot.slane %v5643_v37, 2  ;;  %v10405_v1 = vld [vmem:[%s10610_s6] ss:$0 sm:$0xff] }
 0x63f   : > { %v5650_v41 = vmax.f32 %v5648_v9, %v5649_v25  ;;  %v5656_v57 = vrot.slane %v5655_v3, 4  ;;  %v5663_v44 = vrot.slane %v5662_v20, 4  ;;  %v5669_v52 = vsel %vm5423_vm9, %v5239_v5, -inf  ;;  %v10412_v5 = vld [vmem:[%s10609_s5] ss:$0 sm:$0xff] }
 0x640   : > { %v5626_v30 = vmax.f32 %v5624_v35, %v5625_v12  ;;  %v5632_v22 = vrot.slane %v5631_v36, 1  ;;  %v5639_v28 = vrot.slane %v5638_v59, 1  ;;  %v5645_v6 = vmax.f32 %v5643_v37, %v5644_v58 }
 0x641   : > { %v5651_v46 = vrot.slane %v5650_v41, 2  ;;  %v5657_v43 = vmax.f32 %v5655_v3, %v5656_v57  ;;  %v5664_v19 = vmax.f32 %v5662_v20, %v5663_v44  ;;  %v5670_v40 = vrot.slane %v5669_v52, 4 }
 0x642   : > { %v5633_v14 = vmax.f32 %v5631_v36, %v5632_v22  ;;  %v5640_v27 = vmax.f32 %v5638_v59, %v5639_v28  ;;  %v5646_v15 = vrot.slane %v5645_v6, 1  ;;  %v6873_v31 = vpack.c.bf16 %v5626_v30, %v5626_v30 }
 0x643   : > { %v5652_v63 = vmax.f32 %v5650_v41, %v5651_v46  ;;  %v5658_v60 = vrot.slane %v5657_v43, 2  ;;  %v5665_v23 = vrot.slane %v5664_v19, 2  ;;  %v5671_v21 = vmax.f32 %v5669_v52, %v5670_v40 }
 0x644   : > { %v5647_v8 = vmax.f32 %v5645_v6, %v5646_v15  ;;  %v6874_v10 = vpack.c.bf16 %v5633_v14, %v5633_v14  ;;  %v6875_v49 = vpack.c.bf16 %v5640_v27, %v5640_v27  ;;  %v6156_v55 = vunpack.c.l.b16 %v6873_v31 }
 0x645   : > { %v5653_v54 = vrot.slane %v5652_v63, 1  ;;  %v5659_v45 = vmax.f32 %v5657_v43, %v5658_v60  ;;  %v5666_v51 = vmax.f32 %v5664_v19, %v5665_v23  ;;  %v5672_v56 = vrot.slane %v5671_v21, 2 }
 0x646   : > { %v6876_v33 = vpack.c.bf16 %v5647_v8, %v5647_v8  ;;  %v6157_v34 = vunpack.c.l.b16 %v6874_v10  ;;  %v6158_v16 = vunpack.c.l.b16 %v6875_v49  ;;  %v6223_v38 = vsel %vm6198_vm13, %v6156_v55, %v6222_v39 }
 0x647   : > { %v5654_v2 = vmax.f32 %v5652_v63, %v5653_v54  ;;  %v5660_v32 = vrot.slane %v5659_v45, 1  ;;  %v5667_v50 = vrot.slane %v5666_v51, 1  ;;  %v5673_v9 = vmax.f32 %v5671_v21, %v5672_v56 }
 0x648   : > { %v6159_v35 = vunpack.c.l.b16 %v6876_v33  ;;  %v6224_v24 = vsel %vm6200_vm14, %v6157_v34, %v6223_v38  ;;  %v4976_v37 = vadd.f32 %v10405_v1, %v10380_v48  ;;  %v4942_v39 = vmul.f32 %v10412_v5, %v10265_v7 }
 0x649   : > { %v6225_v25 = vsel %vm6202_vm15, %v6158_v16, %v6224_v24  ;;  %v5661_v3 = vmax.f32 %v5659_v45, %v5660_v32  ;;  %v5668_v20 = vmax.f32 %v5666_v51, %v5667_v50  ;;  %v5674_v12 = vrot.slane %v5673_v9, 1 }
 0x64a   : > { %v6226_v36 = vsel %vm6204_vm0, %v6159_v35, %v6225_v25  ;;  %v6877_v59 = vpack.c.bf16 %v5654_v2, %v5654_v2  ;;  %v5008_v58 = vmax.f32 %v4976_v37, 0.0  ;;  %v4981_v48 = vadd.f32 %v10405_v1, %v4942_v39 }
 0x64b   : > { %v6258_v41 = vpack.c.b16 %v6226_v36, %v6226_v36  ;;  %v5675_v57 = vmax.f32 %v5673_v9, %v5674_v12  ;;  %v6878_v44 = vpack.c.bf16 %v5661_v3, %v5661_v3  ;;  %v6879_v52 = vpack.c.bf16 %v5668_v20, %v5668_v20 }
 0x64c   : > { %v6160_v30 = vunpack.c.l.b16 %v6877_v59  ;;  %v5050_v22 = vsel %vm2850_vm8, %v5008_v58, -inf  ;;  %v5013_v7 = vmax.f32 %v4981_v48, 0.0  ;;  %v4940_v28 = vmul.f32 %v10412_v5, %v10267_v13 }
 0x64d   : > { %6275 = vst.msk [vmem:[%s10269_s20 + $0xc] sm:$0xf] %vm6271_vm1, %v6258_v41  ;;  %v6880_v6 = vpack.c.bf16 %v5675_v57, %v5675_v57  ;;  %v6161_v46 = vunpack.c.l.b16 %v6878_v44  ;;  %v6162_v43 = vunpack.c.l.b16 %v6879_v52  ;;  %v5052_v19 = vmax.f32 %v5050_v22, %v10395_v53 }
 0x64e   : > { %v5054_v40 = vsel %vm2850_vm8, %v5013_v7, -inf  ;;  %v4979_v14 = vadd.f32 %v10405_v1, %v4940_v28  ;;  %v4943_v27 = vmul.f32 %v10412_v5, %v10278_v17  ;;  %v4941_v15 = vmul.f32 %v10412_v5, %v10280_v42 }
 0x64f   : > { %v6163_v31 = vunpack.c.l.b16 %v6880_v6  ;;  %v6227_v13 = vsel %vm6192_vm10, %v6161_v46, %v6160_v30  ;;  %v5240_v63 = vcombine.high %v5052_v19, %v5052_v19  ;;  %v5247_v60 = vrot.slane %v5052_v19, %v10174_v29 }
 0x650   : > { %v6228_v23 = vsel %vm6194_vm11, %v6162_v43, %v6227_v13  ;;  %v5011_v21 = vmax.f32 %v4979_v14, 0.0  ;;  %v4982_v53 = vadd.f32 %v10405_v1, %v4943_v27  ;;  %v4980_v8 = vadd.f32 %v10405_v1, %v4941_v15 }
 0x651   : > { %v5254_v10 = vrot.slane %v5240_v63, %v10174_v29  ;;  %v5255_v49 = vcombine.high %v5247_v60, %v5247_v60  ;;  %v5676_v17 = vsel %vm5423_vm9, %v5247_v60, -inf  ;;  %v10439_v42 = vsel %vm6196_vm12, %v6163_v31, %v6228_v23 }
 0x652   : > { %v5677_v55 = vrot.slane %v5676_v17, 4  ;;  %v5053_v54 = vsel %vm2850_vm8, %v5011_v21, -inf  ;;  %v5014_v45 = vmax.f32 %v4982_v53, 0.0  ;;  %v5012_v51 = vmax.f32 %v4980_v8, 0.0 }
 0x653   : > { %v5256_v56 = vcombine.high %v5254_v10, %v5254_v10  ;;  %v5683_v33 = vsel %vm5423_vm9, %v5255_v49, -inf  ;;  %v5690_v34 = vsel %vm5423_vm9, %v5254_v10, -inf  ;;  %v5055_v16 = vmax.f32 %v5053_v54, %v5054_v40 }
 0x654   : > { %v5678_v38 = vmax.f32 %v5676_v17, %v5677_v55  ;;  %v5684_v2 = vrot.slane %v5683_v33, 4  ;;  %v5691_v32 = vrot.slane %v5690_v34, 4  ;;  %v5057_v50 = vsel %vm2850_vm8, %v5014_v45, -inf }
 0x655   : > { %v5697_v9 = vsel %vm5423_vm9, %v5256_v56, -inf  ;;  %v5257_v35 = vcombine.high %v5055_v16, %v5055_v16  ;;  %v5264_v24 = vrot.slane %v5055_v16, %v10174_v29  ;;  %v5056_v37 = vsel %vm2850_vm8, %v5012_v51, -inf }
 0x656   : > { %v5679_v39 = vrot.slane %v5678_v38, 2  ;;  %v5685_v25 = vmax.f32 %v5683_v33, %v5684_v2  ;;  %v5692_v3 = vmax.f32 %v5690_v34, %v5691_v32  ;;  %v5698_v20 = vrot.slane %v5697_v9, 4 }
 0x657   : > { %v5271_v12 = vrot.slane %v5257_v35, %v10174_v29  ;;  %v5272_v36 = vcombine.high %v5264_v24, %v5264_v24  ;;  %v5704_v59 = vsel %vm5423_vm9, %v5264_v24, -inf  ;;  %v5058_v58 = vmax.f32 %v5056_v37, %v5057_v50 }
 0x658   : > { %v5680_v48 = vmax.f32 %v5678_v38, %v5679_v39  ;;  %v5686_v41 = vrot.slane %v5685_v25, 2  ;;  %v5693_v57 = vrot.slane %v5692_v3, 2  ;;  %v5699_v44 = vmax.f32 %v5697_v9, %v5698_v20 }
 0x659   : > { %v5273_v52 = vcombine.high %v5271_v12, %v5271_v12  ;;  %v5705_v30 = vrot.slane %v5704_v59, 4  ;;  %v5711_v22 = vsel %vm5423_vm9, %v5272_v36, -inf  ;;  %v5718_v7 = vsel %vm5423_vm9, %v5271_v12, -inf }
 0x65a   : > { %v5681_v28 = vrot.slane %v5680_v48, 1  ;;  %v5687_v6 = vmax.f32 %v5685_v25, %v5686_v41  ;;  %v5694_v46 = vmax.f32 %v5692_v3, %v5693_v57  ;;  %v5700_v43 = vrot.slane %v5699_v44, 2 }
 0x65b   : > { %v5706_v19 = vmax.f32 %v5704_v59, %v5705_v30  ;;  %v5712_v40 = vrot.slane %v5711_v22, 4  ;;  %v5719_v14 = vrot.slane %v5718_v7, 4  ;;  %v5725_v27 = vsel %vm5423_vm9, %v5273_v52, -inf }
 0x65c   : > { %v5682_v15 = vmax.f32 %v5680_v48, %v5681_v28  ;;  %v5688_v31 = vrot.slane %v5687_v6, 1  ;;  %v5695_v13 = vrot.slane %v5694_v46, 1  ;;  %v5701_v63 = vmax.f32 %v5699_v44, %v5700_v43 }
 0x65d   : > { %v5707_v60 = vrot.slane %v5706_v19, 2  ;;  %v5713_v23 = vmax.f32 %v5711_v22, %v5712_v40  ;;  %v5720_v21 = vmax.f32 %v5718_v7, %v5719_v14  ;;  %v5726_v53 = vrot.slane %v5725_v27, 4 }
 0x65e   : > { %v5689_v8 = vmax.f32 %v5687_v6, %v5688_v31  ;;  %v5696_v10 = vmax.f32 %v5694_v46, %v5695_v13  ;;  %v5702_v49 = vrot.slane %v5701_v63, 1  ;;  %v6881_v17 = vpack.c.bf16 %v5682_v15, %v5682_v15 }
 0x65f   : > { %v5708_v55 = vmax.f32 %v5706_v19, %v5707_v60  ;;  %v5714_v54 = vrot.slane %v5713_v23, 2  ;;  %v5721_v45 = vrot.slane %v5720_v21, 2  ;;  %v5727_v51 = vmax.f32 %v5725_v27, %v5726_v53 }
 0x660   : > { %v5703_v56 = vmax.f32 %v5701_v63, %v5702_v49  ;;  %v6882_v33 = vpack.c.bf16 %v5689_v8, %v5689_v8  ;;  %v6883_v34 = vpack.c.bf16 %v5696_v10, %v5696_v10  ;;  %v6164_v16 = vunpack.c.l.b16 %v6881_v17 }
 0x661   : > { %v5709_v38 = vrot.slane %v5708_v55, 1  ;;  %v5715_v2 = vmax.f32 %v5713_v23, %v5714_v54  ;;  %v5722_v32 = vmax.f32 %v5720_v21, %v5721_v45  ;;  %v5728_v50 = vrot.slane %v5727_v51, 2 }
 0x662   : > { %v6884_v9 = vpack.c.bf16 %v5703_v56, %v5703_v56  ;;  %v6165_v35 = vunpack.c.l.b16 %v6882_v33  ;;  %v6166_v24 = vunpack.c.l.b16 %v6883_v34  ;;  %v6230_v37 = vsel %vm6198_vm13, %v6164_v16, %v10439_v42 }
 0x663   : > { %v5710_v39 = vmax.f32 %v5708_v55, %v5709_v38  ;;  %v5716_v25 = vrot.slane %v5715_v2, 1  ;;  %v5723_v3 = vrot.slane %v5722_v32, 1  ;;  %v5729_v20 = vmax.f32 %v5727_v51, %v5728_v50 }
 0x664   : > { %v6167_v12 = vunpack.c.l.b16 %v6884_v9  ;;  %v6231_v36 = vsel %vm6200_vm14, %v6165_v35, %v6230_v37  ;;  %v5274_v59 = vcombine.high %v5058_v58, %v5058_v58  ;;  %v5281_v48 = vrot.slane %v5058_v58, %v10174_v29 }
 0x665   : > { %v6232_v41 = vsel %vm6202_vm15, %v6166_v24, %v6231_v36  ;;  %v5717_v57 = vmax.f32 %v5715_v2, %v5716_v25  ;;  %v5724_v44 = vmax.f32 %v5722_v32, %v5723_v3  ;;  %v5730_v52 = vrot.slane %v5729_v20, 1 }
 0x666   : > { %v6233_v30 = vsel %vm6204_vm0, %v6167_v12, %v6232_v41  ;;  %v6885_v22 = vpack.c.bf16 %v5710_v39, %v5710_v39  ;;  %v5288_v42 = vrot.slane %v5274_v59, %v10174_v29  ;;  %v5289_v7 = vcombine.high %v5281_v48, %v5281_v48 }
 0x667   : > { %v6259_v28 = vpack.c.b16 %v6233_v30, %v6233_v30  ;;  %v5731_v6 = vmax.f32 %v5729_v20, %v5730_v52  ;;  %v6886_v46 = vpack.c.bf16 %v5717_v57, %v5717_v57  ;;  %v6887_v43 = vpack.c.bf16 %v5724_v44, %v5724_v44 }
 0x668   : > { %v6168_v19 = vunpack.c.l.b16 %v6885_v22  ;;  %v5290_v40 = vcombine.high %v5288_v42, %v5288_v42  ;;  %v5732_v58 = vsel %vm5423_vm9, %v5281_v48, -inf  ;;  %v5739_v14 = vsel %vm5423_vm9, %v5289_v7, -inf }
 0x669   : > { %6276 = vst.msk [vmem:[%s10269_s20 + $0x10] sm:$0xf] %vm6271_vm1, %v6259_v28  ;;  %v6888_v27 = vpack.c.bf16 %v5731_v6, %v5731_v6  ;;  %v6169_v15 = vunpack.c.l.b16 %v6886_v46  ;;  %v6170_v31 = vunpack.c.l.b16 %v6887_v43  ;;  %v5733_v13 = vrot.slane %v5732_v58, 4 }
 0x66a   : > { %v5740_v63 = vrot.slane %v5739_v14, 4  ;;  %v5746_v60 = vsel %vm5423_vm9, %v5288_v42, -inf  ;;  %v5753_v23 = vsel %vm5423_vm9, %v5290_v40, -inf  ;;  %v4946_v21 = vmul.f32 %v10412_v5, %v10289_v0 }
 0x66b   : > { %v6234_v53 = vsel %vm6192_vm10, %v6169_v15, %v6168_v19  ;;  %v5734_v8 = vmax.f32 %v5732_v58, %v5733_v13  ;;  %v5747_v10 = vrot.slane %v5746_v60, 4  ;;  %v6171_v49 = vunpack.c.l.b16 %v6888_v27 }
 0x66c   : > { %v5741_v17 = vmax.f32 %v5739_v14, %v5740_v63  ;;  %v5754_v55 = vrot.slane %v5753_v23, 4  ;;  %v4985_v54 = vadd.f32 %v10405_v1, %v4946_v21  ;;  %v6235_v45 = vsel %vm6194_vm11, %v6170_v31, %v6234_v53 }
 0x66d   : > { %v5735_v51 = vrot.slane %v5734_v8, 2  ;;  %v5748_v56 = vmax.f32 %v5746_v60, %v5747_v10  ;;  %v4944_v33 = vmul.f32 %v10412_v5, %v10291_v26  ;;  %v4947_v0 = vmul.f32 %v10412_v5, %v10294_v61 }
 0x66e   : > { %v5742_v34 = vrot.slane %v5741_v17, 2  ;;  %v5755_v16 = vmax.f32 %v5753_v23, %v5754_v55  ;;  %v5017_v38 = vmax.f32 %v4985_v54, 0.0  ;;  %v4945_v9 = vmul.f32 %v10412_v5, %v10296_v11 }
 0x66f   : > { %v5736_v2 = vmax.f32 %v5734_v8, %v5735_v51  ;;  %v5749_v32 = vrot.slane %v5748_v56, 2  ;;  %v4983_v50 = vadd.f32 %v10405_v1, %v4944_v33  ;;  %v4986_v39 = vadd.f32 %v10405_v1, %v4947_v0 }
 0x670   : > { %v5743_v35 = vmax.f32 %v5741_v17, %v5742_v34  ;;  %v5756_v24 = vrot.slane %v5755_v16, 2  ;;  %v5060_v37 = vsel %vm2850_vm8, %v5017_v38, -inf  ;;  %v4984_v20 = vadd.f32 %v10405_v1, %v4945_v9 }
 0x671   : > { %v5737_v26 = vrot.slane %v5736_v2, 1  ;;  %v5750_v25 = vmax.f32 %v5748_v56, %v5749_v32  ;;  %v5015_v3 = vmax.f32 %v4983_v50, 0.0  ;;  %v5018_v36 = vmax.f32 %v4986_v39, 0.0 }
 0x672   : > { %v5744_v12 = vrot.slane %v5743_v35, 1  ;;  %v5757_v61 = vmax.f32 %v5755_v16, %v5756_v24  ;;  %v4950_v59 = vmul.f32 %v10412_v5, %v10298_v18  ;;  %v5016_v57 = vmax.f32 %v4984_v20, 0.0 }
 0x673   : > { %v5738_v48 = vmax.f32 %v5736_v2, %v5737_v26  ;;  %v5751_v41 = vrot.slane %v5750_v25, 1  ;;  %v5059_v11 = vsel %vm2850_vm8, %v5015_v3, -inf  ;;  %v5063_v22 = vsel %vm2850_vm8, %v5018_v36, -inf }
 0x674   : > { %v5745_v44 = vmax.f32 %v5743_v35, %v5744_v12  ;;  %v5758_v52 = vrot.slane %v5757_v61, 1  ;;  %v5061_v30 = vmax.f32 %v5059_v11, %v5060_v37  ;;  %v6236_v28 = vsel %vm6196_vm12, %v6171_v49, %v6235_v45 }
 0x675   : > { %v5752_v42 = vmax.f32 %v5750_v25, %v5751_v41  ;;  %v6889_v7 = vpack.c.bf16 %v5738_v48, %v5738_v48  ;;  %v5062_v6 = vsel %vm2850_vm8, %v5016_v57, -inf  ;;  %v10489_v27 = vadd.f32 %v10405_v1, %v4950_v59 }
 0x676   : > { %v5759_v46 = vmax.f32 %v5757_v61, %v5758_v52  ;;  %v6890_v43 = vpack.c.bf16 %v5745_v44, %v5745_v44  ;;  %v5291_v19 = vcombine.high %v5061_v30, %v5061_v30  ;;  %v5298_v18 = vrot.slane %v5061_v30, %v10174_v29 }
 0x677   : > { %v6891_v40 = vpack.c.bf16 %v5752_v42, %v5752_v42  ;;  %v6172_v58 = vunpack.c.l.b16 %v6889_v7  ;;  %v5064_v14 = vmax.f32 %v5062_v6, %v5063_v22 }
 0x678   : > { %v6892_v15 = vpack.c.bf16 %v5759_v46, %v5759_v46  ;;  %v6173_v31 = vunpack.c.l.b16 %v6890_v43  ;;  %v5305_v13 = vrot.slane %v5291_v19, %v10174_v29  ;;  %v5306_v63 = vcombine.high %v5298_v18, %v5298_v18 }
 0x679   : > { %v6174_v60 = vunpack.c.l.b16 %v6891_v40  ;;  %v6237_v23 = vsel %vm6198_vm13, %v6172_v58, %v6236_v28  ;;  %v5760_v21 = vsel %vm5423_vm9, %v5298_v18, -inf  ;;  %v5308_v53 = vcombine.high %v5064_v14, %v5064_v14 }
 0x67a   : > { %v6175_v8 = vunpack.c.l.b16 %v6892_v15  ;;  %v6238_v10 = vsel %vm6200_vm14, %v6173_v31, %v6237_v23  ;;  %v5307_v49 = vcombine.high %v5305_v13, %v5305_v13  ;;  %v5761_v17 = vrot.slane %v5760_v21, 4 }
 0x67b   : > { %v6239_v55 = vsel %vm6202_vm15, %v6174_v60, %v6238_v10  ;;  %v5767_v54 = vsel %vm5423_vm9, %v5306_v63, -inf  ;;  %v5774_v45 = vsel %vm5423_vm9, %v5305_v13, -inf  ;;  %v5315_v51 = vrot.slane %v5064_v14, %v10174_v29 }
 0x67c   : > { %v6240_v56 = vsel %vm6204_vm0, %v6175_v8, %v6239_v55  ;;  %v5762_v33 = vmax.f32 %v5760_v21, %v5761_v17  ;;  %v5768_v34 = vrot.slane %v5767_v54, 4  ;;  %v5775_v16 = vrot.slane %v5774_v45, 4 }
 0x67d   : > { %v6260_v38 = vpack.c.b16 %v6240_v56, %v6240_v56  ;;  %v5781_v0 = vsel %vm5423_vm9, %v5307_v49, -inf  ;;  %v5322_v2 = vrot.slane %v5308_v53, %v10174_v29  ;;  %v5323_v32 = vcombine.high %v5315_v51, %v5315_v51 }
 0x67e   : > { %v5763_v50 = vrot.slane %v5762_v33, 2  ;;  %v5769_v9 = vmax.f32 %v5767_v54, %v5768_v34  ;;  %v5776_v35 = vmax.f32 %v5774_v45, %v5775_v16  ;;  %v5782_v24 = vrot.slane %v5781_v0, 4 }
 0x67f   : > { %6277 = vst.msk [vmem:[%s10269_s20 + $0x14] sm:$0xf] %vm6271_vm1, %v6260_v38  ;;  %v5324_v37 = vcombine.high %v5322_v2, %v5322_v2  ;;  %v5788_v39 = vsel %vm5423_vm9, %v5315_v51, -inf  ;;  %v5795_v26 = vsel %vm5423_vm9, %v5323_v32, -inf  ;;  %v5802_v25 = vsel %vm5423_vm9, %v5322_v2, -inf }
 0x680   : > { %v5764_v3 = vmax.f32 %v5762_v33, %v5763_v50  ;;  %v5770_v20 = vrot.slane %v5769_v9, 2  ;;  %v5777_v12 = vrot.slane %v5776_v35, 2  ;;  %v5783_v61 = vmax.f32 %v5781_v0, %v5782_v24 }
 0x681   : > { %v5789_v36 = vrot.slane %v5788_v39, 4  ;;  %v5796_v59 = vrot.slane %v5795_v26, 4  ;;  %v5803_v48 = vrot.slane %v5802_v25, 4  ;;  %v5809_v41 = vsel %vm5423_vm9, %v5324_v37, -inf }
 0x682   : > { %v5765_v11 = vrot.slane %v5764_v3, 1  ;;  %v5771_v57 = vmax.f32 %v5769_v9, %v5770_v20  ;;  %v5778_v44 = vmax.f32 %v5776_v35, %v5777_v12  ;;  %v5784_v52 = vrot.slane %v5783_v61, 2 }
 0x683   : > { %v5790_v30 = vmax.f32 %v5788_v39, %v5789_v36  ;;  %v5797_v22 = vmax.f32 %v5795_v26, %v5796_v59  ;;  %v5804_v42 = vmax.f32 %v5802_v25, %v5803_v48  ;;  %v5810_v7 = vrot.slane %v5809_v41, 4 }
 0x684   : > { %v5766_v28 = vmax.f32 %v5764_v3, %v5765_v11  ;;  %v5772_v6 = vrot.slane %v5771_v57, 1  ;;  %v5779_v46 = vrot.slane %v5778_v44, 1  ;;  %v5785_v43 = vmax.f32 %v5783_v61, %v5784_v52 }
 0x685   : > { %v5791_v19 = vrot.slane %v5790_v30, 2  ;;  %v5798_v18 = vrot.slane %v5797_v22, 2  ;;  %v5805_v40 = vrot.slane %v5804_v42, 2  ;;  %v5811_v58 = vmax.f32 %v5809_v41, %v5810_v7 }
 0x686   : > { %v5773_v14 = vmax.f32 %v5771_v57, %v5772_v6  ;;  %v5780_v15 = vmax.f32 %v5778_v44, %v5779_v46  ;;  %v5786_v31 = vrot.slane %v5785_v43, 1  ;;  %v6893_v13 = vpack.c.bf16 %v5766_v28, %v5766_v28 }
 0x687   : > { %v5792_v63 = vmax.f32 %v5790_v30, %v5791_v19  ;;  %v5799_v60 = vmax.f32 %v5797_v22, %v5798_v18  ;;  %v5806_v23 = vmax.f32 %v5804_v42, %v5805_v40  ;;  %v5812_v21 = vrot.slane %v5811_v58, 2 }
 0x688   : > { %v5787_v53 = vmax.f32 %v5785_v43, %v5786_v31  ;;  %v6894_v8 = vpack.c.bf16 %v5773_v14, %v5773_v14  ;;  %v6895_v10 = vpack.c.bf16 %v5780_v15, %v5780_v15  ;;  %v5021_v49 = vmax.f32 %v10489_v27, 0.0 }
 0x689   : > { %v5793_v17 = vrot.slane %v5792_v63, 1  ;;  %v5800_v55 = vrot.slane %v5799_v60, 1  ;;  %v5807_v54 = vrot.slane %v5806_v23, 1  ;;  %v5813_v45 = vmax.f32 %v5811_v58, %v5812_v21 }
 0x68a   : > { %v6896_v51 = vpack.c.bf16 %v5787_v53, %v5787_v53  ;;  %v6176_v56 = vunpack.c.l.b16 %v6893_v13  ;;  %v6177_v33 = vunpack.c.l.b16 %v6894_v8  ;;  %v6178_v34 = vunpack.c.l.b16 %v6895_v10 }
 0x68b   : > { %v5794_v16 = vmax.f32 %v5792_v63, %v5793_v17  ;;  %v5801_v38 = vmax.f32 %v5799_v60, %v5800_v55  ;;  %v5808_v0 = vmax.f32 %v5806_v23, %v5807_v54  ;;  %v5814_v2 = vrot.slane %v5813_v45, 1 }
 0x68c   : > { %v6179_v32 = vunpack.c.l.b16 %v6896_v51  ;;  %v6241_v50 = vsel %vm6192_vm10, %v6177_v33, %v6176_v56  ;;  %v4948_v9 = vmul.f32 %v10412_v5, %v10302_v4  ;;  %v4951_v27 = vmul.f32 %v10412_v5, %v10312_v62 }
 0x68d   : > { %v6242_v35 = vsel %vm6194_vm11, %v6178_v34, %v6241_v50  ;;  %v5815_v24 = vmax.f32 %v5813_v45, %v5814_v2  ;;  %v6897_v37 = vpack.c.bf16 %v5794_v16, %v5794_v16  ;;  %v6898_v39 = vpack.c.bf16 %v5801_v38, %v5801_v38 }
 0x68e   : > { %v6899_v26 = vpack.c.bf16 %v5808_v0, %v5808_v0  ;;  %v6243_v25 = vsel %vm6196_vm12, %v6179_v32, %v6242_v35  ;;  %v4987_v3 = vadd.f32 %v10405_v1, %v4948_v9  ;;  %v4990_v20 = vadd.f32 %v10405_v1, %v4951_v27 }
 0x68f   : > { %v6900_v12 = vpack.c.bf16 %v5815_v24, %v5815_v24  ;;  %v6180_v61 = vunpack.c.l.b16 %v6897_v37  ;;  %v4949_v4 = vmul.f32 %v10412_v5, %v10314_v47  ;;  %v6181_v36 = vunpack.c.l.b16 %v6898_v39 }
 0x690   : > { %v5066_v62 = vsel %vm2850_vm8, %v5021_v49, -inf  ;;  %v5019_v59 = vmax.f32 %v4987_v3, 0.0  ;;  %v5022_v48 = vmax.f32 %v4990_v20, 0.0  ;;  %v6182_v41 = vunpack.c.l.b16 %v6899_v26 }
 0x691   : > { %v6244_v11 = vsel %vm6198_vm13, %v6180_v61, %v6243_v25  ;;  %v4988_v57 = vadd.f32 %v10405_v1, %v4949_v4  ;;  %v6183_v44 = vunpack.c.l.b16 %v6900_v12 }
 0x692   : > { %v6245_v52 = vsel %vm6200_vm14, %v6181_v36, %v6244_v11  ;;  %v5065_v30 = vsel %vm2850_vm8, %v5019_v59, -inf  ;;  %v5069_v47 = vsel %vm2850_vm8, %v5022_v48, -inf }
 0x693   : > { %v6246_v22 = vsel %vm6202_vm15, %v6182_v41, %v6245_v52  ;;  %v5067_v42 = vmax.f32 %v5065_v30, %v5066_v62  ;;  %v5020_v5 = vmax.f32 %v4988_v57, 0.0 }
 0x694   : > { %v6247_v7 = vsel %vm6204_vm0, %v6183_v44, %v6246_v22 }
 0x695   : > { %v6261_v28 = vpack.c.b16 %v6247_v7, %v6247_v7  ;;  %v5325_v6 = vcombine.high %v5067_v42, %v5067_v42  ;;  %v5332_v46 = vrot.slane %v5067_v42, %v10174_v29  ;;  %v5068_v43 = vsel %vm2850_vm8, %v5020_v5, -inf }
 0x696   : > { %v5070_v1 = vmax.f32 %v5068_v43, %v5069_v47 }
 0x697   : > { %6278 = vst.msk [vmem:[%s10269_s20 + $0x18] sm:$0xf] %vm6271_vm1, %v6261_v28  ;;  %v5339_v19 = vrot.slane %v5325_v6, %v10174_v29  ;;  %v5340_v18 = vcombine.high %v5332_v46, %v5332_v46  ;;  %v5816_v40 = vsel %vm5423_vm9, %v5332_v46, -inf }
 0x698   : > { %v5817_v58 = vrot.slane %v5816_v40, 4  ;;  %v5342_v14 = vcombine.high %v5070_v1, %v5070_v1  ;;  %v5349_v15 = vrot.slane %v5070_v1, %v10174_v29 }
 0x699   : > { %v5341_v31 = vcombine.high %v5339_v19, %v5339_v19  ;;  %v5823_v13 = vsel %vm5423_vm9, %v5340_v18, -inf  ;;  %v5830_v63 = vsel %vm5423_vm9, %v5339_v19, -inf }
 0x69a   : > { %v5818_v60 = vmax.f32 %v5816_v40, %v5817_v58  ;;  %v5824_v23 = vrot.slane %v5823_v13, 4  ;;  %v5831_v21 = vrot.slane %v5830_v63, 4  ;;  %v5356_v53 = vrot.slane %v5342_v14, %v10174_v29 }
 0x69b   : > { %v5837_v8 = vsel %vm5423_vm9, %v5341_v31, -inf  ;;  %v5357_v10 = vcombine.high %v5349_v15, %v5349_v15  ;;  %v5844_v49 = vsel %vm5423_vm9, %v5349_v15, -inf }
 0x69c   : > { %v5819_v17 = vrot.slane %v5818_v60, 2  ;;  %v5825_v55 = vmax.f32 %v5823_v13, %v5824_v23  ;;  %v5832_v54 = vmax.f32 %v5830_v63, %v5831_v21  ;;  %v5838_v45 = vrot.slane %v5837_v8, 4 }
 0x69d   : > { %v5358_v51 = vcombine.high %v5356_v53, %v5356_v53  ;;  %v5845_v56 = vrot.slane %v5844_v49, 4  ;;  %v5851_v33 = vsel %vm5423_vm9, %v5357_v10, -inf  ;;  %v5858_v34 = vsel %vm5423_vm9, %v5356_v53, -inf }
 0x69e   : > { %v5820_v16 = vmax.f32 %v5818_v60, %v5819_v17  ;;  %v5826_v38 = vrot.slane %v5825_v55, 2  ;;  %v5833_v0 = vrot.slane %v5832_v54, 2  ;;  %v5839_v2 = vmax.f32 %v5837_v8, %v5838_v45 }
 0x69f   : > { %v5846_v29 = vmax.f32 %v5844_v49, %v5845_v56  ;;  %v5852_v32 = vrot.slane %v5851_v33, 4  ;;  %v5859_v50 = vrot.slane %v5858_v34, 4  ;;  %v5865_v9 = vsel %vm5423_vm9, %v5358_v51, -inf }
 0x6a0   : > { %v5821_v27 = vrot.slane %v5820_v16, 1  ;;  %v5827_v35 = vmax.f32 %v5825_v55, %v5826_v38  ;;  %v5834_v24 = vmax.f32 %v5832_v54, %v5833_v0  ;;  %v5840_v37 = vrot.slane %v5839_v2, 2 }
 0x6a1   : > { %v5847_v39 = vrot.slane %v5846_v29, 2  ;;  %v5853_v26 = vmax.f32 %v5851_v33, %v5852_v32  ;;  %v5860_v25 = vmax.f32 %v5858_v34, %v5859_v50  ;;  %v5866_v3 = vrot.slane %v5865_v9, 4 }
 0x6a2   : > { %v5822_v20 = vmax.f32 %v5820_v16, %v5821_v27  ;;  %v5828_v12 = vrot.slane %v5827_v35, 1  ;;  %v5835_v61 = vrot.slane %v5834_v24, 1  ;;  %v5841_v4 = vmax.f32 %v5839_v2, %v5840_v37 }
 0x6a3   : > { %v5848_v36 = vmax.f32 %v5846_v29, %v5847_v39  ;;  %v5854_v62 = vrot.slane %v5853_v26, 2  ;;  %v5861_v59 = vrot.slane %v5860_v25, 2  ;;  %v5867_v48 = vmax.f32 %v5865_v9, %v5866_v3 }
 0x6a4   : > { %v5829_v41 = vmax.f32 %v5827_v35, %v5828_v12  ;;  %v5836_v11 = vmax.f32 %v5834_v24, %v5835_v61  ;;  %v5842_v57 = vrot.slane %v5841_v4, 1  ;;  %v6901_v44 = vpack.c.bf16 %v5822_v20, %v5822_v20 }
 0x6a5   : > { %v5849_v52 = vrot.slane %v5848_v36, 1  ;;  %v5855_v30 = vmax.f32 %v5853_v26, %v5854_v62  ;;  %v5862_v22 = vmax.f32 %v5860_v25, %v5861_v59  ;;  %v5868_v42 = vrot.slane %v5867_v48, 2 }
 0x6a6   : > { %v5843_v47 = vmax.f32 %v5841_v4, %v5842_v57  ;;  %v6902_v5 = vpack.c.bf16 %v5829_v41, %v5829_v41  ;;  %v6903_v7 = vpack.c.bf16 %v5836_v11, %v5836_v11  ;;  %v6184_v19 = vunpack.c.l.b16 %v6901_v44 }
 0x6a7   : > { %v5850_v28 = vmax.f32 %v5848_v36, %v5849_v52  ;;  %v5856_v6 = vrot.slane %v5855_v30, 1  ;;  %v5863_v46 = vrot.slane %v5862_v22, 1  ;;  %v5869_v43 = vmax.f32 %v5867_v48, %v5868_v42 }
 0x6a8   : > { %v6904_v1 = vpack.c.bf16 %v5843_v47, %v5843_v47  ;;  %v6185_v18 = vunpack.c.l.b16 %v6902_v5  ;;  %v6186_v40 = vunpack.c.l.b16 %v6903_v7 }
 0x6a9   : > { %v5857_v58 = vmax.f32 %v5855_v30, %v5856_v6  ;;  %v5864_v14 = vmax.f32 %v5862_v22, %v5863_v46  ;;  %v5870_v15 = vrot.slane %v5869_v43, 1  ;;  %v6905_v31 = vpack.c.bf16 %v5850_v28, %v5850_v28 }
 0x6aa   : > { %v6187_v13 = vunpack.c.l.b16 %v6904_v1  ;;  %v6248_v63 = vsel %vm6192_vm10, %v6185_v18, %v6184_v19 }
 0x6ab   : > { %v6249_v60 = vsel %vm6194_vm11, %v6186_v40, %v6248_v63  ;;  %v5871_v23 = vmax.f32 %v5869_v43, %v5870_v15  ;;  %v6906_v21 = vpack.c.bf16 %v5857_v58, %v5857_v58  ;;  %v6907_v53 = vpack.c.bf16 %v5864_v14, %v5864_v14 }
 0x6ac   : > { %v6188_v8 = vunpack.c.l.b16 %v6905_v31  ;;  %v6250_v10 = vsel %vm6196_vm12, %v6187_v13, %v6249_v60 }
 0x6ad   : > { %v6908_v49 = vpack.c.bf16 %v5871_v23, %v5871_v23  ;;  %v6189_v17 = vunpack.c.l.b16 %v6906_v21  ;;  %v6190_v55 = vunpack.c.l.b16 %v6907_v53 }
 0x6ae   : > { %v6251_v54 = vsel %vm6198_vm13, %v6188_v8, %v6250_v10 }
 0x6af   : > { %v6191_v45 = vunpack.c.l.b16 %v6908_v49  ;;  %v6252_v51 = vsel %vm6200_vm14, %v6189_v17, %v6251_v54 }
 0x6b0   : > { %v6253_v56 = vsel %vm6202_vm15, %v6190_v55, %v6252_v51 }
 0x6b1   : > { %v6254_v33 = vsel %vm6204_vm0, %v6191_v45, %v6253_v56 }
 0x6b2   : > { %v6262_v34 = vpack.c.b16 %v6254_v33, %v6254_v33 }
 0x6b4   : > { %6279 = vst.msk [vmem:[%s10269_s20 + $0x1c] sm:$0xf] %vm6271_vm1, %v6262_v34 }
 0x6b5   : > { %8532 = shalt.err (!%p8529_p3)
}
 0x6b6   : > { %s8533_s18 = scalar_lea.hbm %s10555_s15, 512  ;;  %s8537_s23 = scalar_lea.hbm %s10611_s7, 1024 }
 0x6b7   : > { %p8534_p4 = scmp.ne.s32.totalorder %s10555_s15, %s8533_s18  ;;  %p8538_p9 = scmp.lt.u32.totalorder %s10555_s15, %s10611_s7 }
 0x6b8   : > { %p8539_p10 = scmp.lt.u32.totalorder %s8537_s23, %s8533_s18  ;;  %p8541_p12 = scmp.lt.u32.totalorder %s8533_s18, %s10555_s15 }
 0x6b9   : > { %p8535_p7 = pnand %p8534_p4, %p8667_p5 }
 0x6ba   : > { %p8540_p11 = por %p8539_p10, %p8538_p9 }
 0x6bb   : > { %p8536_p8 = pneg %p8535_p7 }
 0x6bc   : > { %p8542_p13 = por %p8541_p12, %p8540_p11 }
 0x6be   : > { %p8543_p0 = pnand %p8542_p13, %p8536_p8 }
 0x6c0   : > { %8546 = shalt.err (!%p8543_p0)
}
 0x6c1   : > { %s8587_s13 = smov 64   ;;  %s8588_s14 = smov 4  }
 0x6c2   : > { %8421 = dma.vmem_to_hbm [thread:$0]  (%p8667_p5), %s10557_s9, 512, %s10555_s15, %s10563_s28, %s8587_s13, %s8587_s13, %s8588_s14  }
 0x6c3 PF: > { %p8427_p1 = scmp.ge.s32.totalorder %s8581_s27, 2  ;;  %s6309_s16 = sand.u32 1, %s8569_s24  }
 0x6c4   : > { %s6310_s17 = scalar_lea.sflag [#allocation3], %s6309_s16 }
 0x6c5   : > { %p8424_p2 = pnand %p8427_p1, %p8671_p6 }
 0x6c7   : > { %8564 = dma.done.wait (!%p8424_p2), %s6310_s17, 512  }
 0x6c8   : > { %8566 = vsyncadd (!%p8424_p2), %s6310_s17, 4294966784  ;;  %p17_p3 = scmp.ge.s32.totalorder %s8654_s30, 4   ;;  %s10659_s24 = smov %s8573_s25 }
 0x6c9   : > { %s10660_s25 = smov %s8577_s26  ;;  %s10661_s26 = smov %s8665_s10 }
 0x6ca   : > { %s10662_s27 = smov %s8654_s30  ;;  %19 = sbr.rel (!%p17_p3) target bundleno = 3 (0x3), region = 99 }
 0x6d1   :  { %6315 = vsyncpa [#allocation3], 1 }
 0x6d2   :  { %6317 = vsyncpa [#allocation3 + $0x1], 1 }

</bundles_post_ra>
